<compile_context>
chip_gen: v6e
topology: v6e:2x2x1
jax: 0.10.0
libtpu: 0.0.40
codegen_flags: <defaults>
</compile_context>

<pallas_src>
import numpy as np
import jax
import jax.numpy as jnp
from jax import lax
from jax.experimental import pallas as pl
from jax.experimental.pallas import tpu as pltpu


# --------------------------- host-side constants ---------------------------- #

def _pool_pad_select(ho, wo, wp, pad):
    """0/1 selection matrix.

    Rows  = flattened (optionally replication-padded) pooled-grid positions.
    Cols  = rows of the 4-way running-max array M (pooled value for (p, q)
            sits at row 2*p*wp + 2*q).
    """
    hpool, wpool = ho // 2, wo // 2
    hp2, wp2 = hpool + 2 * pad, wpool + 2 * pad
    lh = (ho - 2) * wp + wo - 1
    s = np.zeros((hp2 * wp2, lh), np.float32)
    for ii in range(hp2):
        for jj in range(wp2):
            cp = min(max(ii - pad, 0), hpool - 1)   # replication (edge) clamp
            cq = min(max(jj - pad, 0), wpool - 1)
            s[ii * wp2 + jj, 2 * cp * wp + 2 * cq] = 1.0
    return s


# ------------------------------ Pallas kernel ------------------------------- #

def _make_fused_kernel(dims):
    """dims: [(hp, ho)] per layer (square spatial: wp == hp, wo == ho)."""

    def conv3x3_relu(xin_bf16, w_ref, wp, ho, wo):
        # xin_bf16: (hp*wp, Cin) bf16 value, flattened padded input
        # (row = i*wp + j).  Result row r = i*wp + j holds the conv output at
        # (i, j) for j < wo; rows with j >= wo are junk and never selected
        # downstream.
        nrows = (ho - 1) * wp + wo
        acc = None
        for kh in range(3):
            for kw in range(3):
                off = kh * wp + kw
                part = jnp.dot(xin_bf16[off:off + nrows, :], w_ref[kh * 3 + kw],
                               preferred_element_type=jnp.float32)
                acc = part if acc is None else acc + part
        return jnp.maximum(acc, 0.0)                       # (nrows, Cout) f32

    def pool4max(y, wp, ho, wo):
        # Running 2x2 max: row 2*p*wp + 2*q holds the pooled value at (p, q).
        lh = (ho - 2) * wp + wo - 1
        return jnp.maximum(
            jnp.maximum(y[0:lh, :], y[1:lh + 1, :]),
            jnp.maximum(y[wp:wp + lh, :], y[wp + 1:wp + 1 + lh, :]))

    def kernel(x_ref, w1_ref, w2_ref, w3_ref, s1_ref, s2_ref, s3_ref, o_ref):
        # TODO(synk): Dropout(0.2) is applied as identity (eval-mode semantics);
        #             training-mode random masking is not reproduced.
        act = x_ref[...]                                   # (hp0*wp0, Cin) bf16
        w_refs = (w1_ref, w2_ref, w3_ref)
        for l, (hp, ho) in enumerate(dims):
            y = conv3x3_relu(act, w_refs[l], hp, ho, ho)   # conv + ReLU  (f32)
            m = pool4max(y, hp, ho, ho)                    # 2x2 max pool (f32)
            if l < 2:
                # Select pooled positions and replication-pad the next layer's
                # input — a single 0/1 matmul at bf16 MXU rate (exact: one
                # nonzero per row, the next conv would bf16 the values anyway).
                act = jnp.dot(s_ref_sel(l, s1_ref, s2_ref)[...],
                              m.astype(jnp.bfloat16),
                              preferred_element_type=jnp.float32
                              ).astype(jnp.bfloat16)
            else:
                # Final layer: emit pooled activations at full f32 precision.
                o_ref[...] = jnp.dot(s3_ref[...], m,
                                     preferred_element_type=jnp.float32
                                     ).astype(o_ref.dtype)

    def s_ref_sel(l, s1_ref, s2_ref):
        return s1_ref if l == 0 else s2_ref

    return kernel


# ------------------------------ forward wrapper ----------------------------- #

def owm_convnet3_forward(x_nchw, w1, w2, w3):
    n, ncha, size, _ = x_nchw.shape
    assert size % 8 == 0, "spatial size must be divisible by 8"
    dims = [(size + 2, size),
            (size // 2 + 2, size // 2),
            (size // 4 + 2, size // 4)]
    out_hw = size // 8
    cout3 = w3.shape[0]
    hp0 = size + 2

    # ---- tiny one-time layout plumbing (XLA glue on KB-sized tensors) ----
    x = jnp.transpose(x_nchw, (0, 2, 3, 1))                         # NCHW -> NHWC
    x = jnp.pad(x, ((0, 0), (1, 1), (1, 1), (0, 0)), mode="edge")   # ReplicationPad2d(1)
    x = x.reshape(n, hp0 * hp0, ncha).astype(jnp.bfloat16)          # flatten spatial

    def wmat(w):   # (Cout, Cin, 3, 3) -> (9, Cin, Cout) bf16 MXU operand
        cout, cin = w.shape[0], w.shape[1]
        return jnp.transpose(w, (2, 3, 1, 0)).reshape(9, cin, cout).astype(jnp.bfloat16)

    w1m, w2m, w3m = wmat(w1), wmat(w2), wmat(w3)

    # Pool-select (+ replication-pad) matrices: host-built 0/1 constants.
    # Layers 1-2 run at bf16 MXU rate (exact, single nonzero per row);
    # layer 3 (final output) stays f32.
    s1 = jnp.asarray(_pool_pad_select(size, size, size + 2, pad=1),
                     dtype=jnp.bfloat16)
    s2 = jnp.asarray(_pool_pad_select(size // 2, size // 2, size // 2 + 2, pad=1),
                     dtype=jnp.bfloat16)
    s3 = jnp.asarray(_pool_pad_select(size // 4, size // 4, size // 4 + 2, pad=0),
                     dtype=jnp.float32)

    kernel = _make_fused_kernel(dims)
    out = pl.pallas_call(
        kernel,
        out_shape=jax.ShapeDtypeStruct((n, out_hw * out_hw, cout3), jnp.float32),
        grid=(n,),
        in_specs=[
            pl.BlockSpec((None, hp0 * hp0, ncha), lambda i: (i, 0, 0)),
            pl.BlockSpec(w1m.shape, lambda i: (0, 0, 0)),
            pl.BlockSpec(w2m.shape, lambda i: (0, 0, 0)),
            pl.BlockSpec(w3m.shape, lambda i: (0, 0, 0)),
            pl.BlockSpec(s1.shape, lambda i: (0, 0)),
            pl.BlockSpec(s2.shape, lambda i: (0, 0)),
            pl.BlockSpec(s3.shape, lambda i: (0, 0)),
        ],
        out_specs=pl.BlockSpec((None, out_hw * out_hw, cout3), lambda i: (i, 0, 0)),
        compiler_params=pltpu.CompilerParams(
            dimension_semantics=("parallel",)),
    )(x, w1m, w2m, w3m, s1, s2, s3)

    out = out.reshape(n, out_hw, out_hw, cout3)
    return jnp.transpose(out, (0, 3, 1, 2))                         # NHWC -> NCHW


# ------------------------------- pure-JAX ref -------------------------------- #

def _ref_forward(x_nchw, w1, w2, w3):
    def pad(y):
        return jnp.pad(y, ((0, 0), (0, 0), (1, 1), (1, 1)), mode="edge")

    def conv(y, w):
        return lax.conv_general_dilated(
            y, w, window_strides=(1, 1), padding="VALID",
            dimension_numbers=("NCHW", "OIHW", "NCHW"))

    def mp(y):
        return jnp.max(jnp.stack([y[:, :, 0::2, 0::2], y[:, :, 0::2, 1::2],
                                  y[:, :, 1::2, 0::2], y[:, :, 1::2, 1::2]]),
                       axis=0)

    y = mp(jnp.maximum(conv(pad(x_nchw), w1), 0.0))
    y = mp(jnp.maximum(conv(pad(y), w2), 0.0))
    y = mp(jnp.maximum(conv(pad(y), w3), 0.0))
    return y


# ----------------------------------- main ------------------------------------ #

if __name__ == "__main__":
    # inputsize = (ncha, size, size) = (4, 16, 16), batch = 2
    batch, ncha, size = 2, 4, 16
    key = jax.random.PRNGKey(0)
    kx, k1, k2, k3 = jax.random.split(key, 4)

    x = jax.random.normal(kx, (batch, ncha, size, size), dtype=jnp.float32)

    def init_w(k, cout, cin):
        scale = 1.0 / jnp.sqrt(jnp.float32(cin * 9))
        return scale * jax.random.normal(k, (cout, cin, 3, 3), dtype=jnp.float32)

    w1 = init_w(k1, 64, ncha)    # c1: ncha -> 64
    w2 = init_w(k2, 128, 64)     # c2: 64   -> 128
    w3 = init_w(k3, 256, 128)    # c3: 128  -> 256

    out = jax.jit(owm_convnet3_forward)(x, w1, w2, w3)
    out = jax.block_until_ready(out)

    assert out.shape == (batch, 256, size // 8, size // 8), out.shape

    ref = jax.block_until_ready(_ref_forward(x, w1, w2, w3))
    if not jnp.allclose(out, ref, rtol=5e-2, atol=5e-2):
        raise AssertionError(
            f"mismatch vs reference, max abs diff={float(jnp.max(jnp.abs(out - ref)))}")

    print("KERNEL_OK")
</pallas_src>

<mosaic_0001>
module attributes {stable_mosaic.version = 11 : i64} {
  func.func @kernel(%arg0: i32, %arg1: memref<1x324x4xbf16, #tpu.memory_space<vmem>>, %arg2: memref<9x4x64xbf16, #tpu.memory_space<vmem>>, %arg3: memref<9x64x128xbf16, #tpu.memory_space<vmem>>, %arg4: memref<9x128x256xbf16, #tpu.memory_space<vmem>>, %arg5: memref<100x267xbf16, #tpu.memory_space<vmem>>, %arg6: memref<36x67xbf16, #tpu.memory_space<vmem>>, %arg7: memref<4x15xf32, #tpu.memory_space<vmem>>, %arg8: memref<1x4x256xf32, #tpu.memory_space<vmem>>) attributes {dimension_semantics = [#tpu.dimension_semantics<parallel>], iteration_bounds = array<i64: 2>, scalar_prefetch = 0 : i64, scratch_operands = 0 : i64, tpu.core_type = #tpu.core_type<tc>, window_params = [{transform_indices = @transform_0, window_bounds = array<i64: 1, 324, 4>}, {pipeline_mode = #tpu.pipeline_mode<synchronous>, transform_indices = @transform_1, window_bounds = array<i64: 9, 4, 64>}, {pipeline_mode = #tpu.pipeline_mode<synchronous>, transform_indices = @transform_2, window_bounds = array<i64: 9, 64, 128>}, {pipeline_mode = #tpu.pipeline_mode<synchronous>, transform_indices = @transform_3, window_bounds = array<i64: 9, 128, 256>}, {pipeline_mode = #tpu.pipeline_mode<synchronous>, transform_indices = @transform_4, window_bounds = array<i64: 100, 267>}, {pipeline_mode = #tpu.pipeline_mode<synchronous>, transform_indices = @transform_5, window_bounds = array<i64: 36, 67>}, {pipeline_mode = #tpu.pipeline_mode<synchronous>, transform_indices = @transform_6, window_bounds = array<i64: 4, 15>}, {transform_indices = @transform_7, window_bounds = array<i64: 1, 4, 256>}]} {
    %c0 = arith.constant 0 : index
    %c0_0 = arith.constant 0 : index
    %c0_1 = arith.constant 0 : index
    %0 = vector.load %arg1[%c0, %c0_0, %c0_1] : memref<1x324x4xbf16, #tpu.memory_space<vmem>>, vector<1x324x4xbf16>
    %1 = vector.shape_cast %0 : vector<1x324x4xbf16> to vector<324x4xbf16>
    %2 = vector.extract_strided_slice %1 {offsets = [0, 0], sizes = [286, 4], strides = [1, 1]} : vector<324x4xbf16> to vector<286x4xbf16>
    %c0_2 = arith.constant 0 : index
    %c0_3 = arith.constant 0 : index
    %c0_4 = arith.constant 0 : index
    %3 = vector.load %arg2[%c0_2, %c0_3, %c0_4] : memref<9x4x64xbf16, #tpu.memory_space<vmem>>, vector<1x4x64xbf16>
    %4 = vector.shape_cast %3 : vector<1x4x64xbf16> to vector<4x64xbf16>
    %cst = arith.constant dense<0.000000e+00> : vector<286x64xf32>
    %5 = tpu.matmul %2, %4, %cst {dimension_numbers = #tpu.dot_dimension_numbers<[1], [0], [0], [1], [0, 0, 1, 1], [], []>} : vector<286x4xbf16>, vector<4x64xbf16>, vector<286x64xf32> -> vector<286x64xf32>
    %6 = vector.extract_strided_slice %1 {offsets = [1, 0], sizes = [286, 4], strides = [1, 1]} : vector<324x4xbf16> to vector<286x4xbf16>
    %c1 = arith.constant 1 : index
    %c0_5 = arith.constant 0 : index
    %c0_6 = arith.constant 0 : index
    %7 = vector.load %arg2[%c1, %c0_5, %c0_6] : memref<9x4x64xbf16, #tpu.memory_space<vmem>>, vector<1x4x64xbf16>
    %8 = vector.shape_cast %7 : vector<1x4x64xbf16> to vector<4x64xbf16>
    %cst_7 = arith.constant dense<0.000000e+00> : vector<286x64xf32>
    %9 = tpu.matmul %6, %8, %cst_7 {dimension_numbers = #tpu.dot_dimension_numbers<[1], [0], [0], [1], [0, 0, 1, 1], [], []>} : vector<286x4xbf16>, vector<4x64xbf16>, vector<286x64xf32> -> vector<286x64xf32>
    %10 = arith.addf %5, %9 : vector<286x64xf32>
    %11 = vector.extract_strided_slice %1 {offsets = [2, 0], sizes = [286, 4], strides = [1, 1]} : vector<324x4xbf16> to vector<286x4xbf16>
    %c2 = arith.constant 2 : index
    %c0_8 = arith.constant 0 : index
    %c0_9 = arith.constant 0 : index
    %12 = vector.load %arg2[%c2, %c0_8, %c0_9] : memref<9x4x64xbf16, #tpu.memory_space<vmem>>, vector<1x4x64xbf16>
    %13 = vector.shape_cast %12 : vector<1x4x64xbf16> to vector<4x64xbf16>
    %cst_10 = arith.constant dense<0.000000e+00> : vector<286x64xf32>
    %14 = tpu.matmul %11, %13, %cst_10 {dimension_numbers = #tpu.dot_dimension_numbers<[1], [0], [0], [1], [0, 0, 1, 1], [], []>} : vector<286x4xbf16>, vector<4x64xbf16>, vector<286x64xf32> -> vector<286x64xf32>
    %15 = arith.addf %10, %14 : vector<286x64xf32>
    %16 = vector.extract_strided_slice %1 {offsets = [18, 0], sizes = [286, 4], strides = [1, 1]} : vector<324x4xbf16> to vector<286x4xbf16>
    %c3 = arith.constant 3 : index
    %c0_11 = arith.constant 0 : index
    %c0_12 = arith.constant 0 : index
    %17 = vector.load %arg2[%c3, %c0_11, %c0_12] : memref<9x4x64xbf16, #tpu.memory_space<vmem>>, vector<1x4x64xbf16>
    %18 = vector.shape_cast %17 : vector<1x4x64xbf16> to vector<4x64xbf16>
    %cst_13 = arith.constant dense<0.000000e+00> : vector<286x64xf32>
    %19 = tpu.matmul %16, %18, %cst_13 {dimension_numbers = #tpu.dot_dimension_numbers<[1], [0], [0], [1], [0, 0, 1, 1], [], []>} : vector<286x4xbf16>, vector<4x64xbf16>, vector<286x64xf32> -> vector<286x64xf32>
    %20 = arith.addf %15, %19 : vector<286x64xf32>
    %21 = vector.extract_strided_slice %1 {offsets = [19, 0], sizes = [286, 4], strides = [1, 1]} : vector<324x4xbf16> to vector<286x4xbf16>
    %c4 = arith.constant 4 : index
    %c0_14 = arith.constant 0 : index
    %c0_15 = arith.constant 0 : index
    %22 = vector.load %arg2[%c4, %c0_14, %c0_15] : memref<9x4x64xbf16, #tpu.memory_space<vmem>>, vector<1x4x64xbf16>
    %23 = vector.shape_cast %22 : vector<1x4x64xbf16> to vector<4x64xbf16>
    %cst_16 = arith.constant dense<0.000000e+00> : vector<286x64xf32>
    %24 = tpu.matmul %21, %23, %cst_16 {dimension_numbers = #tpu.dot_dimension_numbers<[1], [0], [0], [1], [0, 0, 1, 1], [], []>} : vector<286x4xbf16>, vector<4x64xbf16>, vector<286x64xf32> -> vector<286x64xf32>
    %25 = arith.addf %20, %24 : vector<286x64xf32>
    %26 = vector.extract_strided_slice %1 {offsets = [20, 0], sizes = [286, 4], strides = [1, 1]} : vector<324x4xbf16> to vector<286x4xbf16>
    %c5 = arith.constant 5 : index
    %c0_17 = arith.constant 0 : index
    %c0_18 = arith.constant 0 : index
    %27 = vector.load %arg2[%c5, %c0_17, %c0_18] : memref<9x4x64xbf16, #tpu.memory_space<vmem>>, vector<1x4x64xbf16>
    %28 = vector.shape_cast %27 : vector<1x4x64xbf16> to vector<4x64xbf16>
    %cst_19 = arith.constant dense<0.000000e+00> : vector<286x64xf32>
    %29 = tpu.matmul %26, %28, %cst_19 {dimension_numbers = #tpu.dot_dimension_numbers<[1], [0], [0], [1], [0, 0, 1, 1], [], []>} : vector<286x4xbf16>, vector<4x64xbf16>, vector<286x64xf32> -> vector<286x64xf32>
    %30 = arith.addf %25, %29 : vector<286x64xf32>
    %31 = vector.extract_strided_slice %1 {offsets = [36, 0], sizes = [286, 4], strides = [1, 1]} : vector<324x4xbf16> to vector<286x4xbf16>
    %c6 = arith.constant 6 : index
    %c0_20 = arith.constant 0 : index
    %c0_21 = arith.constant 0 : index
    %32 = vector.load %arg2[%c6, %c0_20, %c0_21] : memref<9x4x64xbf16, #tpu.memory_space<vmem>>, vector<1x4x64xbf16>
    %33 = vector.shape_cast %32 : vector<1x4x64xbf16> to vector<4x64xbf16>
    %cst_22 = arith.constant dense<0.000000e+00> : vector<286x64xf32>
    %34 = tpu.matmul %31, %33, %cst_22 {dimension_numbers = #tpu.dot_dimension_numbers<[1], [0], [0], [1], [0, 0, 1, 1], [], []>} : vector<286x4xbf16>, vector<4x64xbf16>, vector<286x64xf32> -> vector<286x64xf32>
    %35 = arith.addf %30, %34 : vector<286x64xf32>
    %36 = vector.extract_strided_slice %1 {offsets = [37, 0], sizes = [286, 4], strides = [1, 1]} : vector<324x4xbf16> to vector<286x4xbf16>
    %c7 = arith.constant 7 : index
    %c0_23 = arith.constant 0 : index
    %c0_24 = arith.constant 0 : index
    %37 = vector.load %arg2[%c7, %c0_23, %c0_24] : memref<9x4x64xbf16, #tpu.memory_space<vmem>>, vector<1x4x64xbf16>
    %38 = vector.shape_cast %37 : vector<1x4x64xbf16> to vector<4x64xbf16>
    %cst_25 = arith.constant dense<0.000000e+00> : vector<286x64xf32>
    %39 = tpu.matmul %36, %38, %cst_25 {dimension_numbers = #tpu.dot_dimension_numbers<[1], [0], [0], [1], [0, 0, 1, 1], [], []>} : vector<286x4xbf16>, vector<4x64xbf16>, vector<286x64xf32> -> vector<286x64xf32>
    %40 = arith.addf %35, %39 : vector<286x64xf32>
    %41 = vector.extract_strided_slice %1 {offsets = [38, 0], sizes = [286, 4], strides = [1, 1]} : vector<324x4xbf16> to vector<286x4xbf16>
    %c8 = arith.constant 8 : index
    %c0_26 = arith.constant 0 : index
    %c0_27 = arith.constant 0 : index
    %42 = vector.load %arg2[%c8, %c0_26, %c0_27] : memref<9x4x64xbf16, #tpu.memory_space<vmem>>, vector<1x4x64xbf16>
    %43 = vector.shape_cast %42 : vector<1x4x64xbf16> to vector<4x64xbf16>
    %cst_28 = arith.constant dense<0.000000e+00> : vector<286x64xf32>
    %44 = tpu.matmul %41, %43, %cst_28 {dimension_numbers = #tpu.dot_dimension_numbers<[1], [0], [0], [1], [0, 0, 1, 1], [], []>} : vector<286x4xbf16>, vector<4x64xbf16>, vector<286x64xf32> -> vector<286x64xf32>
    %45 = arith.addf %40, %44 : vector<286x64xf32>
    %cst_29 = arith.constant 0.000000e+00 : f32
    %46 = vector.broadcast %cst_29 : f32 to vector<286x64xf32>
    %47 = arith.maximumf %45, %46 : vector<286x64xf32>
    %48 = vector.extract_strided_slice %47 {offsets = [0, 0], sizes = [267, 64], strides = [1, 1]} : vector<286x64xf32> to vector<267x64xf32>
    %49 = vector.extract_strided_slice %47 {offsets = [1, 0], sizes = [267, 64], strides = [1, 1]} : vector<286x64xf32> to vector<267x64xf32>
    %50 = arith.maximumf %48, %49 : vector<267x64xf32>
    %51 = vector.extract_strided_slice %47 {offsets = [18, 0], sizes = [267, 64], strides = [1, 1]} : vector<286x64xf32> to vector<267x64xf32>
    %52 = vector.extract_strided_slice %47 {offsets = [19, 0], sizes = [267, 64], strides = [1, 1]} : vector<286x64xf32> to vector<267x64xf32>
    %53 = arith.maximumf %51, %52 : vector<267x64xf32>
    %54 = arith.maximumf %50, %53 : vector<267x64xf32>
    %c0_30 = arith.constant 0 : index
    %c0_31 = arith.constant 0 : index
    %55 = vector.load %arg5[%c0_30, %c0_31] : memref<100x267xbf16, #tpu.memory_space<vmem>>, vector<100x267xbf16>
    %56 = arith.truncf %54 : vector<267x64xf32> to vector<267x64xbf16>
    %cst_32 = arith.constant dense<0.000000e+00> : vector<100x64xf32>
    %57 = tpu.matmul %55, %56, %cst_32 {dimension_numbers = #tpu.dot_dimension_numbers<[1], [0], [0], [1], [0, 0, 1, 1], [], []>} : vector<100x267xbf16>, vector<267x64xbf16>, vector<100x64xf32> -> vector<100x64xf32>
    %58 = arith.truncf %57 : vector<100x64xf32> to vector<100x64xbf16>
    %59 = vector.extract_strided_slice %58 {offsets = [0, 0], sizes = [78, 64], strides = [1, 1]} : vector<100x64xbf16> to vector<78x64xbf16>
    %c0_33 = arith.constant 0 : index
    %c0_34 = arith.constant 0 : index
    %c0_35 = arith.constant 0 : index
    %60 = vector.load %arg3[%c0_33, %c0_34, %c0_35] : memref<9x64x128xbf16, #tpu.memory_space<vmem>>, vector<1x64x128xbf16>
    %61 = vector.shape_cast %60 : vector<1x64x128xbf16> to vector<64x128xbf16>
    %cst_36 = arith.constant dense<0.000000e+00> : vector<78x128xf32>
    %62 = tpu.matmul %59, %61, %cst_36 {dimension_numbers = #tpu.dot_dimension_numbers<[1], [0], [0], [1], [0, 0, 1, 1], [], []>} : vector<78x64xbf16>, vector<64x128xbf16>, vector<78x128xf32> -> vector<78x128xf32>
    %63 = vector.extract_strided_slice %58 {offsets = [1, 0], sizes = [78, 64], strides = [1, 1]} : vector<100x64xbf16> to vector<78x64xbf16>
    %c1_37 = arith.constant 1 : index
    %c0_38 = arith.constant 0 : index
    %c0_39 = arith.constant 0 : index
    %64 = vector.load %arg3[%c1_37, %c0_38, %c0_39] : memref<9x64x128xbf16, #tpu.memory_space<vmem>>, vector<1x64x128xbf16>
    %65 = vector.shape_cast %64 : vector<1x64x128xbf16> to vector<64x128xbf16>
    %cst_40 = arith.constant dense<0.000000e+00> : vector<78x128xf32>
    %66 = tpu.matmul %63, %65, %cst_40 {dimension_numbers = #tpu.dot_dimension_numbers<[1], [0], [0], [1], [0, 0, 1, 1], [], []>} : vector<78x64xbf16>, vector<64x128xbf16>, vector<78x128xf32> -> vector<78x128xf32>
    %67 = arith.addf %62, %66 : vector<78x128xf32>
    %68 = vector.extract_strided_slice %58 {offsets = [2, 0], sizes = [78, 64], strides = [1, 1]} : vector<100x64xbf16> to vector<78x64xbf16>
    %c2_41 = arith.constant 2 : index
    %c0_42 = arith.constant 0 : index
    %c0_43 = arith.constant 0 : index
    %69 = vector.load %arg3[%c2_41, %c0_42, %c0_43] : memref<9x64x128xbf16, #tpu.memory_space<vmem>>, vector<1x64x128xbf16>
    %70 = vector.shape_cast %69 : vector<1x64x128xbf16> to vector<64x128xbf16>
    %cst_44 = arith.constant dense<0.000000e+00> : vector<78x128xf32>
    %71 = tpu.matmul %68, %70, %cst_44 {dimension_numbers = #tpu.dot_dimension_numbers<[1], [0], [0], [1], [0, 0, 1, 1], [], []>} : vector<78x64xbf16>, vector<64x128xbf16>, vector<78x128xf32> -> vector<78x128xf32>
    %72 = arith.addf %67, %71 : vector<78x128xf32>
    %73 = vector.extract_strided_slice %58 {offsets = [10, 0], sizes = [78, 64], strides = [1, 1]} : vector<100x64xbf16> to vector<78x64xbf16>
    %c3_45 = arith.constant 3 : index
    %c0_46 = arith.constant 0 : index
    %c0_47 = arith.constant 0 : index
    %74 = vector.load %arg3[%c3_45, %c0_46, %c0_47] : memref<9x64x128xbf16, #tpu.memory_space<vmem>>, vector<1x64x128xbf16>
    %75 = vector.shape_cast %74 : vector<1x64x128xbf16> to vector<64x128xbf16>
    %cst_48 = arith.constant dense<0.000000e+00> : vector<78x128xf32>
    %76 = tpu.matmul %73, %75, %cst_48 {dimension_numbers = #tpu.dot_dimension_numbers<[1], [0], [0], [1], [0, 0, 1, 1], [], []>} : vector<78x64xbf16>, vector<64x128xbf16>, vector<78x128xf32> -> vector<78x128xf32>
    %77 = arith.addf %72, %76 : vector<78x128xf32>
    %78 = vector.extract_strided_slice %58 {offsets = [11, 0], sizes = [78, 64], strides = [1, 1]} : vector<100x64xbf16> to vector<78x64xbf16>
    %c4_49 = arith.constant 4 : index
    %c0_50 = arith.constant 0 : index
    %c0_51 = arith.constant 0 : index
    %79 = vector.load %arg3[%c4_49, %c0_50, %c0_51] : memref<9x64x128xbf16, #tpu.memory_space<vmem>>, vector<1x64x128xbf16>
    %80 = vector.shape_cast %79 : vector<1x64x128xbf16> to vector<64x128xbf16>
    %cst_52 = arith.constant dense<0.000000e+00> : vector<78x128xf32>
    %81 = tpu.matmul %78, %80, %cst_52 {dimension_numbers = #tpu.dot_dimension_numbers<[1], [0], [0], [1], [0, 0, 1, 1], [], []>} : vector<78x64xbf16>, vector<64x128xbf16>, vector<78x128xf32> -> vector<78x128xf32>
    %82 = arith.addf %77, %81 : vector<78x128xf32>
    %83 = vector.extract_strided_slice %58 {offsets = [12, 0], sizes = [78, 64], strides = [1, 1]} : vector<100x64xbf16> to vector<78x64xbf16>
    %c5_53 = arith.constant 5 : index
    %c0_54 = arith.constant 0 : index
    %c0_55 = arith.constant 0 : index
    %84 = vector.load %arg3[%c5_53, %c0_54, %c0_55] : memref<9x64x128xbf16, #tpu.memory_space<vmem>>, vector<1x64x128xbf16>
    %85 = vector.shape_cast %84 : vector<1x64x128xbf16> to vector<64x128xbf16>
    %cst_56 = arith.constant dense<0.000000e+00> : vector<78x128xf32>
    %86 = tpu.matmul %83, %85, %cst_56 {dimension_numbers = #tpu.dot_dimension_numbers<[1], [0], [0], [1], [0, 0, 1, 1], [], []>} : vector<78x64xbf16>, vector<64x128xbf16>, vector<78x128xf32> -> vector<78x128xf32>
    %87 = arith.addf %82, %86 : vector<78x128xf32>
    %88 = vector.extract_strided_slice %58 {offsets = [20, 0], sizes = [78, 64], strides = [1, 1]} : vector<100x64xbf16> to vector<78x64xbf16>
    %c6_57 = arith.constant 6 : index
    %c0_58 = arith.constant 0 : index
    %c0_59 = arith.constant 0 : index
    %89 = vector.load %arg3[%c6_57, %c0_58, %c0_59] : memref<9x64x128xbf16, #tpu.memory_space<vmem>>, vector<1x64x128xbf16>
    %90 = vector.shape_cast %89 : vector<1x64x128xbf16> to vector<64x128xbf16>
    %cst_60 = arith.constant dense<0.000000e+00> : vector<78x128xf32>
    %91 = tpu.matmul %88, %90, %cst_60 {dimension_numbers = #tpu.dot_dimension_numbers<[1], [0], [0], [1], [0, 0, 1, 1], [], []>} : vector<78x64xbf16>, vector<64x128xbf16>, vector<78x128xf32> -> vector<78x128xf32>
    %92 = arith.addf %87, %91 : vector<78x128xf32>
    %93 = vector.extract_strided_slice %58 {offsets = [21, 0], sizes = [78, 64], strides = [1, 1]} : vector<100x64xbf16> to vector<78x64xbf16>
    %c7_61 = arith.constant 7 : index
    %c0_62 = arith.constant 0 : index
    %c0_63 = arith.constant 0 : index
    %94 = vector.load %arg3[%c7_61, %c0_62, %c0_63] : memref<9x64x128xbf16, #tpu.memory_space<vmem>>, vector<1x64x128xbf16>
    %95 = vector.shape_cast %94 : vector<1x64x128xbf16> to vector<64x128xbf16>
    %cst_64 = arith.constant dense<0.000000e+00> : vector<78x128xf32>
    %96 = tpu.matmul %93, %95, %cst_64 {dimension_numbers = #tpu.dot_dimension_numbers<[1], [0], [0], [1], [0, 0, 1, 1], [], []>} : vector<78x64xbf16>, vector<64x128xbf16>, vector<78x128xf32> -> vector<78x128xf32>
    %97 = arith.addf %92, %96 : vector<78x128xf32>
    %98 = vector.extract_strided_slice %58 {offsets = [22, 0], sizes = [78, 64], strides = [1, 1]} : vector<100x64xbf16> to vector<78x64xbf16>
    %c8_65 = arith.constant 8 : index
    %c0_66 = arith.constant 0 : index
    %c0_67 = arith.constant 0 : index
    %99 = vector.load %arg3[%c8_65, %c0_66, %c0_67] : memref<9x64x128xbf16, #tpu.memory_space<vmem>>, vector<1x64x128xbf16>
    %100 = vector.shape_cast %99 : vector<1x64x128xbf16> to vector<64x128xbf16>
    %cst_68 = arith.constant dense<0.000000e+00> : vector<78x128xf32>
    %101 = tpu.matmul %98, %100, %cst_68 {dimension_numbers = #tpu.dot_dimension_numbers<[1], [0], [0], [1], [0, 0, 1, 1], [], []>} : vector<78x64xbf16>, vector<64x128xbf16>, vector<78x128xf32> -> vector<78x128xf32>
    %102 = arith.addf %97, %101 : vector<78x128xf32>
    %cst_69 = arith.constant 0.000000e+00 : f32
    %103 = vector.broadcast %cst_69 : f32 to vector<78x128xf32>
    %104 = arith.maximumf %102, %103 : vector<78x128xf32>
    %105 = vector.extract_strided_slice %104 {offsets = [0, 0], sizes = [67, 128], strides = [1, 1]} : vector<78x128xf32> to vector<67x128xf32>
    %106 = vector.extract_strided_slice %104 {offsets = [1, 0], sizes = [67, 128], strides = [1, 1]} : vector<78x128xf32> to vector<67x128xf32>
    %107 = arith.maximumf %105, %106 : vector<67x128xf32>
    %108 = vector.extract_strided_slice %104 {offsets = [10, 0], sizes = [67, 128], strides = [1, 1]} : vector<78x128xf32> to vector<67x128xf32>
    %109 = vector.extract_strided_slice %104 {offsets = [11, 0], sizes = [67, 128], strides = [1, 1]} : vector<78x128xf32> to vector<67x128xf32>
    %110 = arith.maximumf %108, %109 : vector<67x128xf32>
    %111 = arith.maximumf %107, %110 : vector<67x128xf32>
    %c0_70 = arith.constant 0 : index
    %c0_71 = arith.constant 0 : index
    %112 = vector.load %arg6[%c0_70, %c0_71] : memref<36x67xbf16, #tpu.memory_space<vmem>>, vector<36x67xbf16>
    %113 = arith.truncf %111 : vector<67x128xf32> to vector<67x128xbf16>
    %cst_72 = arith.constant dense<0.000000e+00> : vector<36x128xf32>
    %114 = tpu.matmul %112, %113, %cst_72 {dimension_numbers = #tpu.dot_dimension_numbers<[1], [0], [0], [1], [0, 0, 1, 1], [], []>} : vector<36x67xbf16>, vector<67x128xbf16>, vector<36x128xf32> -> vector<36x128xf32>
    %115 = arith.truncf %114 : vector<36x128xf32> to vector<36x128xbf16>
    %116 = vector.extract_strided_slice %115 {offsets = [0, 0], sizes = [22, 128], strides = [1, 1]} : vector<36x128xbf16> to vector<22x128xbf16>
    %c0_73 = arith.constant 0 : index
    %c0_74 = arith.constant 0 : index
    %c0_75 = arith.constant 0 : index
    %117 = vector.load %arg4[%c0_73, %c0_74, %c0_75] : memref<9x128x256xbf16, #tpu.memory_space<vmem>>, vector<1x128x256xbf16>
    %118 = vector.shape_cast %117 : vector<1x128x256xbf16> to vector<128x256xbf16>
    %cst_76 = arith.constant dense<0.000000e+00> : vector<22x256xf32>
    %119 = tpu.matmul %116, %118, %cst_76 {dimension_numbers = #tpu.dot_dimension_numbers<[1], [0], [0], [1], [0, 0, 1, 1], [], []>} : vector<22x128xbf16>, vector<128x256xbf16>, vector<22x256xf32> -> vector<22x256xf32>
    %120 = vector.extract_strided_slice %115 {offsets = [1, 0], sizes = [22, 128], strides = [1, 1]} : vector<36x128xbf16> to vector<22x128xbf16>
    %c1_77 = arith.constant 1 : index
    %c0_78 = arith.constant 0 : index
    %c0_79 = arith.constant 0 : index
    %121 = vector.load %arg4[%c1_77, %c0_78, %c0_79] : memref<9x128x256xbf16, #tpu.memory_space<vmem>>, vector<1x128x256xbf16>
    %122 = vector.shape_cast %121 : vector<1x128x256xbf16> to vector<128x256xbf16>
    %cst_80 = arith.constant dense<0.000000e+00> : vector<22x256xf32>
    %123 = tpu.matmul %120, %122, %cst_80 {dimension_numbers = #tpu.dot_dimension_numbers<[1], [0], [0], [1], [0, 0, 1, 1], [], []>} : vector<22x128xbf16>, vector<128x256xbf16>, vector<22x256xf32> -> vector<22x256xf32>
    %124 = arith.addf %119, %123 : vector<22x256xf32>
    %125 = vector.extract_strided_slice %115 {offsets = [2, 0], sizes = [22, 128], strides = [1, 1]} : vector<36x128xbf16> to vector<22x128xbf16>
    %c2_81 = arith.constant 2 : index
    %c0_82 = arith.constant 0 : index
    %c0_83 = arith.constant 0 : index
    %126 = vector.load %arg4[%c2_81, %c0_82, %c0_83] : memref<9x128x256xbf16, #tpu.memory_space<vmem>>, vector<1x128x256xbf16>
    %127 = vector.shape_cast %126 : vector<1x128x256xbf16> to vector<128x256xbf16>
    %cst_84 = arith.constant dense<0.000000e+00> : vector<22x256xf32>
    %128 = tpu.matmul %125, %127, %cst_84 {dimension_numbers = #tpu.dot_dimension_numbers<[1], [0], [0], [1], [0, 0, 1, 1], [], []>} : vector<22x128xbf16>, vector<128x256xbf16>, vector<22x256xf32> -> vector<22x256xf32>
    %129 = arith.addf %124, %128 : vector<22x256xf32>
    %130 = vector.extract_strided_slice %115 {offsets = [6, 0], sizes = [22, 128], strides = [1, 1]} : vector<36x128xbf16> to vector<22x128xbf16>
    %c3_85 = arith.constant 3 : index
    %c0_86 = arith.constant 0 : index
    %c0_87 = arith.constant 0 : index
    %131 = vector.load %arg4[%c3_85, %c0_86, %c0_87] : memref<9x128x256xbf16, #tpu.memory_space<vmem>>, vector<1x128x256xbf16>
    %132 = vector.shape_cast %131 : vector<1x128x256xbf16> to vector<128x256xbf16>
    %cst_88 = arith.constant dense<0.000000e+00> : vector<22x256xf32>
    %133 = tpu.matmul %130, %132, %cst_88 {dimension_numbers = #tpu.dot_dimension_numbers<[1], [0], [0], [1], [0, 0, 1, 1], [], []>} : vector<22x128xbf16>, vector<128x256xbf16>, vector<22x256xf32> -> vector<22x256xf32>
    %134 = arith.addf %129, %133 : vector<22x256xf32>
    %135 = vector.extract_strided_slice %115 {offsets = [7, 0], sizes = [22, 128], strides = [1, 1]} : vector<36x128xbf16> to vector<22x128xbf16>
    %c4_89 = arith.constant 4 : index
    %c0_90 = arith.constant 0 : index
    %c0_91 = arith.constant 0 : index
    %136 = vector.load %arg4[%c4_89, %c0_90, %c0_91] : memref<9x128x256xbf16, #tpu.memory_space<vmem>>, vector<1x128x256xbf16>
    %137 = vector.shape_cast %136 : vector<1x128x256xbf16> to vector<128x256xbf16>
    %cst_92 = arith.constant dense<0.000000e+00> : vector<22x256xf32>
    %138 = tpu.matmul %135, %137, %cst_92 {dimension_numbers = #tpu.dot_dimension_numbers<[1], [0], [0], [1], [0, 0, 1, 1], [], []>} : vector<22x128xbf16>, vector<128x256xbf16>, vector<22x256xf32> -> vector<22x256xf32>
    %139 = arith.addf %134, %138 : vector<22x256xf32>
    %140 = vector.extract_strided_slice %115 {offsets = [8, 0], sizes = [22, 128], strides = [1, 1]} : vector<36x128xbf16> to vector<22x128xbf16>
    %c5_93 = arith.constant 5 : index
    %c0_94 = arith.constant 0 : index
    %c0_95 = arith.constant 0 : index
    %141 = vector.load %arg4[%c5_93, %c0_94, %c0_95] : memref<9x128x256xbf16, #tpu.memory_space<vmem>>, vector<1x128x256xbf16>
    %142 = vector.shape_cast %141 : vector<1x128x256xbf16> to vector<128x256xbf16>
    %cst_96 = arith.constant dense<0.000000e+00> : vector<22x256xf32>
    %143 = tpu.matmul %140, %142, %cst_96 {dimension_numbers = #tpu.dot_dimension_numbers<[1], [0], [0], [1], [0, 0, 1, 1], [], []>} : vector<22x128xbf16>, vector<128x256xbf16>, vector<22x256xf32> -> vector<22x256xf32>
    %144 = arith.addf %139, %143 : vector<22x256xf32>
    %145 = vector.extract_strided_slice %115 {offsets = [12, 0], sizes = [22, 128], strides = [1, 1]} : vector<36x128xbf16> to vector<22x128xbf16>
    %c6_97 = arith.constant 6 : index
    %c0_98 = arith.constant 0 : index
    %c0_99 = arith.constant 0 : index
    %146 = vector.load %arg4[%c6_97, %c0_98, %c0_99] : memref<9x128x256xbf16, #tpu.memory_space<vmem>>, vector<1x128x256xbf16>
    %147 = vector.shape_cast %146 : vector<1x128x256xbf16> to vector<128x256xbf16>
    %cst_100 = arith.constant dense<0.000000e+00> : vector<22x256xf32>
    %148 = tpu.matmul %145, %147, %cst_100 {dimension_numbers = #tpu.dot_dimension_numbers<[1], [0], [0], [1], [0, 0, 1, 1], [], []>} : vector<22x128xbf16>, vector<128x256xbf16>, vector<22x256xf32> -> vector<22x256xf32>
    %149 = arith.addf %144, %148 : vector<22x256xf32>
    %150 = vector.extract_strided_slice %115 {offsets = [13, 0], sizes = [22, 128], strides = [1, 1]} : vector<36x128xbf16> to vector<22x128xbf16>
    %c7_101 = arith.constant 7 : index
    %c0_102 = arith.constant 0 : index
    %c0_103 = arith.constant 0 : index
    %151 = vector.load %arg4[%c7_101, %c0_102, %c0_103] : memref<9x128x256xbf16, #tpu.memory_space<vmem>>, vector<1x128x256xbf16>
    %152 = vector.shape_cast %151 : vector<1x128x256xbf16> to vector<128x256xbf16>
    %cst_104 = arith.constant dense<0.000000e+00> : vector<22x256xf32>
    %153 = tpu.matmul %150, %152, %cst_104 {dimension_numbers = #tpu.dot_dimension_numbers<[1], [0], [0], [1], [0, 0, 1, 1], [], []>} : vector<22x128xbf16>, vector<128x256xbf16>, vector<22x256xf32> -> vector<22x256xf32>
    %154 = arith.addf %149, %153 : vector<22x256xf32>
    %155 = vector.extract_strided_slice %115 {offsets = [14, 0], sizes = [22, 128], strides = [1, 1]} : vector<36x128xbf16> to vector<22x128xbf16>
    %c8_105 = arith.constant 8 : index
    %c0_106 = arith.constant 0 : index
    %c0_107 = arith.constant 0 : index
    %156 = vector.load %arg4[%c8_105, %c0_106, %c0_107] : memref<9x128x256xbf16, #tpu.memory_space<vmem>>, vector<1x128x256xbf16>
    %157 = vector.shape_cast %156 : vector<1x128x256xbf16> to vector<128x256xbf16>
    %cst_108 = arith.constant dense<0.000000e+00> : vector<22x256xf32>
    %158 = tpu.matmul %155, %157, %cst_108 {dimension_numbers = #tpu.dot_dimension_numbers<[1], [0], [0], [1], [0, 0, 1, 1], [], []>} : vector<22x128xbf16>, vector<128x256xbf16>, vector<22x256xf32> -> vector<22x256xf32>
    %159 = arith.addf %154, %158 : vector<22x256xf32>
    %cst_109 = arith.constant 0.000000e+00 : f32
    %160 = vector.broadcast %cst_109 : f32 to vector<22x256xf32>
    %161 = arith.maximumf %159, %160 : vector<22x256xf32>
    %162 = vector.extract_strided_slice %161 {offsets = [0, 0], sizes = [15, 256], strides = [1, 1]} : vector<22x256xf32> to vector<15x256xf32>
    %163 = vector.extract_strided_slice %161 {offsets = [1, 0], sizes = [15, 256], strides = [1, 1]} : vector<22x256xf32> to vector<15x256xf32>
    %164 = arith.maximumf %162, %163 : vector<15x256xf32>
    %165 = vector.extract_strided_slice %161 {offsets = [6, 0], sizes = [15, 256], strides = [1, 1]} : vector<22x256xf32> to vector<15x256xf32>
    %166 = vector.extract_strided_slice %161 {offsets = [7, 0], sizes = [15, 256], strides = [1, 1]} : vector<22x256xf32> to vector<15x256xf32>
    %167 = arith.maximumf %165, %166 : vector<15x256xf32>
    %168 = arith.maximumf %164, %167 : vector<15x256xf32>
    %c0_110 = arith.constant 0 : index
    %c0_111 = arith.constant 0 : index
    %169 = vector.load %arg7[%c0_110, %c0_111] : memref<4x15xf32, #tpu.memory_space<vmem>>, vector<4x15xf32>
    %cst_112 = arith.constant dense<0.000000e+00> : vector<4x256xf32>
    %170 = tpu.matmul %169, %168, %cst_112 {dimension_numbers = #tpu.dot_dimension_numbers<[1], [0], [0], [1], [0, 0, 1, 1], [], []>} : vector<4x15xf32>, vector<15x256xf32>, vector<4x256xf32> -> vector<4x256xf32>
    %c0_113 = arith.constant 0 : index
    %c0_114 = arith.constant 0 : index
    %c0_115 = arith.constant 0 : index
    %171 = vector.load %arg8[%c0_113, %c0_114, %c0_115] : memref<1x4x256xf32, #tpu.memory_space<vmem>>, vector<1x4x256xf32>
    %172 = vector.shape_cast %171 : vector<1x4x256xf32> to vector<4x256xf32>
    %173 = vector.shape_cast %170 : vector<4x256xf32> to vector<1x4x256xf32>
    tpu.vector_store %arg8[%c0_113, %c0_114, %c0_115], %173 {strides = array<i32>} : memref<1x4x256xf32, #tpu.memory_space<vmem>>, vector<1x4x256xf32>,
    return
  }
  func.func @transform_0(%arg0: i32) -> (i32, i32, i32) {
    %c0_i32 = arith.constant 0 : i32
    %c0_i32_0 = arith.constant 0 : i32
    %c0_i32_1 = arith.constant 0 : i32
    return %arg0, %c0_i32, %c0_i32_0 : i32, i32, i32
  }
  func.func @transform_1(%arg0: i32) -> (i32, i32, i32) {
    %c0_i32 = arith.constant 0 : i32
    %c0_i32_0 = arith.constant 0 : i32
    %c0_i32_1 = arith.constant 0 : i32
    %c0_i32_2 = arith.constant 0 : i32
    return %c0_i32, %c0_i32_0, %c0_i32_1 : i32, i32, i32
  }
  func.func @transform_2(%arg0: i32) -> (i32, i32, i32) {
    %c0_i32 = arith.constant 0 : i32
    %c0_i32_0 = arith.constant 0 : i32
    %c0_i32_1 = arith.constant 0 : i32
    %c0_i32_2 = arith.constant 0 : i32
    return %c0_i32, %c0_i32_0, %c0_i32_1 : i32, i32, i32
  }
  func.func @transform_3(%arg0: i32) -> (i32, i32, i32) {
    %c0_i32 = arith.constant 0 : i32
    %c0_i32_0 = arith.constant 0 : i32
    %c0_i32_1 = arith.constant 0 : i32
    %c0_i32_2 = arith.constant 0 : i32
    return %c0_i32, %c0_i32_0, %c0_i32_1 : i32, i32, i32
  }
  func.func @transform_4(%arg0: i32) -> (i32, i32) {
    %c0_i32 = arith.constant 0 : i32
    %c0_i32_0 = arith.constant 0 : i32
    %c0_i32_1 = arith.constant 0 : i32
    return %c0_i32, %c0_i32_0 : i32, i32
  }
  func.func @transform_5(%arg0: i32) -> (i32, i32) {
    %c0_i32 = arith.constant 0 : i32
    %c0_i32_0 = arith.constant 0 : i32
    %c0_i32_1 = arith.constant 0 : i32
    return %c0_i32, %c0_i32_0 : i32, i32
  }
  func.func @transform_6(%arg0: i32) -> (i32, i32) {
    %c0_i32 = arith.constant 0 : i32
    %c0_i32_0 = arith.constant 0 : i32
    %c0_i32_1 = arith.constant 0 : i32
    return %c0_i32, %c0_i32_0 : i32, i32
  }
  func.func @transform_7(%arg0: i32) -> (i32, i32, i32) {
    %c0_i32 = arith.constant 0 : i32
    %c0_i32_0 = arith.constant 0 : i32
    %c0_i32_1 = arith.constant 0 : i32
    return %arg0, %c0_i32, %c0_i32_0 : i32, i32, i32
  }
}

</mosaic_0001>

<bundles_post_ra>
// kernel: owm_convnet3_forward.1
= control target key start
LH: loop header
LB: loop body
LE: loop exit
PB: predicated region body
PF: predicated region fallthrough
CT: control target
= control target key end

     0   :  { %s9056_s24 = smov 0   ;;  %s12095_s0 = inlined_call_operand.vmem [shape: bf16[2,324,4], index: 0, kind: input, shape index: {}]   ;;  %s12096_s1 = inlined_call_operand.vmem [shape: bf16[9,4,64], index: 1, kind: input, shape index: {}]   ;;  %s12097_s2 = inlined_call_operand.vmem [shape: bf16[9,64,128], index: 2, kind: input, shape index: {}]   ;;  %s12098_s3 = inlined_call_operand.vmem [shape: bf16[9,128,256], index: 3, kind: input, shape index: {}]   ;;  %s12099_s4 = inlined_call_operand.vmem [shape: bf16[100,267], index: 4, kind: input, shape index: {}]   ;;  %s12100_s5 = inlined_call_operand.vmem [shape: bf16[36,67], index: 5, kind: input, shape index: {}]   ;;  %s12101_s6 = inlined_call_operand.vmem [shape: f32[4,15], index: 6, kind: input, shape index: {}]   ;;  %s12102_s7 = inlined_call_operand.vmem [shape: f32[2,4,256], index: 7, kind: output, shape index: {}]  }
   0x1 LB: > { %s7032_s25 = sadd.s32 4294967295, %s9010_s24   ;;  %p7036_p0 = scmp.ge.s32.totalorder %s9010_s24, 1  ;;  %s9010_s24 = sphi %s9056_s24, %s17_s24  }
   0x2   : > { %p237_p1 = scmp.lt.s32.totalorder %s9010_s24, 3 }
   0x4   : > { %p238_p2 = pnand %p7036_p0, %p237_p1 }
   0x6   : > { %241 = sbr.rel (%p238_p2) target bundleno = 2081 (0x821), region = 48 }
   0xb   : > { %v7040_v0 = vld [vmem:[%s12096_s1 + $0x2] sm:$0x3]  ;;  %vm613_vm0 = vcmask 1041408   ;;  %v321_v1 = vld [vmem:[%s12096_s1] sm:$0x3]  ;;  %p269_p3 = scmp.lt.s32.totalorder %s7032_s25, 1 }
   0xc   : > { %8661 = vmatprep.subr.msk.bf16.mxu0 %vm613_vm0, %v7040_v0  ;;  %8662 = vmatprep.subr.msk.bf16.mxu1 %vm613_vm0, %v321_v1  ;;  %v615_v2 = vsel %vm613_vm0, %v7040_v0, 0  ;;  %v831_v3 = vsel %vm613_vm0, %v321_v1, 0  ;;  %v7095_v4 = vld [vmem:[%s12096_s1 + $0x4] sm:$0x3]  ;;  %v7114_v5 = vld [vmem:[%s12096_s1 + $0x6] sm:$0x3] }
   0xd   : > { %8016 = vmatpush3.bf16.msra.mxu0 %v615_v2  ;;  %8054 = vmatpush3.bf16.msra.mxu1 %v831_v3  ;;  %s12237_s25 = smov (!%p269_p3, %s7032_s25), 1  ;;  %vm558_vm1 = vcmask 31744   ;;  %v1334_v9 = vsel %vm613_vm0, %v7114_v5, 0  ;;  %vm414_vm2 = vsmask.f32 7424  ;;  %v1103_v26 = vsel %vm613_vm0, %v7095_v4, 0 }
   0xe   : > { %8663 = vmatprep.subr.msk.bf16.mxu0 %vm613_vm0, %v7095_v4  ;;  %8664 = vmatprep.subr.msk.bf16.mxu1 %vm613_vm0, %v7114_v5  ;;  %s8670_s11 = smul.u32 164, %s12237_s25  ;;  %v9160_v37 = vld [vmem:[%s12096_s1 + $0x8] sm:$0x3]  ;;  %v9222_v60 = vld [vmem:[%s12096_s1 + $0xa] sm:$0x3]  ;;  %vm1012_vm3 = vcmask 1046528  }
   0xf   : > { %vm1908_vm4 = vcmask 1045504   ;;  %vm1554_vm5 = vsmask.f32 6400  ;;  %vm2452_vm6 = vsmask.f32 5376  ;;  %vm2810_vm7 = vcmask 1044480  }
  0x10   : > { %s9088_s14 = scalar_lea.vmem %s12095_s0, %s8670_s11  ;;  %vm9013_vm8 = vmmov 0   ;;  %vm3649_vm9 = vcmask 89088   ;;  %vm3940_vm10 = vcmask 523264   ;;  %vm4291_vm11 = vcmask 1042432   ;;  %s7688_s13 = sshll.u32 %s12237_s25, 3 }
  0x11   : > { %v9091_v6 = vld [vmem:[%s9088_s14] sm:$0xff]   ;;  %v9094_v7 = vld [vmem:[%s9088_s14 + $0x8] sm:$0xff]   ;;  %v9097_v8 = vld [vmem:[%s9088_s14 + $0x10] sm:$0xff]   ;;  %vm4434_vm12 = vsmask.f32 2304  ;;  %vm5310_vm13 = vcmask 1040384   ;;  %s278_s16 = scalar_lea.vmem %s12102_s7, %s7688_s13 }
  0x12   : > { %v416_v10 = vshrl.u32 %v9091_v6, 16  ;;  %v418_v11 = vshll.u32 %v9091_v6, 16  ;;  %v423_v12 = vshll.u32 %v9094_v7, 16  ;;  %v427_v13 = vshrl.u32 %v9094_v7, 16  ;;  %8055 = vmatprep.mubr.msk.bf16.mxu1 %vm558_vm1, %v9091_v6  ;;  %v9112_v15 = vld [vmem:[%s9088_s14 + $0x18] sm:$0xff]   ;;  %v9118_v17 = vld [vmem:[%s9088_s14 + $0x20] sm:$0xff]  }
  0x13   : > { %v9107_v14 = vshll.u32 %v9097_v8, 16  ;;  %8056 = vmatmul.mubr.msk.bf16.vlgmr.msra.gmra.mxu1 %vm558_vm1, %v9094_v7  ;;  %v9115_v16 = vshrl.u32 %v9097_v8, 16  ;;  %v9125_v20 = vld [vmem:[%s9088_s14 + $0x28] sm:$0xff]   ;;  %v9129_v22 = vshll.u32 %v9112_v15, 16  ;;  %v9134_v25 = vshll.u32 %v9118_v17, 16  ;;  %v9155_v36 = vld [vmem:[%s9088_s14 + $0x30] sm:$0xff]  }
  0x14   : > { %v420_v18 = vrot.slane %v418_v11, 1  ;;  %v425_v19 = vrot.slane %v423_v12, 1  ;;  %8059 = vmatprep.mubr.msk.bf16.mxu1 %vm558_vm1, %v9097_v8  ;;  %8130 = vmatpush3.bf16.msra.mxu1 %v1334_v9  ;;  %v9140_v29 = vshrl.u32 %v9112_v15, 16  ;;  %v9145_v32 = vshrl.u32 %v9118_v17, 16  ;;  %v9171_v41 = vld [vmem:[%s9088_s14 + $0x38] sm:$0xff]   ;;  %v9192_v49 = vld [vmem:[%s9088_s14 + $0x40] sm:$0xff]  }
  0x15   : > { %v433_v21 = vrot.slane %v9107_v14, 1  ;;  %v441_v28 = vrot.slane %v9129_v22, 1  ;;  %v9148_v33 = vshll.u32 %v9125_v20, 16  ;;  %v449_v35 = vrot.slane %v9134_v25, 1  ;;  %v9203_v53 = vld [vmem:[%s9088_s14 + $0x48] sm:$0xff]   ;;  %v9225_v61 = vld [vmem:[%s9088_s14 + $0x50] sm:$0xff]   ;;  %8666 = vmatprep.subr.msk.bf16.mxu1 %vm613_vm0, %v9222_v60 }
  0x16   : > { %v421_v23 = vor.u32 %v420_v18, %v416_v10  ;;  %v429_v24 = vor.u32 %v427_v13, %v425_v19  ;;  %v9176_v42 = vshll.u32 %v9155_v36, 16  ;;  %v9180_v44 = vshrl.u32 %v9125_v20, 16  ;;  %v9240_v2 = vld [vmem:[%s9088_s14 + $0x58] sm:$0xff]  }
  0x17   : > { %v437_v27 = vor.u32 %v9115_v16, %v433_v21  ;;  %v445_v38 = vor.u32 %v9140_v29, %v441_v28  ;;  %v453_v39 = vor.u32 %v9145_v32, %v449_v35  ;;  %v457_v40 = vrot.slane %v9148_v33, 1 }
  0x18   : > { %v426_v30 = vsel %vm414_vm2, %v421_v23, %v425_v19  ;;  %v434_v31 = vsel %vm414_vm2, %v429_v24, %v433_v21  ;;  %v9184_v46 = vshrl.u32 %v9155_v36, 16  ;;  %v9187_v47 = vshll.u32 %v9171_v41, 16  ;;  %v9263_v21 = vld [vmem:[%s9088_s14 + $0x60] sm:$0xff]  }
  0x19   : > { %8017 = vmatprep.mubr.msk.bf16.mxu0 %vm558_vm1, %v426_v30  ;;  %v442_v34 = vsel %vm414_vm2, %v437_v27, %v441_v28  ;;  %v450_v43 = vsel %vm414_vm2, %v445_v38, %v449_v35  ;;  %v458_v45 = vsel %vm414_vm2, %v453_v39, %v457_v40  ;;  %v465_v48 = vrot.slane %v9176_v42, 1  ;;  %v9278_v27 = vld [vmem:[%s9088_s14 + $0x68] sm:$0xff]   ;;  %v9297_v39 = vld [vmem:[%s9088_s14 + $0x70] sm:$0xff]  }
  0x1a   : > { %8018 = vmatmul.mubr.msk.bf16.vlgmr.msra.gmra.mxu0 %vm558_vm1, %v434_v31  ;;  %v461_v50 = vor.u32 %v9180_v44, %v457_v40  ;;  %v473_v52 = vrot.slane %v9187_v47, 1  ;;  %v9206_v54 = vshll.u32 %v9192_v49, 16  ;;  %v9210_v56 = vshrl.u32 %v9171_v41, 16 }
  0x1b   : > { %8021 = vmatprep.mubr.msk.bf16.mxu0 %vm558_vm1, %v442_v34  ;;  %8060 = vmatmul.mubr.msk.bf16.gmra.mxu1 %vm558_vm1, %v9112_v15  ;;  %v469_v51 = vor.u32 %v9184_v46, %v465_v48  ;;  %v9213_v57 = vshrl.u32 %v9192_v49, 16  ;;  %v9217_v59 = vshll.u32 %v9203_v53, 16  ;;  %v9243_v3 = vshll.u32 %v9225_v61, 16 }
  0x1c   : > { %8063 = vmatprep.mubr.msk.bf16.mxu1 %vm558_vm1, %v9118_v17  ;;  %8092 = vmatpush3.bf16.msra.mxu0 %v1103_v26  ;;  %v466_v55 = vsel %vm414_vm2, %v461_v50, %v465_v48  ;;  %v481_v62 = vrot.slane %v9206_v54, 1  ;;  %v477_v63 = vor.u32 %v9210_v56, %v473_v52  ;;  %v9247_v5 = vshrl.u32 %v9203_v53, 16 }
  0x1d   : > { %8665 = vmatprep.subr.msk.bf16.mxu0 %vm613_vm0, %v9160_v37  ;;  %v474_v58 = vsel %vm414_vm2, %v469_v51, %v473_v52  ;;  %v489_v1 = vrot.slane %v9217_v59, 1  ;;  %v9251_v10 = vshrl.u32 %v9225_v61, 16  ;;  %v9254_v11 = vshll.u32 %v9240_v2, 16 }
  0x1e   : > { %v485_v0 = vor.u32 %v9213_v57, %v481_v62  ;;  %v482_v4 = vsel %vm414_vm2, %v477_v63, %v481_v62  ;;  %v9258_v18 = vrot.slane %v423_v12, 2  ;;  %v497_v19 = vrot.slane %v9243_v3, 1 }
  0x1f   : > { %v493_v23 = vor.u32 %v9247_v5, %v489_v1  ;;  %v9271_v24 = vrot.slane %v427_v13, 1  ;;  %v505_v26 = vrot.slane %v9254_v11, 1  ;;  %v9283_v30 = vshll.u32 %v9263_v21, 16 }
  0x20   : > { %v490_v9 = vsel %vm414_vm2, %v485_v0, %v489_v1  ;;  %v501_v12 = vor.u32 %v9251_v10, %v497_v19  ;;  %v9287_v13 = vshrl.u32 %v9240_v2, 16  ;;  %v9290_v34 = vshrl.u32 %v9263_v21, 16 }
  0x21   : > { %v498_v31 = vsel %vm414_vm2, %v493_v23, %v497_v19  ;;  %v9294_v38 = vshll.u32 %v9278_v27, 16  ;;  %v513_v40 = vrot.slane %v9283_v30, 1  ;;  %v9313_v51 = vshrl.u32 %v9278_v27, 16 }
  0x22   : > { %8022 = vmatmul.mubr.msk.bf16.gmra.mxu0 %vm558_vm1, %v450_v43  ;;  %v506_v35 = vsel %vm414_vm2, %v501_v12, %v505_v26  ;;  %v9302_v43 = vld [vmem:[%s9088_s14 + $0x78] sm:$0xff]   ;;  %v9316_v52 = vshll.u32 %v9297_v39, 16  ;;  %v9330_v1 = vshrl.u32 %v9297_v39, 16  ;;  %v1013_v28 = vrot.slane %v9091_v6, 1 }
  0x23   : > { %8025 = vmatprep.mubr.msk.bf16.mxu0 %vm558_vm1, %v458_v45  ;;  %8064 = vmatmul.mubr.msk.bf16.gmra.mxu1 %vm558_vm1, %v9125_v20  ;;  %v509_v45 = vor.u32 %v9287_v13, %v505_v26  ;;  %v517_v48 = vor.u32 %v9290_v34, %v513_v40  ;;  %v521_v50 = vrot.slane %v9294_v38, 1  ;;  %v9325_v62 = vshll.u32 %v9302_v43, 16 }
  0x24   : > { %8067 = vmatprep.mubr.msk.bf16.mxu1 %vm558_vm1, %v9155_v36  ;;  %v2001_v6 = vsel %vm613_vm0, %v9222_v60, 0  ;;  %v1691_v60 = vsel %vm613_vm0, %v9160_v37, 0  ;;  %vm5300_vm14 = vcmask 547840   ;;  %vm6510_vm15 = vsmask.f32 1280 }
  0x25   : > { %v514_v63 = vsel %vm414_vm2, %v509_v45, %v513_v40  ;;  %v522_v0 = vsel %vm414_vm2, %v517_v48, %v521_v50  ;;  %v537_v19 = vrot.slane %v9325_v62, 1  ;;  %v525_v23 = vor.u32 %v9313_v51, %v521_v50 }
  0x2a   : > { %8026 = vmatmul.mubr.msk.bf16.gmra.mxu0 %vm558_vm1, %v466_v55  ;;  %v9319_v55 = vld [vmem:[%s9088_s14 + $0x80] sm:$0xff]  }
  0x2b   : > { %8029 = vmatprep.mubr.msk.bf16.mxu0 %vm558_vm1, %v474_v58  ;;  %8068 = vmatmul.mubr.msk.bf16.gmra.mxu1 %vm558_vm1, %v9171_v41  ;;  %v9322_v58 = vld [vmem:[%s9088_s14 + $0x88] sm:$0xff]   ;;  %v9343_v12 = vshll.u32 %v9319_v55, 16  ;;  %v9354_v45 = vshrl.u32 %v9319_v55, 16 }
  0x2c   : > { %8071 = vmatprep.mubr.msk.bf16.mxu1 %vm558_vm1, %v9192_v49  ;;  %v9346_v26 = vshll.u32 %v9322_v58, 16 }
  0x2d   : > { %12121 = vst [vmem:[#allocation2_spill] sm:$0xff] %v9343_v12  ;;  %v545_v48 = vrot.slane %v9343_v12, 1 }
  0x2e   : > { %12122 = vst [vmem:[#allocation3_spill] sm:$0xff] %v9346_v26  ;;  %v553_v50 = vrot.slane %v9346_v26, 1  ;;  %v1018_v26 = vrot.slane %v9112_v15, 1 }
  0x32   : > { %8030 = vmatmul.mubr.msk.bf16.gmra.mxu0 %vm558_vm1, %v482_v4  ;;  %v9333_v4 = vshrl.u32 %v9302_v43, 16 }
  0x33   : > { %8033 = vmatprep.mubr.msk.bf16.mxu0 %vm558_vm1, %v490_v9  ;;  %8072 = vmatmul.mubr.msk.bf16.gmra.mxu1 %vm558_vm1, %v9203_v53  ;;  %v529_v9 = vrot.slane %v9316_v52, 1 }
  0x34   : > { %8075 = vmatprep.mubr.msk.bf16.mxu1 %vm558_vm1, %v9225_v61 }
  0x3a   : > { %8034 = vmatmul.mubr.msk.bf16.gmra.mxu0 %vm558_vm1, %v498_v31  ;;  %v533_v31 = vor.u32 %v9330_v1, %v529_v9 }
  0x3b   : > { %8037 = vmatprep.mubr.msk.bf16.mxu0 %vm558_vm1, %v506_v35  ;;  %8076 = vmatmul.mubr.msk.bf16.gmra.mxu1 %vm558_vm1, %v9240_v2  ;;  %v530_v35 = vsel %vm414_vm2, %v525_v23, %v529_v9  ;;  %v1016_v9 = vrot.slane %v9097_v8, 1  ;;  %v549_v23 = vor.u32 %v9354_v45, %v545_v48 }
  0x3c   : > { %8079 = vmatprep.mubr.msk.bf16.mxu1 %vm558_vm1, %v9263_v21  ;;  %v538_v40 = vsel %vm414_vm2, %v533_v31, %v537_v19 }
  0x42   : > { %8038 = vmatmul.mubr.msk.bf16.gmra.mxu0 %vm558_vm1, %v514_v63  ;;  %v541_v63 = vor.u32 %v9333_v4, %v537_v19  ;;  %v9373_v19 = vshrl.u32 %v9322_v58, 16 }
  0x43   : > { %8041 = vmatprep.mubr.msk.bf16.mxu0 %vm558_vm1, %v522_v0  ;;  %8080 = vmatmul.mubr.msk.bf16.gmra.mxu1 %vm558_vm1, %v9278_v27  ;;  %v1014_v0 = vrot.slane %v9094_v7, 1 }
  0x44   : > { %8083 = vmatprep.mubr.msk.bf16.mxu1 %vm558_vm1, %v9297_v39  ;;  %v546_v31 = vsel %vm414_vm2, %v541_v63, %v545_v48  ;;  %12123 = vst [vmem:[#allocation4_spill] sm:$0xff] %v9373_v19  ;;  %v1020_v48 = vrot.slane %v9118_v17, 1  ;;  %v557_v63 = vor.u32 %v9373_v19, %v553_v50 }
  0x46   : > { %v1021_v12 = vsel %vm1012_vm3, %v1018_v26, %v1020_v48 }
  0x4a   : > { %8042 = vmatmul.mubr.msk.bf16.gmra.mxu0 %vm558_vm1, %v530_v35  ;;  %v554_v35 = vsel %vm414_vm2, %v549_v23, %v553_v50  ;;  %v1015_v23 = vsel %vm1012_vm3, %v1013_v28, %v1014_v0  ;;  %v1024_v28 = vrot.slane %v9155_v36, 1 }
  0x4b   : > { %8045 = vmatprep.mubr.msk.bf16.mxu0 %vm558_vm1, %v538_v40  ;;  %8084 = vmatmul.mubr.msk.bf16.gmra.mxu1 %vm558_vm1, %v9302_v43  ;;  %v1017_v40 = vsel %vm1012_vm3, %v1014_v0, %v1016_v9  ;;  %v9402_v0 = vld [vmem:[%s12096_s1 + $0xc] sm:$0x3] }
  0x4c   : > { %8087 = vmatprep.mubr.msk.bf16.mxu1 %vm558_vm1, %v9319_v55 }
  0x52   : > { %8046 = vmatmul.mubr.msk.bf16.gmra.mxu0 %vm558_vm1, %v546_v31  ;;  %v1019_v31 = vsel %vm1012_vm3, %v1016_v9, %v1018_v26  ;;  %v1026_v9 = vrot.slane %v9171_v41, 1 }
  0x53   : > { %8049 = vmatprep.mubr.msk.bf16.mxu0 %vm558_vm1, %v554_v35  ;;  %8088 = vmatmul.mubr.msk.bf16.gmra.mxu1 %vm558_vm1, %v9322_v58  ;;  %v1022_v35 = vrot.slane %v9125_v20, 1 }
  0x54   : > { %8131 = vmatprep.mubr.msk.bf16.mxu1 %vm558_vm1, %v1017_v40  ;;  %v1027_v37 = vsel %vm1012_vm3, %v1024_v28, %v1026_v9 }
  0x55   : > { %v1023_v50 = vsel %vm1012_vm3, %v1020_v48, %v1022_v35  ;;  %v1025_v26 = vsel %vm1012_vm3, %v1022_v35, %v1024_v28  ;;  %v1028_v48 = vrot.slane %v9192_v49, 1  ;;  %v1034_v35 = vrot.slane %v9240_v2, 1 }
  0x56   : > { %v1036_v28 = vrot.slane %v9263_v21, 1 }
  0x5a   : > { %8050 = vmatmul.mubr.msk.bf16.gmra.mxu0 %vm558_vm1, %v557_v63  ;;  %v1030_v63 = vrot.slane %v9203_v53, 1 }
  0x5b   : > { %8093 = vmatprep.mubr.msk.bf16.mxu0 %vm558_vm1, %v1015_v23  ;;  %8132 = vmatmul.mubr.msk.bf16.vlgmr.msra.gmra.mxu1 %vm558_vm1, %v1019_v31  ;;  %v1032_v23 = vrot.slane %v9225_v61, 1 }
  0x5c   : > { %8135 = vmatprep.mubr.msk.bf16.mxu1 %vm558_vm1, %v1021_v12  ;;  %8206 = vmatpush3.bf16.msra.mxu1 %v2001_v6  ;;  %v1031_v6 = vsel %vm1012_vm3, %v1028_v48, %v1030_v63 }
  0x62   : > { %8094 = vmatmul.mubr.msk.bf16.vlgmr.msra.gmra.mxu0 %vm558_vm1, %v1017_v40  ;;  %v1029_v40 = vsel %vm1012_vm3, %v1026_v9, %v1028_v48  ;;  %v1040_v9 = vrot.slane %v9297_v39, 1 }
  0x63   : > { %8097 = vmatprep.mubr.msk.bf16.mxu0 %vm558_vm1, %v1019_v31  ;;  %8136 = vmatmul.mubr.msk.bf16.gmra.mxu1 %vm558_vm1, %v1023_v50  ;;  %v9422_v31 = vld [vmem:[%s12096_s1 + $0xe] sm:$0x3] }
  0x64   : > { %8139 = vmatprep.mubr.msk.bf16.mxu1 %vm558_vm1, %v1025_v26  ;;  %8168 = vmatpush3.bf16.msra.mxu0 %v1691_v60  ;;  %v1037_v60 = vsel %vm1012_vm3, %v1034_v35, %v1036_v28 }
  0x65   : > { %8667 = vmatprep.subr.msk.bf16.mxu0 %vm613_vm0, %v9402_v0  ;;  %8668 = vmatprep.subr.msk.bf16.mxu1 %vm613_vm0, %v9422_v31 }
  0x6a   : > { %8098 = vmatmul.mubr.msk.bf16.gmra.mxu0 %vm558_vm1, %v1021_v12  ;;  %v1033_v12 = vsel %vm1012_vm3, %v1030_v63, %v1032_v23  ;;  %v1044_v63 = vrot.slane %v9319_v55, 1 }
  0x6b   : > { %8101 = vmatprep.mubr.msk.bf16.mxu0 %vm558_vm1, %v1023_v50  ;;  %8140 = vmatmul.mubr.msk.bf16.gmra.mxu1 %vm558_vm1, %v1027_v37  ;;  %v1035_v50 = vsel %vm1012_vm3, %v1032_v23, %v1034_v35  ;;  %v9453_v35 = vld [vmem:[%s9088_s14 + $0x90] sm:$0xff]  }
  0x6c   : > { %8143 = vmatprep.mubr.msk.bf16.mxu1 %vm558_vm1, %v1029_v40 }
  0x72   : > { %8102 = vmatmul.mubr.msk.bf16.gmra.mxu0 %vm558_vm1, %v1025_v26  ;;  %v1038_v26 = vrot.slane %v9278_v27, 1 }
  0x73   : > { %8105 = vmatprep.mubr.msk.bf16.mxu0 %vm558_vm1, %v1027_v37  ;;  %8144 = vmatmul.mubr.msk.bf16.gmra.mxu1 %vm558_vm1, %v1031_v6 }
  0x74   : > { %8147 = vmatprep.mubr.msk.bf16.mxu1 %vm558_vm1, %v1033_v12  ;;  %v1039_v48 = vsel %vm1012_vm3, %v1036_v28, %v1038_v26  ;;  %v1041_v37 = vsel %vm1012_vm3, %v1038_v26, %v1040_v9  ;;  %v1325_v28 = vrot.slane %v9453_v35, 1 }
  0x7a   : > { %8106 = vmatmul.mubr.msk.bf16.gmra.mxu0 %vm558_vm1, %v1029_v40  ;;  %v1042_v40 = vrot.slane %v9302_v43, 1 }
  0x7b   : > { %8109 = vmatprep.mubr.msk.bf16.mxu0 %vm558_vm1, %v1031_v6  ;;  %8148 = vmatmul.mubr.msk.bf16.gmra.mxu1 %vm558_vm1, %v1035_v50 }
  0x7c   : > { %8151 = vmatprep.mubr.msk.bf16.mxu1 %vm558_vm1, %v1037_v60  ;;  %v1043_v23 = vsel %vm1012_vm3, %v1040_v9, %v1042_v40  ;;  %v1045_v6 = vsel %vm1012_vm3, %v1042_v40, %v1044_v63  ;;  %v1910_v9 = vrot.slane %v9097_v8, 2  ;;  %v1559_v40 = vrot.slane %v9107_v14, 2 }
  0x7d   : > { %v1914_v8 = vrot.slane %v9118_v17, 2  ;;  %v2593_v17 = vsel %vm613_vm0, %v9422_v31, 0  ;;  %v12107_v31 = vshll.u32 %v9453_v35, 16 }
  0x82   : > { %8110 = vmatmul.mubr.msk.bf16.gmra.mxu0 %vm558_vm1, %v1033_v12  ;;  %v1046_v12 = vrot.slane %v9322_v58, 1 }
  0x83   : > { %8113 = vmatprep.mubr.msk.bf16.mxu0 %vm558_vm1, %v1035_v50  ;;  %8152 = vmatmul.mubr.msk.bf16.gmra.mxu1 %vm558_vm1, %v1039_v48 }
  0x84   : > { %8155 = vmatprep.mubr.msk.bf16.mxu1 %vm558_vm1, %v1041_v37  ;;  %v1047_v50 = vsel %vm1012_vm3, %v1044_v63, %v1046_v12  ;;  %v1326_v26 = vsel %vm1012_vm3, %v1046_v12, %v1325_v28 }
  0x8a   : > { %8114 = vmatmul.mubr.msk.bf16.gmra.mxu0 %vm558_vm1, %v1037_v60  ;;  %v1909_v60 = vrot.slane %v9094_v7, 2  ;;  %v1912_v7 = vrot.slane %v9112_v15, 2 }
  0x8b   : > { %8117 = vmatprep.mubr.msk.bf16.mxu0 %vm558_vm1, %v1039_v48  ;;  %8156 = vmatmul.mubr.msk.bf16.gmra.mxu1 %vm558_vm1, %v1043_v23  ;;  %v1558_v48 = vrot.slane %v9115_v16, 1 }
  0x8c   : > { %8159 = vmatprep.mubr.msk.bf16.mxu1 %vm558_vm1, %v1045_v6  ;;  %v1911_v63 = vsel %vm1908_vm4, %v1909_v60, %v1910_v9  ;;  %v12124_v60 = vor.u32 %v9258_v18, %v9271_v24  ;;  %v9490_v15 = vsel %vm1908_vm4, %v1912_v7, %v1914_v8 }
  0x92   : > { %8118 = vmatmul.mubr.msk.bf16.gmra.mxu0 %vm558_vm1, %v1041_v37  ;;  %v1560_v37 = vor.u32 %v1559_v40, %v1558_v48  ;;  %v1567_v48 = vrot.slane %v9134_v25, 2  ;;  %v1918_v40 = vrot.slane %v9155_v36, 2 }
  0x93   : > { %8121 = vmatprep.mubr.msk.bf16.mxu0 %vm558_vm1, %v1043_v23  ;;  %8160 = vmatmul.mubr.msk.bf16.gmra.mxu1 %vm558_vm1, %v1047_v50  ;;  %v1562_v23 = vrot.slane %v9140_v29, 1 }
  0x94   : > { %8163 = vmatprep.mubr.msk.bf16.mxu1 %vm558_vm1, %v1326_v26  ;;  %v1563_v26 = vrot.slane %v9129_v22, 2 }
  0x96   : > { %v1564_v18 = vor.u32 %v1563_v26, %v1562_v23  ;;  %v1571_v23 = vrot.slane %v9148_v33, 2 }
  0x9a   : > { %8122 = vmatmul.mubr.msk.bf16.gmra.mxu0 %vm558_vm1, %v1045_v6  ;;  %v1561_v6 = vsel %vm1554_vm5, %v12124_v60, %v1560_v37  ;;  %v2517_v60 = vrot.slane %v12107_v31, 3 }
  0x9b   : > { %8125 = vmatprep.mubr.msk.bf16.mxu0 %vm558_vm1, %v1047_v50  ;;  %8164 = vmatmul.mubr.msk.bf16.gmra.mxu1 %vm558_vm1, %v1325_v28  ;;  %v9485_v50 = vsel %vm1908_vm4, %v1910_v9, %v1912_v7  ;;  %v1566_v28 = vrot.slane %v9145_v32, 1  ;;  %v1916_v9 = vrot.slane %v9125_v20, 2  ;;  %v1565_v7 = vsel %vm1554_vm5, %v1560_v37, %v1564_v18 }
  0x9c   : > { %8207 = vmatprep.mubr.msk.bf16.mxu1 %vm558_vm1, %v1911_v63  ;;  %v12108_v63 = vshrl.u32 %v9453_v35, 16  ;;  %v2235_v37 = vsel %vm613_vm0, %v9402_v0, 0  ;;  %v1920_v0 = vrot.slane %v9171_v41, 2  ;;  %v1583_v41 = vrot.slane %v9206_v54, 2 }
  0x9d   : > { %v1568_v24 = vor.u32 %v1567_v48, %v1566_v28  ;;  %v9513_v36 = vsel %vm1908_vm4, %v1914_v8, %v1916_v9  ;;  %v1575_v28 = vrot.slane %v9176_v42, 2  ;;  %v9518_v48 = vsel %vm1908_vm4, %v1916_v9, %v1918_v40 }
  0x9e   : > { %v2516_v26 = vrot.slane %v12108_v63, 2  ;;  %v1618_v63 = vrot.slane %v9373_v19, 1 }
  0x9f   : > { %v1569_v20 = vsel %vm1554_vm5, %v1564_v18, %v1568_v24  ;;  %v9528_v18 = vld [vmem:[%s12096_s1 + $0x10] sm:$0x3] }
  0xa2   : > { %8126 = vmatmul.mubr.msk.bf16.gmra.mxu0 %vm558_vm1, %v1046_v12  ;;  %v1570_v12 = vrot.slane %v9180_v44, 1 }
  0xa3   : > { %8169 = vmatprep.mubr.msk.bf16.mxu0 %vm558_vm1, %v1561_v6  ;;  %8208 = vmatmul.mubr.msk.bf16.vlgmr.msra.gmra.mxu1 %vm558_vm1, %v9485_v50  ;;  %v1574_v6 = vrot.slane %v9184_v46, 1 }
  0xa4   : > { %8211 = vmatprep.mubr.msk.bf16.mxu1 %vm558_vm1, %v9490_v15  ;;  %8282 = vmatpush3.bf16.msra.mxu1 %v2593_v17  ;;  %v9522_v17 = vor.u32 %v2517_v60, %v2516_v26  ;;  %v1572_v8 = vor.u32 %v1571_v23, %v1570_v12  ;;  %v1578_v60 = vrot.slane %v9210_v56, 1  ;;  %v1579_v12 = vrot.slane %v9187_v47, 2 }
  0xa5   : > { %v1576_v9 = vor.u32 %v1575_v28, %v1574_v6  ;;  %v1582_v6 = vrot.slane %v9213_v57, 1 }
  0xa6   : > { %12125 = vst [vmem:[#allocation5_spill] sm:$0xff] %v9522_v17  ;;  %v1573_v26 = vsel %vm1554_vm5, %v1568_v24, %v1572_v8  ;;  %v1580_v24 = vor.u32 %v1579_v12, %v1578_v60  ;;  %v1590_v12 = vrot.slane %v9251_v10, 1 }
  0xa7   : > { %v1577_v23 = vsel %vm1554_vm5, %v1572_v8, %v1576_v9  ;;  %v1584_v28 = vor.u32 %v1583_v41, %v1582_v6  ;;  %v1591_v6 = vrot.slane %v9243_v3, 2 }
  0xa8   : > { %v1581_v8 = vsel %vm1554_vm5, %v1576_v9, %v1580_v24  ;;  %v1928_v9 = vrot.slane %v9240_v2, 2 }
  0xaa   : > { %8170 = vmatmul.mubr.msk.bf16.vlgmr.msra.gmra.mxu0 %vm558_vm1, %v1565_v7  ;;  %v1922_v7 = vrot.slane %v9192_v49, 2 }
  0xab   : > { %8173 = vmatprep.mubr.msk.bf16.mxu0 %vm558_vm1, %v1569_v20  ;;  %8212 = vmatmul.mubr.msk.bf16.gmra.mxu1 %vm558_vm1, %v9513_v36  ;;  %v9544_v20 = vsel %vm1908_vm4, %v1918_v40, %v1920_v0  ;;  %v1924_v40 = vrot.slane %v9203_v53, 2 }
  0xac   : > { %8215 = vmatprep.mubr.msk.bf16.mxu1 %vm558_vm1, %v9518_v48  ;;  %8244 = vmatpush3.bf16.msra.mxu0 %v2235_v37  ;;  %v9549_v49 = vsel %vm1908_vm4, %v1920_v0, %v1922_v7  ;;  %v1926_v37 = vrot.slane %v9225_v61, 2  ;;  %v1586_v0 = vrot.slane %v9247_v5, 1  ;;  %v1592_v61 = vor.u32 %v1591_v6, %v1590_v12 }
  0xad   : > { %8669 = vmatprep.subr.msk.bf16.mxu0 %vm613_vm0, %v9528_v18  ;;  %v9564_v60 = vsel %vm1908_vm4, %v1922_v7, %v1924_v40  ;;  %v1930_v7 = vrot.slane %v9263_v21, 2  ;;  %v1599_v12 = vrot.slane %v9283_v30, 2 }
  0xae   : > { %v9569_v41 = vsel %vm1908_vm4, %v1924_v40, %v1926_v37  ;;  %v1594_v40 = vrot.slane %v9287_v13, 1 }
  0xaf   : > { %v9589_v6 = vsel %vm1908_vm4, %v1928_v9, %v1930_v7 }
  0xb0   : > { %12126 = vst [vmem:[#allocation6_spill] sm:$0xff] %v9589_v6 }
  0xb2   : > { %8174 = vmatmul.mubr.msk.bf16.gmra.mxu0 %vm558_vm1, %v1573_v26  ;;  %v1587_v26 = vrot.slane %v9217_v59, 2 }
  0xb3   : > { %8177 = vmatprep.mubr.msk.bf16.mxu0 %vm558_vm1, %v1577_v23  ;;  %8216 = vmatmul.mubr.msk.bf16.gmra.mxu1 %vm558_vm1, %v9544_v20  ;;  %v1585_v23 = vsel %vm1554_vm5, %v1580_v24, %v1584_v28 }
  0xb4   : > { %8219 = vmatprep.mubr.msk.bf16.mxu1 %vm558_vm1, %v9549_v49  ;;  %v1588_v53 = vor.u32 %v1587_v26, %v1586_v0  ;;  %v9584_v0 = vsel %vm1908_vm4, %v1926_v37, %v1928_v9  ;;  %v1598_v26 = vrot.slane %v9290_v34, 1  ;;  %v1934_v37 = vrot.slane %v9297_v39, 2 }
  0xb5   : > { %v1603_v9 = vrot.slane %v9294_v38, 2 }
  0xb6   : > { %v1589_v24 = vsel %vm1554_vm5, %v1584_v28, %v1588_v53  ;;  %v1600_v21 = vor.u32 %v1599_v12, %v1598_v26  ;;  %v1932_v28 = vrot.slane %v9278_v27, 2  ;;  %v1607_v26 = vrot.slane %v9316_v52, 2 }
  0xb8   : > { %v9609_v12 = vsel %vm1908_vm4, %v1932_v28, %v1934_v37 }
  0xb9   : > { %12128 = vst [vmem:[#allocation8_spill] sm:$0xff] %v9609_v12 }
  0xba   : > { %8178 = vmatmul.mubr.msk.bf16.gmra.mxu0 %vm558_vm1, %v1581_v8  ;;  %v1595_v8 = vrot.slane %v9254_v11, 2 }
  0xbb   : > { %8181 = vmatprep.mubr.msk.bf16.mxu0 %vm558_vm1, %v1585_v23  ;;  %8220 = vmatmul.mubr.msk.bf16.gmra.mxu1 %vm558_vm1, %v9564_v60  ;;  %v1593_v23 = vsel %vm1554_vm5, %v1588_v53, %v1592_v61  ;;  %v1602_v53 = vrot.slane %v9313_v51, 1 }
  0xbc   : > { %8223 = vmatprep.mubr.msk.bf16.mxu1 %vm558_vm1, %v9569_v41  ;;  %v1596_v2 = vor.u32 %v1595_v8, %v1594_v40  ;;  %v9604_v40 = vsel %vm1908_vm4, %v1930_v7, %v1932_v28  ;;  %v1606_v8 = vrot.slane %v9330_v1, 1  ;;  %v1938_v7 = vrot.slane %v9319_v55, 2 }
  0xbd   : > { %12127 = vst [vmem:[#allocation7_spill] sm:$0xff] %v9604_v40  ;;  %v1604_v27 = vor.u32 %v1603_v9, %v1602_v53  ;;  %v1610_v28 = vrot.slane %v9333_v4, 1  ;;  %v1614_v53 = vrot.slane %v9354_v45, 1  ;;  %v12129_v9 = vld [vmem:[#allocation2_spill] sm:$0xff] }
  0xbe   : > { %v1608_v39 = vor.u32 %v1607_v26, %v1606_v8 }
  0xc0   : > { %v1609_v31 = vsel %vm1554_vm5, %v1604_v27, %v1608_v39 }
  0xc2   : > { %8182 = vmatmul.mubr.msk.bf16.gmra.mxu0 %vm558_vm1, %v1589_v24  ;;  %v1597_v24 = vsel %vm1554_vm5, %v1592_v61, %v1596_v2  ;;  %v1936_v61 = vrot.slane %v9302_v43, 2 }
  0xc3   : > { %8185 = vmatprep.mubr.msk.bf16.mxu0 %vm558_vm1, %v1593_v23  ;;  %8224 = vmatmul.mubr.msk.bf16.gmra.mxu1 %vm558_vm1, %v9584_v0  ;;  %v1601_v23 = vsel %vm1554_vm5, %v1596_v2, %v1600_v21  ;;  %v1605_v2 = vsel %vm1554_vm5, %v1600_v21, %v1604_v27  ;;  %v9639_v27 = vrot.slane %v9453_v35, 2 }
  0xc4   : > { %8227 = vmatprep.mubr.msk.bf16.mxu1 %vm558_vm1, %v9589_v6  ;;  %v9626_v8 = vsel %vm1908_vm4, %v1934_v37, %v1936_v61  ;;  %v9629_v26 = vsel %vm1908_vm4, %v1936_v61, %v1938_v7  ;;  %v1940_v37 = vrot.slane %v9322_v58, 2  ;;  %v12134_v58 = vshrl.u32 %v9453_v35, 16 }
  0xc5   : > { %12130 = vst [vmem:[#allocation9_spill] sm:$0xff] %v9626_v8  ;;  %12131 = vst [vmem:[#allocation10_spill] sm:$0xff] %v9629_v26 }
  0xca   : > { %8186 = vmatmul.mubr.msk.bf16.gmra.mxu0 %vm558_vm1, %v1597_v24  ;;  %v1611_v24 = vrot.slane %v9325_v62, 2 }
  0xcb   : > { %8189 = vmatprep.mubr.msk.bf16.mxu0 %vm558_vm1, %v1601_v23  ;;  %8228 = vmatmul.mubr.msk.bf16.gmra.mxu1 %vm558_vm1, %v9604_v40  ;;  %v1615_v23 = vrot.slane %v12129_v9, 2  ;;  %v9657_v40 = vsel %vm1908_vm4, %v1940_v37, %v9639_v27 }
  0xcc   : > { %8231 = vmatprep.mubr.msk.bf16.mxu1 %vm558_vm1, %v9609_v12  ;;  %v1612_v55 = vor.u32 %v1611_v24, %v1610_v28  ;;  %12136 = vst [vmem:[#allocation12_spill] sm:$0xff] %v9657_v40 }
  0xcd   : > { %v1616_v21 = vor.u32 %v1615_v23, %v1614_v53  ;;  %v9649_v53 = vsel %vm1908_vm4, %v1938_v7, %v1940_v37  ;;  %v1625_v23 = vrot.slane %v12134_v58, 1  ;;  %v2457_v7 = vrot.slane %v9129_v22, 3 }
  0xce   : > { %12133 = vst [vmem:[#allocation11_spill] sm:$0xff] %v9649_v53 }
  0xcf   : > { %v1617_v24 = vsel %vm1554_vm5, %v1612_v55, %v1616_v21 }
  0xd2   : > { %8190 = vmatmul.mubr.msk.bf16.gmra.mxu0 %vm558_vm1, %v1605_v2  ;;  %v12132_v2 = vld [vmem:[#allocation3_spill] sm:$0xff] }
  0xd3   : > { %8193 = vmatprep.mubr.msk.bf16.mxu0 %vm558_vm1, %v1609_v31  ;;  %v8057_v43 = vpop.f32.mrf.mxu1  ;;  %8232 = vmatmul.mubr.msk.bf16.gmra.mxu1 %vm558_vm1, %v9626_v8  ;;  %v1619_v17 = vrot.slane %v12132_v2, 2  ;;  %v1613_v31 = vsel %vm1554_vm5, %v1608_v39, %v1612_v55  ;;  %v9646_v8 = vld [vmem:[%s9088_s14 + $0x98] sm:$0xf]  ;;  %v2453_v39 = vrot.slane %v9115_v16, 2  ;;  %v2454_v55 = vrot.slane %v9107_v14, 3 }
  0xd4   : > { %8235 = vmatprep.mubr.msk.bf16.mxu1 %vm558_vm1, %v9629_v26  ;;  %v12135_v26 = vshll.u32 %v9453_v35, 16  ;;  %v2456_v2 = vrot.slane %v9140_v29, 2  ;;  %v7135_v35 = vcombine.low %v9646_v8, %v9646_v8 }
  0xd5   : > { %v867_v61 = vpop.f32.mrf.mxu1  ;;  %v1620_v58 = vor.u32 %v1619_v17, %v1618_v63  ;;  %v2455_v17 = vor.u32 %v2454_v55, %v2453_v39 }
  0xd6   : > { %v1628_v12 = vrot.slane %v12135_v26, 2  ;;  %v1944_v22 = vrot.slane %v7135_v35, 2 }
  0xd7   : > { %v8058_v28 = vpop.f32.mrf.mxu1 }
  0xd8   : > { %v1629_v16 = vor.u32 %v1628_v12, %v1625_v23  ;;  %v2461_v12 = vrot.slane %v9134_v25, 3 }
  0xd9   : > { %v870_v6 = vpop.f32.mrf.mxu1 }
  0xda   : > { %v8019_v19 = vpop.f32.mrf.mxu0  ;;  %8194 = vmatmul.mubr.msk.bf16.gmra.mxu0 %vm558_vm1, %v1613_v31  ;;  %v2458_v31 = vor.u32 %v2457_v7, %v2456_v2 }
  0xdb   : > { %v9666_v26 = vadd.f32 %v8057_v43, %v8019_v19  ;;  %8197 = vmatprep.mubr.msk.bf16.mxu0 %vm558_vm1, %v1617_v24  ;;  %v8061_v37 = vpop.f32.mrf.mxu1  ;;  %8236 = vmatmul.mubr.msk.bf16.gmra.mxu1 %vm558_vm1, %v9649_v53  ;;  %v1621_v19 = vsel %vm1554_vm5, %v1616_v21, %v1620_v58  ;;  %v2460_v53 = vrot.slane %v9145_v32, 2 }
  0xdc   : > { %v651_v14 = vpop.f32.mrf.mxu0  ;;  %8239 = vmatprep.mubr.msk.bf16.mxu1 %vm558_vm1, %v9657_v40  ;;  %v1630_v40 = vsel %vm1554_vm5, %v1620_v58, %v1629_v16  ;;  %v2459_v21 = vsel %vm2452_vm6, %v2455_v17, %v2458_v31 }
  0xdd   : > { %12137 = vst [vmem:[#allocation13_spill] sm:$0xff] %v9666_v26  ;;  %v9673_v29 = vadd.f32 %v867_v61, %v651_v14  ;;  %v883_v63 = vpop.f32.mrf.mxu1  ;;  %v1632_v26 = vshll.u32 %v7135_v35, 16  ;;  %v1945_v61 = vsel %vm1908_vm4, %v9639_v27, %v1944_v22 }
  0xde   : > { %v8020_v9 = vpop.f32.mrf.mxu0 }
  0xdf   : > { %v9676_v43 = vadd.f32 %v8058_v28, %v8020_v9  ;;  %v8062_v24 = vpop.f32.mrf.mxu1  ;;  %v2464_v9 = vrot.slane %v9180_v44, 2  ;;  %v2465_v28 = vrot.slane %v9148_v33, 3  ;;  %v1634_v7 = vrot.slane %v1632_v26, 2 }
  0xe0   : > { %v654_v23 = vpop.f32.mrf.mxu0  ;;  %v2468_v26 = vrot.slane %v9184_v46, 2 }
  0xe1   : > { %v9683_v39 = vadd.f32 %v870_v6, %v654_v23  ;;  %v886_v2 = vpop.f32.mrf.mxu1  ;;  %v2462_v6 = vor.u32 %v2461_v12, %v2460_v53  ;;  %v2466_v14 = vor.u32 %v2465_v28, %v2464_v9  ;;  %v2469_v53 = vrot.slane %v9176_v42, 3 }
  0xe2   : > { %v8023_v55 = vpop.f32.mrf.mxu0  ;;  %8198 = vmatmul.mubr.msk.bf16.gmra.mxu0 %vm558_vm1, %v1621_v19  ;;  %v2472_v12 = vrot.slane %v9210_v56, 2 }
  0xe3   : > { %v9689_v32 = vadd.f32 %v8061_v37, %v8023_v55  ;;  %8201 = vmatprep.mubr.msk.bf16.mxu0 %vm558_vm1, %v1630_v40  ;;  %v8065_v25 = vpop.f32.mrf.mxu1  ;;  %8240 = vmatmul.mubr.msk.bf16.gmra.mxu1 %vm558_vm1, %v1945_v61  ;;  %v1635_v37 = vsel %vm1554_vm5, %v1629_v16, %v1634_v7  ;;  %v2463_v40 = vsel %vm2452_vm6, %v2458_v31, %v2462_v6 }
  0xe4   : > { %v667_v58 = vpop.f32.mrf.mxu0  ;;  %8283 = vmatprep.mubr.msk.bf16.mxu1 %vm558_vm1, %v2459_v21 }
  0xe5   : > { %v9694_v35 = vadd.f32 %v883_v63, %v667_v58  ;;  %v899_v44 = vpop.f32.mrf.mxu1  ;;  %v2473_v63 = vrot.slane %v9187_v47, 3  ;;  %v2470_v47 = vor.u32 %v2469_v53, %v2468_v26  ;;  %v2477_v58 = vrot.slane %v9206_v54, 3 }
  0xe6   : > { %v8024_v33 = vpop.f32.mrf.mxu0 }
  0xe7   : > { %v9696_v22 = vadd.f32 %v8062_v24, %v8024_v33  ;;  %v8066_v17 = vpop.f32.mrf.mxu1  ;;  %v2467_v24 = vsel %vm2452_vm6, %v2462_v6, %v2466_v14  ;;  %v2474_v56 = vor.u32 %v2473_v63, %v2472_v12  ;;  %v2471_v7 = vsel %vm2452_vm6, %v2466_v14, %v2470_v47 }
  0xe8   : > { %v670_v19 = vpop.f32.mrf.mxu0  ;;  %v2476_v6 = vrot.slane %v9213_v57, 2 }
  0xe9   : > { %v9704_v23 = vadd.f32 %v886_v2, %v670_v19  ;;  %v902_v61 = vpop.f32.mrf.mxu1 }
  0xea   : > { %v8027_v21 = vpop.f32.mrf.mxu0  ;;  %8202 = vmatmul.mubr.msk.bf16.gmra.mxu0 %vm558_vm1, %v1635_v37 }
  0xeb   : > { %v9708_v16 = vadd.f32 %v8065_v25, %v8027_v21  ;;  %8245 = vmatprep.mubr.msk.bf16.mxu0 %vm558_vm1, %v9485_v50  ;;  %v8069_v46 = vpop.f32.mrf.mxu1  ;;  %8284 = vmatmul.mubr.msk.bf16.vlgmr.msra.gmra.mxu1 %vm558_vm1, %v2463_v40  ;;  %v2475_v50 = vsel %vm2452_vm6, %v2470_v47, %v2474_v56  ;;  %v2481_v40 = vrot.slane %v9217_v59, 3  ;;  %v2488_v47 = vrot.slane %v9287_v13, 2 }
  0xec   : > { %v683_v42 = vpop.f32.mrf.mxu0  ;;  %8287 = vmatprep.mubr.msk.bf16.mxu1 %vm558_vm1, %v2467_v24  ;;  %v2485_v24 = vrot.slane %v9243_v3, 3 }
  0xed   : > { %v9714_v31 = vadd.f32 %v899_v44, %v683_v42  ;;  %v915_v2 = vpop.f32.mrf.mxu1  ;;  %v2480_v44 = vrot.slane %v9247_v5, 2  ;;  %v2478_v5 = vor.u32 %v2477_v58, %v2476_v6 }
  0xee   : > { %v8028_v9 = vpop.f32.mrf.mxu0 }
  0xef   : > { %v9716_v28 = vadd.f32 %v8066_v17, %v8028_v9  ;;  %v8070_v55 = vpop.f32.mrf.mxu1  ;;  %v2903_v17 = vsel %vm613_vm0, %v9528_v18, 0  ;;  %v2482_v26 = vor.u32 %v2481_v40, %v2480_v44 }
  0xf0   : > { %v686_v25 = vpop.f32.mrf.mxu0 }
  0xf1   : > { %v9722_v33 = vadd.f32 %v902_v61, %v686_v25  ;;  %v918_v37 = vpop.f32.mrf.mxu1  ;;  %v2479_v61 = vsel %vm2452_vm6, %v2474_v56, %v2478_v5  ;;  %v2483_v42 = vsel %vm2452_vm6, %v2478_v5, %v2482_v26 }
  0xf2   : > { %v8031_v19 = vpop.f32.mrf.mxu0  ;;  %8246 = vmatmul.mubr.msk.bf16.vlgmr.msra.gmra.mxu0 %vm558_vm1, %v9490_v15 }
  0xf3   : > { %v9730_v14 = vadd.f32 %v8069_v46, %v8031_v19  ;;  %8249 = vmatprep.mubr.msk.bf16.mxu0 %vm558_vm1, %v9513_v36  ;;  %v8073_v54 = vpop.f32.mrf.mxu1  ;;  %8288 = vmatmul.mubr.msk.bf16.gmra.mxu1 %vm558_vm1, %v2471_v7  ;;  %v2484_v36 = vrot.slane %v9251_v10, 2  ;;  %v2496_v19 = vrot.slane %v9313_v51, 2 }
  0xf4   : > { %v699_v57 = vpop.f32.mrf.mxu0  ;;  %8291 = vmatprep.mubr.msk.bf16.mxu1 %vm558_vm1, %v2475_v50  ;;  %8320 = vmatpush3.bf16.msra.mxu0 %v2903_v17 }
  0xf5   : > { %v9736_v59 = vadd.f32 %v915_v2, %v699_v57  ;;  %v931_v18 = vpop.f32.mrf.mxu1  ;;  %v2489_v2 = vrot.slane %v9254_v11, 3  ;;  %v2486_v56 = vor.u32 %v2485_v24, %v2484_v36  ;;  %v2501_v36 = vrot.slane %v9316_v52, 3 }
  0xf6   : > { %v8032_v53 = vpop.f32.mrf.mxu0 }
  0xf7   : > { %v9738_v12 = vadd.f32 %v8070_v55, %v8032_v53  ;;  %v8074_v15 = vpop.f32.mrf.mxu1  ;;  %v2490_v11 = vor.u32 %v2489_v2, %v2488_v47  ;;  %v2487_v58 = vsel %vm2452_vm6, %v2482_v26, %v2486_v56  ;;  %v2504_v47 = vrot.slane %v9333_v4, 2 }
  0xf8   : > { %v702_v63 = vpop.f32.mrf.mxu0  ;;  %v2505_v2 = vrot.slane %v9325_v62, 3 }
  0xf9   : > { %v9743_v21 = vadd.f32 %v918_v37, %v702_v63  ;;  %v934_v46 = vpop.f32.mrf.mxu1  ;;  %v2493_v37 = vrot.slane %v9283_v30, 3  ;;  %v2491_v17 = vsel %vm2452_vm6, %v2486_v56, %v2490_v11  ;;  %v319_v56 = vld [vmem:[%s9088_s14 + $0x9c] sm:$0xf] }
  0xfa   : > { %v8035_v9 = vpop.f32.mrf.mxu0  ;;  %8250 = vmatmul.mubr.msk.bf16.gmra.mxu0 %vm558_vm1, %v9518_v48 }
  0xfb   : > { %v9750_v55 = vadd.f32 %v8073_v54, %v8035_v9  ;;  %8253 = vmatprep.mubr.msk.bf16.mxu0 %vm558_vm1, %v9544_v20  ;;  %v8077_v10 = vpop.f32.mrf.mxu1  ;;  %8292 = vmatmul.mubr.msk.bf16.gmra.mxu1 %vm558_vm1, %v2479_v61  ;;  %v2492_v20 = vrot.slane %v9290_v34, 2  ;;  %v2497_v54 = vrot.slane %v9294_v38, 3 }
  0xfc   : > { %v715_v3 = vpop.f32.mrf.mxu0  ;;  %8295 = vmatprep.mubr.msk.bf16.mxu1 %vm558_vm1, %v2483_v42 }
  0xfd   : > { %v9756_v25 = vadd.f32 %v931_v18, %v715_v3  ;;  %v947_v13 = vpop.f32.mrf.mxu1  ;;  %v2494_v18 = vor.u32 %v2493_v37, %v2492_v20  ;;  %v2498_v38 = vor.u32 %v2497_v54, %v2496_v19  ;;  %v12138_v20 = vld [vmem:[#allocation2_spill] sm:$0xff]  ;;  %v12139_v54 = vld [vmem:[#allocation4_spill] sm:$0xff] }
  0xfe   : > { %v8036_v7 = vpop.f32.mrf.mxu0  ;;  %v2509_v37 = vrot.slane %v12138_v20, 3  ;;  %v12144_v20 = vld [vmem:[#allocation9_spill] sm:$0xff] }
  0xff   : > { %v9758_v50 = vadd.f32 %v8074_v15, %v8036_v7  ;;  %v8078_v48 = vpop.f32.mrf.mxu1  ;;  %v2495_v61 = vsel %vm2452_vm6, %v2490_v11, %v2494_v18  ;;  %v2499_v42 = vsel %vm2452_vm6, %v2494_v18, %v2498_v38 }
 0x100   : > { %v718_v6 = vpop.f32.mrf.mxu0 }
 0x101   : > { %v9763_v44 = vadd.f32 %v934_v46, %v718_v6  ;;  %v950_v40 = vpop.f32.mrf.mxu1 }
 0x102   : > { %v8039_v57 = vpop.f32.mrf.mxu0  ;;  %8254 = vmatmul.mubr.msk.bf16.gmra.mxu0 %vm558_vm1, %v9549_v49 }
 0x103   : > { %v9770_v5 = vadd.f32 %v8077_v10, %v8039_v57  ;;  %8257 = vmatprep.mubr.msk.bf16.mxu0 %vm558_vm1, %v9564_v60  ;;  %v8081_v34 = vpop.f32.mrf.mxu1  ;;  %8296 = vmatmul.mubr.msk.bf16.gmra.mxu1 %vm558_vm1, %v2487_v58  ;;  %v2500_v60 = vrot.slane %v9330_v1, 2  ;;  %v2508_v58 = vrot.slane %v9354_v45, 2  ;;  %v2512_v57 = vrot.slane %v12139_v54, 2 }
 0x104   : > { %v731_v30 = vpop.f32.mrf.mxu0  ;;  %8299 = vmatprep.mubr.msk.bf16.mxu1 %vm558_vm1, %v2491_v17 }
 0x105   : > { %v9776_v26 = vadd.f32 %v947_v13, %v731_v30  ;;  %v963_v51 = vpop.f32.mrf.mxu1  ;;  %v2502_v3 = vor.u32 %v2501_v36, %v2500_v60  ;;  %v2506_v13 = vor.u32 %v2505_v2, %v2504_v47 }
 0x106   : > { %v8040_v53 = vpop.f32.mrf.mxu0 }
 0x107   : > { %v9778_v15 = vadd.f32 %v8078_v48, %v8040_v53  ;;  %v8082_v49 = vpop.f32.mrf.mxu1  ;;  %v9802_v48 = vcombine.low %v9646_v8, %v319_v56  ;;  %v2503_v6 = vsel %vm2452_vm6, %v2498_v38, %v2502_v3  ;;  %v2507_v19 = vsel %vm2452_vm6, %v2502_v3, %v2506_v13  ;;  %v12142_v38 = vld [vmem:[#allocation7_spill] sm:$0xff] }
 0x108   : > { %v734_v63 = vpop.f32.mrf.mxu0 }
 0x109   : > { %v9783_v24 = vadd.f32 %v950_v40, %v734_v63  ;;  %v966_v46 = vpop.f32.mrf.mxu1  ;;  %v2521_v36 = vshrl.u32 %v9802_v48, 16 }
 0x10a   : > { %v8043_v9 = vpop.f32.mrf.mxu0  ;;  %8258 = vmatmul.mubr.msk.bf16.gmra.mxu0 %vm558_vm1, %v9569_v41 }
 0x10b   : > { %v9790_v10 = vadd.f32 %v8081_v34, %v8043_v9  ;;  %8261 = vmatprep.mubr.msk.bf16.mxu0 %vm558_vm1, %v9584_v0  ;;  %v8085_v1 = vpop.f32.mrf.mxu1  ;;  %8300 = vmatmul.mubr.msk.bf16.gmra.mxu1 %vm558_vm1, %v2495_v61  ;;  %v12140_v34 = vld [vmem:[#allocation3_spill] sm:$0xff] }
 0x10c   : > { %v747_v52 = vpop.f32.mrf.mxu0  ;;  %8303 = vmatprep.mubr.msk.bf16.mxu1 %vm558_vm1, %v2499_v42  ;;  %v2513_v30 = vrot.slane %v12140_v34, 3 }
 0x10d   : > { %v9797_v4 = vadd.f32 %v963_v51, %v747_v52  ;;  %v979_v62 = vpop.f32.mrf.mxu1  ;;  %v12141_v51 = vld [vmem:[#allocation6_spill] sm:$0xff] }
 0x10e   : > { %v8044_v11 = vpop.f32.mrf.mxu0  ;;  %v2514_v60 = vor.u32 %v2513_v30, %v2512_v57  ;;  %v9828_v52 = vld [vmem:[%s9088_s14 + $0xa0] ss:$0 sps:$4 sm:$0x33]  }
 0x10f   : > { %v9799_v7 = vadd.f32 %v8082_v49, %v8044_v11  ;;  %v8086_v41 = vpop.f32.mrf.mxu1  ;;  %v2510_v49 = vor.u32 %v2509_v37, %v2508_v58  ;;  %v2523_v11 = vrot.slane %v2521_v36, 2  ;;  %v12143_v58 = vld [vmem:[#allocation8_spill] sm:$0xff] }
 0x110   : > { %v750_v0 = vpop.f32.mrf.mxu0 }
 0x111   : > { %v9807_v40 = vadd.f32 %v966_v46, %v750_v0  ;;  %v982_v17 = vpop.f32.mrf.mxu1  ;;  %v2524_v46 = vshll.u32 %v9802_v48, 16 }
 0x112   : > { %v8047_v18 = vpop.f32.mrf.mxu0  ;;  %8262 = vmatmul.mubr.msk.bf16.gmra.mxu0 %vm558_vm1, %v12141_v51 }
 0x113   : > { %v9814_v8 = vadd.f32 %v8085_v1, %v8047_v18  ;;  %8265 = vmatprep.mubr.msk.bf16.mxu0 %vm558_vm1, %v12142_v38  ;;  %v8089_v45 = vpop.f32.mrf.mxu1  ;;  %8304 = vmatmul.mubr.msk.bf16.gmra.mxu1 %vm558_vm1, %v2503_v6  ;;  %v2511_v1 = vsel %vm2452_vm6, %v2506_v13, %v2510_v49  ;;  %v2526_v0 = vrot.slane %v2524_v46, 3 }
 0x114   : > { %v763_v53 = vpop.f32.mrf.mxu0  ;;  %8307 = vmatprep.mubr.msk.bf16.mxu1 %vm558_vm1, %v2507_v19  ;;  %v2533_v19 = vshll.u32 %v9828_v52, 16 }
 0x115   : > { %v9820_v63 = vadd.f32 %v979_v62, %v763_v53  ;;  %v995_v61 = vpop.f32.mrf.mxu1  ;;  %v2515_v62 = vsel %vm2452_vm6, %v2510_v49, %v2514_v60  ;;  %v2527_v34 = vor.u32 %v2526_v0, %v2523_v11  ;;  %v2224_v0 = vrot.slane %v9802_v48, 2 }
 0x116   : > { %v8048_v42 = vpop.f32.mrf.mxu0  ;;  %v2535_v36 = vrot.slane %v2533_v19, 3 }
 0x117   : > { %v9824_v47 = vadd.f32 %v8086_v41, %v8048_v42  ;;  %v8090_v2 = vpop.f32.mrf.mxu1 }
 0x118   : > { %v766_v9 = vpop.f32.mrf.mxu0 }
 0x119   : > { %v9830_v3 = vadd.f32 %v982_v17, %v766_v9  ;;  %v9832_v56 = vpop.f32.mrf.mxu1  ;;  %v2530_v17 = vshrl.u32 %v9828_v52, 16  ;;  %v12146_v9 = vld [vmem:[#allocation10_spill] sm:$0xff] }
 0x11a   : > { %v8051_v6 = vpop.f32.mrf.mxu0  ;;  %8266 = vmatmul.mubr.msk.bf16.gmra.mxu0 %vm558_vm1, %v12143_v58 }
 0x11b   : > { %v9837_v41 = vadd.f32 %v8089_v45, %v8051_v6  ;;  %8269 = vmatprep.mubr.msk.bf16.mxu0 %vm558_vm1, %v12144_v20  ;;  %v8133_v13 = vpop.f32.mrf.mxu1  ;;  %8308 = vmatmul.mubr.msk.bf16.gmra.mxu1 %vm558_vm1, %v2511_v1  ;;  %v12145_v45 = vld [vmem:[#allocation5_spill] sm:$0xff]  ;;  %v2532_v49 = vrot.slane %v2530_v17, 2 }
 0x11c   : > { %v779_v37 = vpop.f32.mrf.mxu0  ;;  %8311 = vmatprep.mubr.msk.bf16.mxu1 %vm558_vm1, %v2515_v62  ;;  %v2519_v53 = vsel %vm2452_vm6, %v2514_v60, %v12145_v45  ;;  %v2528_v42 = vsel %vm2452_vm6, %v12145_v45, %v2527_v34  ;;  %v12147_v1 = vld [vmem:[#allocation13_spill] sm:$0xff]  ;;  %v12148_v62 = vld [vmem:[#allocation11_spill] sm:$0xff] }
 0x11d   : > { %v9845_v54 = vadd.f32 %v995_v61, %v779_v37  ;;  %v1370_v57 = vpop.f32.mrf.mxu1  ;;  %v2536_v6 = vor.u32 %v2535_v36, %v2532_v49 }
 0x11e   : > { %v8052_v30 = vpop.f32.mrf.mxu0 }
 0x11f   : > { %v9847_v18 = vadd.f32 %v8090_v2, %v8052_v30  ;;  %v8134_v51 = vpop.f32.mrf.mxu1 }
 0x120   : > { %v9849_v38 = vpop.f32.mrf.mxu0 }
 0x121   : > { %v9853_v46 = vpop.f32.mrf.mxu1 }
 0x122   : > { %v8095_v61 = vpop.f32.mrf.mxu0  ;;  %8270 = vmatmul.mubr.msk.bf16.gmra.mxu0 %vm558_vm1, %v12146_v9  ;;  %v2226_v9 = vrot.slane %v9828_v52, 2 }
 0x123   : > { %v1284_v2 = vadd.f32 %v8095_v61, %v12147_v1  ;;  %8273 = vmatprep.mubr.msk.bf16.mxu0 %vm558_vm1, %v12148_v62  ;;  %v8137_v11 = vpop.f32.mrf.mxu1  ;;  %8312 = vmatmul.mubr.msk.bf16.gmra.mxu1 %vm558_vm1, %v2519_v53  ;;  %v2225_v53 = vsel %vm1908_vm4, %v9639_v27, %v2224_v0 }
 0x124   : > { %v1139_v60 = vpop.f32.mrf.mxu0  ;;  %8315 = vmatprep.mubr.msk.bf16.mxu1 %vm558_vm1, %v2528_v42  ;;  %v2537_v42 = vsel %vm2452_vm6, %v2527_v34, %v2536_v6 }
 0x125   : > { %v1282_v58 = vadd.f32 %v1139_v60, %v9673_v29  ;;  %v9866_v20 = vadd.f32 %v8133_v13, %v1284_v2  ;;  %v1386_v37 = vpop.f32.mrf.mxu1 }
 0x126   : > { %v8096_v17 = vpop.f32.mrf.mxu0 }
 0x127   : > { %v1285_v19 = vadd.f32 %v8096_v17, %v9676_v43  ;;  %v9869_v30 = vadd.f32 %v1370_v57, %v1282_v58  ;;  %v8138_v45 = vpop.f32.mrf.mxu1  ;;  %v12149_v43 = vld [vmem:[#allocation12_spill] sm:$0xff] }
 0x128   : > { %v1142_v61 = vpop.f32.mrf.mxu0 }
 0x129   : > { %v9875_v49 = vadd.f32 %v1142_v61, %v9683_v39  ;;  %v9877_v29 = vadd.f32 %v8134_v51, %v1285_v19  ;;  %v9879_v13 = vpop.f32.mrf.mxu1  ;;  %v8987_v39 = vld [vmem:[%s9088_s14 + $0x10] sm:$0xff]   ;;  %v8988_v51 = vld [vmem:[%s9088_s14 + $0x18] sm:$0xff]   ;;  %v2227_v19 = vsel %vm1908_vm4, %v2224_v0, %v2226_v9 }
 0x12a   : > { %v8099_v36 = vpop.f32.mrf.mxu0  ;;  %8274 = vmatmul.mubr.msk.bf16.gmra.mxu0 %vm558_vm1, %v12149_v43  ;;  %v2811_v1 = vrot.slane %v8987_v39, 3  ;;  %v2812_v2 = vrot.slane %v8988_v51, 3 }
 0x12b   : > { %v1288_v57 = vadd.f32 %v8099_v36, %v9689_v32  ;;  %8277 = vmatprep.mubr.msk.bf16.mxu0 %vm558_vm1, %v2225_v53  ;;  %v8141_v27 = vpop.f32.mrf.mxu1  ;;  %8316 = vmatmul.mubr.msk.bf16.gmra.mxu1 %vm558_vm1, %v2537_v42 }
 0x12c   : > { %v1155_v34 = vpop.f32.mrf.mxu0  ;;  %v2813_v42 = vsel %vm2810_vm7, %v2811_v1, %v2812_v2 }
 0x12d   : > { %v1286_v62 = vadd.f32 %v1155_v34, %v9694_v35  ;;  %v9890_v60 = vadd.f32 %v8137_v11, %v1288_v57  ;;  %v1402_v6 = vpop.f32.mrf.mxu1  ;;  %v8990_v34 = vld [vmem:[%s9088_s14 + $0x28] sm:$0xff]  }
 0x12e   : > { %v8100_v32 = vpop.f32.mrf.mxu0  ;;  %v2816_v39 = vrot.slane %v8990_v34, 3 }
 0x12f   : > { %v1289_v58 = vadd.f32 %v8100_v32, %v9696_v22  ;;  %v9893_v17 = vadd.f32 %v1386_v37, %v1286_v62  ;;  %v8142_v61 = vpop.f32.mrf.mxu1  ;;  %v8989_v37 = vld [vmem:[%s9088_s14 + $0x20] sm:$0xff]  }
 0x130   : > { %v1158_v53 = vpop.f32.mrf.mxu0  ;;  %v2814_v0 = vrot.slane %v8989_v37, 3 }
 0x131   : > { %v9898_v36 = vadd.f32 %v1158_v53, %v9704_v23  ;;  %v9900_v35 = vadd.f32 %v8138_v45, %v1289_v58  ;;  %v9902_v11 = vpop.f32.mrf.mxu1 }
 0x132   : > { %v8103_v43 = vpop.f32.mrf.mxu0  ;;  %8278 = vmatmul.mubr.msk.bf16.gmra.mxu0 %vm558_vm1, %v2227_v19  ;;  %v2817_v53 = vsel %vm2810_vm7, %v2814_v0, %v2816_v39 }
 0x133   : > { %v1292_v22 = vadd.f32 %v8103_v43, %v9708_v16  ;;  %8321 = vmatprep.mubr.msk.bf16.mxu0 %vm558_vm1, %v2813_v42  ;;  %v8145_v57 = vpop.f32.mrf.mxu1  ;;  %v2815_v16 = vsel %vm2810_vm7, %v2812_v2, %v2814_v0 }
 0x134   : > { %v1171_v9 = vpop.f32.mrf.mxu0 }
 0x135   : > { %v1290_v23 = vadd.f32 %v1171_v9, %v9714_v31  ;;  %v9910_v1 = vadd.f32 %v8141_v27, %v1292_v22  ;;  %v1418_v45 = vpop.f32.mrf.mxu1  ;;  %v8992_v9 = vld [vmem:[%s9088_s14 + $0x38] sm:$0xff]  }
 0x136   : > { %v8104_v51 = vpop.f32.mrf.mxu0  ;;  %v2820_v0 = vrot.slane %v8992_v9, 3  ;;  %v8994_v9 = vld [vmem:[%s9088_s14 + $0x48] sm:$0xff]  }
 0x137   : > { %v1293_v62 = vadd.f32 %v8104_v51, %v9716_v28  ;;  %v9913_v32 = vadd.f32 %v1402_v6, %v1290_v23  ;;  %v8146_v58 = vpop.f32.mrf.mxu1  ;;  %v8991_v6 = vld [vmem:[%s9088_s14 + $0x30] sm:$0xff]  }
 0x138   : > { %v1174_v19 = vpop.f32.mrf.mxu0  ;;  %v2818_v2 = vrot.slane %v8991_v6, 3 }
 0x139   : > { %v9918_v42 = vadd.f32 %v1174_v19, %v9722_v33  ;;  %v9920_v31 = vadd.f32 %v8142_v61, %v1293_v62  ;;  %v9922_v27 = vpop.f32.mrf.mxu1 }
 0x13a   : > { %v8107_v43 = vpop.f32.mrf.mxu0  ;;  %8322 = vmatmul.mubr.msk.bf16.vlgmr.msra.gmra.mxu0 %vm558_vm1, %v2815_v16 }
 0x13b   : > { %v1296_v28 = vadd.f32 %v8107_v43, %v9730_v14  ;;  %8325 = vmatprep.mubr.msk.bf16.mxu0 %vm558_vm1, %v2817_v53  ;;  %v8149_v22 = vpop.f32.mrf.mxu1  ;;  %v2819_v14 = vsel %vm2810_vm7, %v2816_v39, %v2818_v2  ;;  %v2821_v53 = vsel %vm2810_vm7, %v2818_v2, %v2820_v0  ;;  %v2824_v2 = vrot.slane %v8994_v9, 3 }
 0x13c   : > { %v1187_v37 = vpop.f32.mrf.mxu0 }
 0x13d   : > { %v1294_v33 = vadd.f32 %v1187_v37, %v9736_v59  ;;  %v9930_v34 = vadd.f32 %v8145_v57, %v1296_v28  ;;  %v1434_v61 = vpop.f32.mrf.mxu1 }
 0x13e   : > { %v8108_v23 = vpop.f32.mrf.mxu0 }
 0x13f   : > { %v1297_v51 = vadd.f32 %v8108_v23, %v9738_v12  ;;  %v9933_v62 = vadd.f32 %v1418_v45, %v1294_v33  ;;  %v8150_v16 = vpop.f32.mrf.mxu1  ;;  %v8993_v45 = vld [vmem:[%s9088_s14 + $0x40] sm:$0xff]  }
 0x140   : > { %v1190_v19 = vpop.f32.mrf.mxu0  ;;  %v2822_v39 = vrot.slane %v8993_v45, 3 }
 0x141   : > { %v9938_v43 = vadd.f32 %v1190_v19, %v9743_v21  ;;  %v9940_v59 = vadd.f32 %v8146_v58, %v1297_v51  ;;  %v9942_v57 = vpop.f32.mrf.mxu1 }
 0x142   : > { %v8111_v28 = vpop.f32.mrf.mxu0  ;;  %8326 = vmatmul.mubr.msk.bf16.gmra.mxu0 %vm558_vm1, %v2819_v14 }
 0x143   : > { %v1300_v12 = vadd.f32 %v8111_v28, %v9750_v55  ;;  %8329 = vmatprep.mubr.msk.bf16.mxu0 %vm558_vm1, %v2821_v53  ;;  %v8153_v6 = vpop.f32.mrf.mxu1  ;;  %v2823_v55 = vsel %vm2810_vm7, %v2820_v0, %v2822_v39  ;;  %v2825_v28 = vsel %vm2810_vm7, %v2822_v39, %v2824_v2 }
 0x144   : > { %v1203_v37 = vpop.f32.mrf.mxu0 }
 0x145   : > { %v1298_v21 = vadd.f32 %v1203_v37, %v9756_v25  ;;  %v9950_v33 = vadd.f32 %v8149_v22, %v1300_v12  ;;  %v1450_v58 = vpop.f32.mrf.mxu1 }
 0x146   : > { %v8112_v23 = vpop.f32.mrf.mxu0 }
 0x147   : > { %v1301_v51 = vadd.f32 %v8112_v23, %v9758_v50  ;;  %v9953_v14 = vadd.f32 %v1434_v61, %v1298_v21  ;;  %v8154_v19 = vpop.f32.mrf.mxu1  ;;  %v8995_v61 = vld [vmem:[%s9088_s14 + $0x50] sm:$0xff]   ;;  %v8996_v21 = vld [vmem:[%s9088_s14 + $0x58] sm:$0xff]  }
 0x148   : > { %v1206_v53 = vpop.f32.mrf.mxu0  ;;  %v2826_v0 = vrot.slane %v8995_v61, 3  ;;  %v2828_v39 = vrot.slane %v8996_v21, 3 }
 0x149   : > { %v9958_v45 = vadd.f32 %v1206_v53, %v9763_v44  ;;  %v9960_v25 = vadd.f32 %v8150_v16, %v1301_v51  ;;  %v9962_v22 = vpop.f32.mrf.mxu1 }
 0x14a   : > { %v8115_v12 = vpop.f32.mrf.mxu0  ;;  %8330 = vmatmul.mubr.msk.bf16.gmra.mxu0 %vm558_vm1, %v2823_v55  ;;  %v2829_v61 = vsel %vm2810_vm7, %v2826_v0, %v2828_v39 }
 0x14b   : > { %v1304_v50 = vadd.f32 %v8115_v12, %v9770_v5  ;;  %8333 = vmatprep.mubr.msk.bf16.mxu0 %vm558_vm1, %v2825_v28  ;;  %v8157_v37 = vpop.f32.mrf.mxu1  ;;  %v2827_v5 = vsel %vm2810_vm7, %v2824_v2, %v2826_v0 }
 0x14c   : > { %v1219_v9 = vpop.f32.mrf.mxu0 }
 0x14d   : > { %v1302_v44 = vadd.f32 %v1219_v9, %v9776_v26  ;;  %v9970_v23 = vadd.f32 %v8153_v6, %v1304_v50  ;;  %v1466_v16 = vpop.f32.mrf.mxu1 }
 0x14e   : > { %v8116_v51 = vpop.f32.mrf.mxu0 }
 0x14f   : > { %v1305_v53 = vadd.f32 %v8116_v51, %v9778_v15  ;;  %v9973_v55 = vadd.f32 %v1450_v58, %v1302_v44  ;;  %v8158_v28 = vpop.f32.mrf.mxu1  ;;  %v8997_v58 = vld [vmem:[%s9088_s14 + $0x60] sm:$0xff]   ;;  %v8998_v51 = vld [vmem:[%s9088_s14 + $0x68] sm:$0xff]  }
 0x150   : > { %v1222_v12 = vpop.f32.mrf.mxu0  ;;  %v2830_v2 = vrot.slane %v8997_v58, 3  ;;  %v2832_v0 = vrot.slane %v8998_v51, 3 }
 0x151   : > { %v9978_v21 = vadd.f32 %v1222_v12, %v9783_v24  ;;  %v9980_v26 = vadd.f32 %v8154_v19, %v1305_v53  ;;  %v9982_v6 = vpop.f32.mrf.mxu1 }
 0x152   : > { %12150 = vst [vmem:[#allocation2_spill] sm:$0xff] %v9982_v6  ;;  %v8119_v50 = vpop.f32.mrf.mxu0  ;;  %8334 = vmatmul.mubr.msk.bf16.gmra.mxu0 %vm558_vm1, %v2827_v5  ;;  %v2833_v58 = vsel %vm2810_vm7, %v2830_v2, %v2832_v0 }
 0x153   : > { %v1308_v15 = vadd.f32 %v8119_v50, %v9790_v10  ;;  %8337 = vmatprep.mubr.msk.bf16.mxu0 %vm558_vm1, %v2829_v61  ;;  %v8161_v9 = vpop.f32.mrf.mxu1  ;;  %v2831_v10 = vsel %vm2810_vm7, %v2828_v39, %v2830_v2 }
 0x154   : > { %v1235_v44 = vpop.f32.mrf.mxu0 }
 0x155   : > { %v1306_v24 = vadd.f32 %v1235_v44, %v9797_v4  ;;  %v9990_v12 = vadd.f32 %v8157_v37, %v1308_v15  ;;  %v1482_v19 = vpop.f32.mrf.mxu1 }
 0x156   : > { %v8120_v53 = vpop.f32.mrf.mxu0 }
 0x157   : > { %v1309_v6 = vadd.f32 %v8120_v53, %v9799_v7  ;;  %v9993_v5 = vadd.f32 %v1466_v16, %v1306_v24  ;;  %v8162_v61 = vpop.f32.mrf.mxu1  ;;  %v8999_v16 = vld [vmem:[%s9088_s14 + $0x70] sm:$0xff]   ;;  %v9000_v53 = vld [vmem:[%s9088_s14 + $0x78] sm:$0xff]  }
 0x158   : > { %v1238_v50 = vpop.f32.mrf.mxu0  ;;  %v2834_v39 = vrot.slane %v8999_v16, 3  ;;  %v2836_v2 = vrot.slane %v9000_v53, 3 }
 0x159   : > { %v9998_v51 = vadd.f32 %v1238_v50, %v9807_v40  ;;  %v10000_v4 = vadd.f32 %v8158_v28, %v1309_v6  ;;  %v10002_v37 = vpop.f32.mrf.mxu1 }
 0x15a   : > { %12152 = vst [vmem:[#allocation3_spill] sm:$0xff] %v10002_v37  ;;  %v8123_v15 = vpop.f32.mrf.mxu0  ;;  %8338 = vmatmul.mubr.msk.bf16.gmra.mxu0 %vm558_vm1, %v2831_v10  ;;  %v2837_v16 = vsel %vm2810_vm7, %v2834_v39, %v2836_v2 }
 0x15b   : > { %12151 = vst [vmem:[#allocation4_spill] sm:$0xff] %v9998_v51  ;;  %v1312_v7 = vadd.f32 %v8123_v15, %v9814_v8  ;;  %8341 = vmatprep.mubr.msk.bf16.mxu0 %vm558_vm1, %v2833_v58  ;;  %v8165_v44 = vpop.f32.mrf.mxu1  ;;  %v2835_v8 = vsel %vm2810_vm7, %v2832_v0, %v2834_v39 }
 0x15c   : > { %v1251_v24 = vpop.f32.mrf.mxu0 }
 0x15d   : > { %v1310_v40 = vadd.f32 %v1251_v24, %v9820_v63  ;;  %v10010_v50 = vadd.f32 %v8161_v9, %v1312_v7  ;;  %v1498_v28 = vpop.f32.mrf.mxu1 }
 0x15e   : > { %v8124_v6 = vpop.f32.mrf.mxu0 }
 0x15f   : > { %v1313_v37 = vadd.f32 %v8124_v6, %v9824_v47  ;;  %v10013_v10 = vadd.f32 %v1482_v19, %v1310_v40  ;;  %v8166_v58 = vpop.f32.mrf.mxu1  ;;  %v9001_v19 = vld [vmem:[%s9088_s14 + $0x80] sm:$0xff]   ;;  %v9002_v6 = vld [vmem:[%s9088_s14 + $0x88] sm:$0xff]  }
 0x160   : > { %v1254_v15 = vpop.f32.mrf.mxu0  ;;  %v2838_v0 = vrot.slane %v9001_v19, 3  ;;  %v2840_v39 = vrot.slane %v9002_v6, 3 }
 0x161   : > { %v10018_v53 = vadd.f32 %v1254_v15, %v9830_v3  ;;  %v10020_v63 = vadd.f32 %v8162_v61, %v1313_v37  ;;  %v10022_v9 = vpop.f32.mrf.mxu1 }
 0x162   : > { %12154 = vst [vmem:[#allocation7_spill] sm:$0xff] %v10022_v9  ;;  %v8127_v7 = vpop.f32.mrf.mxu0  ;;  %8342 = vmatmul.mubr.msk.bf16.gmra.mxu0 %vm558_vm1, %v2835_v8  ;;  %v2841_v19 = vsel %vm2810_vm7, %v2838_v0, %v2840_v39 }
 0x163   : > { %12153 = vst [vmem:[#allocation6_spill] sm:$0xff] %v10018_v53  ;;  %v1316_v47 = vadd.f32 %v8127_v7, %v9837_v41  ;;  %8345 = vmatprep.mubr.msk.bf16.mxu0 %vm558_vm1, %v2837_v16  ;;  %v8209_v24 = vpop.f32.mrf.mxu1  ;;  %v2839_v41 = vsel %vm2810_vm7, %v2836_v2, %v2838_v0 }
 0x164   : > { %v1267_v40 = vpop.f32.mrf.mxu0 }
 0x165   : > { %v1314_v3 = vadd.f32 %v1267_v40, %v9845_v54  ;;  %v10030_v61 = vadd.f32 %v8165_v44, %v1316_v47  ;;  %v2037_v37 = vpop.f32.mrf.mxu1  ;;  %v2844_v40 = vrot.slane %v9802_v48, 3 }
 0x166   : > { %v8128_v15 = vpop.f32.mrf.mxu0 }
 0x167   : > { %v1317_v9 = vadd.f32 %v8128_v15, %v9847_v18  ;;  %v10033_v8 = vadd.f32 %v1498_v28, %v1314_v3  ;;  %v8210_v16 = vpop.f32.mrf.mxu1  ;;  %v9003_v18 = vld [vmem:[%s9088_s14 + $0x90] sm:$0xff]  }
 0x168   : > { %v10036_v7 = vpop.f32.mrf.mxu0  ;;  %v2842_v28 = vrot.slane %v9003_v18, 3 }
 0x169   : > { %v10039_v53 = vadd.f32 %v8166_v58, %v1317_v9  ;;  %v10041_v6 = vpop.f32.mrf.mxu1 }
 0x16a   : > { %12155 = vst [vmem:[#allocation8_spill] sm:$0xff] %v10041_v6  ;;  %v8171_v54 = vpop.f32.mrf.mxu0  ;;  %8346 = vmatmul.mubr.msk.bf16.gmra.mxu0 %vm558_vm1, %v2839_v41 }
 0x16b   : > { %v1872_v44 = vadd.f32 %v8171_v54, %v9866_v20  ;;  %8349 = vmatprep.mubr.msk.bf16.mxu0 %vm558_vm1, %v2841_v19  ;;  %v8213_v47 = vpop.f32.mrf.mxu1  ;;  %v2843_v20 = vsel %vm2810_vm7, %v2840_v39, %v2842_v28  ;;  %v2845_v54 = vsel %vm2810_vm7, %v2842_v28, %v2844_v40 }
 0x16c   : > { %v1727_v2 = vpop.f32.mrf.mxu0 }
 0x16d   : > { %v1870_v3 = vadd.f32 %v1727_v2, %v9869_v30  ;;  %v10049_v0 = vadd.f32 %v8209_v24, %v1872_v44  ;;  %v2053_v58 = vpop.f32.mrf.mxu1 }
 0x16e   : > { %v8172_v9 = vpop.f32.mrf.mxu0 }
 0x16f   : > { %v1873_v15 = vadd.f32 %v8172_v9, %v9877_v29  ;;  %v10052_v6 = vadd.f32 %v2037_v37, %v1870_v3  ;;  %v8214_v41 = vpop.f32.mrf.mxu1  ;;  %v2846_v29 = vrot.slane %v9828_v52, 3 }
 0x170   : > { %v10055_v19 = vpop.f32.mrf.mxu0 }
 0x171   : > { %v10058_v18 = vadd.f32 %v8210_v16, %v1873_v15  ;;  %v10060_v48 = vpop.f32.mrf.mxu1  ;;  %v2847_v15 = vsel %vm2810_vm7, %v2844_v40, %v2846_v29 }
 0x172   : > { %12156 = vst [vmem:[#allocation9_spill] sm:$0xff] %v10060_v48  ;;  %v8175_v30 = vpop.f32.mrf.mxu0  ;;  %8350 = vmatmul.mubr.msk.bf16.gmra.mxu0 %vm558_vm1, %v2843_v20 }
 0x173   : > { %v1876_v24 = vadd.f32 %v8175_v30, %v9890_v60  ;;  %8353 = vmatprep.mubr.msk.bf16.mxu0 %vm558_vm1, %v2845_v54  ;;  %v8217_v37 = vpop.f32.mrf.mxu1 }
 0x174   : > { %v1743_v39 = vpop.f32.mrf.mxu0 }
 0x175   : > { %v1874_v44 = vadd.f32 %v1743_v39, %v9893_v17  ;;  %v10067_v2 = vadd.f32 %v8213_v47, %v1876_v24  ;;  %v2069_v28 = vpop.f32.mrf.mxu1 }
 0x176   : > { %v8176_v16 = vpop.f32.mrf.mxu0 }
 0x177   : > { %v1877_v3 = vadd.f32 %v8176_v16, %v9900_v35  ;;  %v10070_v9 = vadd.f32 %v2053_v58, %v1874_v44  ;;  %v8218_v20 = vpop.f32.mrf.mxu1 }
 0x178   : > { %v10073_v60 = vpop.f32.mrf.mxu0 }
 0x179   : > { %v10075_v54 = vadd.f32 %v8214_v41, %v1877_v3  ;;  %v10077_v52 = vpop.f32.mrf.mxu1 }
 0x17a   : > { %12157 = vst [vmem:[#allocation5_spill] sm:$0xff] %v10077_v52  ;;  %v8179_v30 = vpop.f32.mrf.mxu0  ;;  %8354 = vmatmul.mubr.msk.bf16.gmra.mxu0 %vm558_vm1, %v2847_v15  ;;  %vm6188_vm1 = vcmask 1043456  }
 0x17b   : > { %v1880_v17 = vadd.f32 %v8179_v30, %v9910_v1  ;;  %v8221_v47 = vpop.f32.mrf.mxu1 }
 0x17c   : > { %v1759_v24 = vpop.f32.mrf.mxu0 }
 0x17d   : > { %v1878_v35 = vadd.f32 %v1759_v24, %v9913_v32  ;;  %v10082_v58 = vadd.f32 %v8217_v37, %v1880_v17  ;;  %v2085_v39 = vpop.f32.mrf.mxu1 }
 0x17e   : > { %v8180_v40 = vpop.f32.mrf.mxu0 }
 0x17f   : > { %v1881_v29 = vadd.f32 %v8180_v40, %v9920_v31  ;;  %v10085_v44 = vadd.f32 %v2069_v28, %v1878_v35  ;;  %v8222_v41 = vpop.f32.mrf.mxu1 }
 0x180   : > { %v10087_v16 = vpop.f32.mrf.mxu0 }
 0x181   : > { %v10089_v3 = vadd.f32 %v8218_v20, %v1881_v29  ;;  %v10091_v15 = vpop.f32.mrf.mxu1 }
 0x182   : > { %12158 = vst [vmem:[#allocation10_spill] sm:$0xff] %v10091_v15  ;;  %v8183_v1 = vpop.f32.mrf.mxu0 }
 0x183   : > { %v1884_v30 = vadd.f32 %v8183_v1, %v9930_v34  ;;  %v8225_v52 = vpop.f32.mrf.mxu1 }
 0x184   : > { %v1775_v32 = vpop.f32.mrf.mxu0 }
 0x185   : > { %v1882_v37 = vadd.f32 %v1775_v32, %v9933_v62  ;;  %v10095_v17 = vadd.f32 %v8221_v47, %v1884_v30  ;;  %v2101_v24 = vpop.f32.mrf.mxu1 }
 0x186   : > { %v8184_v31 = vpop.f32.mrf.mxu0 }
 0x187   : > { %v1885_v28 = vadd.f32 %v8184_v31, %v9940_v59  ;;  %v10098_v35 = vadd.f32 %v2085_v39, %v1882_v37  ;;  %v8226_v40 = vpop.f32.mrf.mxu1 }
 0x188   : > { %v10100_v20 = vpop.f32.mrf.mxu0 }
 0x189   : > { %v10102_v29 = vadd.f32 %v8222_v41, %v1885_v28  ;;  %v10104_v15 = vpop.f32.mrf.mxu1 }
 0x18a   : > { %12159 = vst [vmem:[#allocation13_spill] sm:$0xff] %v10104_v15  ;;  %v8187_v34 = vpop.f32.mrf.mxu0 }
 0x18b   : > { %v1888_v1 = vadd.f32 %v8187_v34, %v9950_v33  ;;  %v8229_v48 = vpop.f32.mrf.mxu1 }
 0x18c   : > { %v1791_v62 = vpop.f32.mrf.mxu0 }
 0x18d   : > { %v1886_v47 = vadd.f32 %v1791_v62, %v9953_v14  ;;  %v10108_v30 = vadd.f32 %v8225_v52, %v1888_v1  ;;  %v2117_v32 = vpop.f32.mrf.mxu1 }
 0x18e   : > { %v8188_v59 = vpop.f32.mrf.mxu0 }
 0x18f   : > { %v1889_v39 = vadd.f32 %v8188_v59, %v9960_v25  ;;  %v10111_v37 = vadd.f32 %v2101_v24, %v1886_v47  ;;  %v8230_v31 = vpop.f32.mrf.mxu1 }
 0x190   : > { %v10113_v41 = vpop.f32.mrf.mxu0 }
 0x191   : > { %12160 = vst [vmem:[#allocation11_spill] sm:$0xff] %v10113_v41  ;;  %v10115_v28 = vadd.f32 %v8226_v40, %v1889_v39  ;;  %v10117_v15 = vpop.f32.mrf.mxu1 }
 0x192   : > { %12161 = vst [vmem:[#allocation12_spill] sm:$0xff] %v10117_v15  ;;  %v8191_v33 = vpop.f32.mrf.mxu0 }
 0x193   : > { %v1892_v34 = vadd.f32 %v8191_v33, %v9970_v23  ;;  %v8233_v51 = vpop.f32.mrf.mxu1 }
 0x194   : > { %v1807_v14 = vpop.f32.mrf.mxu0 }
 0x195   : > { %v1890_v52 = vadd.f32 %v1807_v14, %v9973_v55  ;;  %v10121_v1 = vadd.f32 %v8229_v48, %v1892_v34  ;;  %v2133_v62 = vpop.f32.mrf.mxu1 }
 0x196   : > { %v8192_v25 = vpop.f32.mrf.mxu0 }
 0x197   : > { %v1893_v24 = vadd.f32 %v8192_v25, %v9980_v26  ;;  %v10124_v47 = vadd.f32 %v2117_v32, %v1890_v52  ;;  %v8234_v59 = vpop.f32.mrf.mxu1 }
 0x198   : > { %v10126_v40 = vpop.f32.mrf.mxu0 }
 0x199   : > { %12162 = vst [vmem:[#allocation14_spill] sm:$0xff] %v10126_v40  ;;  %v10128_v39 = vadd.f32 %v8230_v31, %v1893_v24  ;;  %v10130_v15 = vpop.f32.mrf.mxu1 }
 0x19a   : > { %12163 = vst [vmem:[#allocation15_spill] sm:$0xff] %v10130_v15  ;;  %v8195_v23 = vpop.f32.mrf.mxu0 }
 0x19b   : > { %v1896_v33 = vadd.f32 %v8195_v23, %v9990_v12  ;;  %v8237_v41 = vpop.f32.mrf.mxu1 }
 0x19c   : > { %v1823_v55 = vpop.f32.mrf.mxu0 }
 0x19d   : > { %v1894_v48 = vadd.f32 %v1823_v55, %v9993_v5  ;;  %v10134_v34 = vadd.f32 %v8233_v51, %v1896_v33  ;;  %v2149_v14 = vpop.f32.mrf.mxu1 }
 0x19e   : > { %v8196_v26 = vpop.f32.mrf.mxu0 }
 0x19f   : > { %v1897_v32 = vadd.f32 %v8196_v26, %v10000_v4  ;;  %v10137_v52 = vadd.f32 %v2133_v62, %v1894_v48  ;;  %v8238_v25 = vpop.f32.mrf.mxu1 }
 0x1a0   : > { %v10139_v31 = vpop.f32.mrf.mxu0 }
 0x1a1   : > { %12164 = vst [vmem:[#allocation16_spill] sm:$0xff] %v10139_v31  ;;  %v10141_v24 = vadd.f32 %v8234_v59, %v1897_v32  ;;  %v10143_v15 = vpop.f32.mrf.mxu1 }
 0x1a2   : > { %12165 = vst [vmem:[#allocation17_spill] sm:$0xff] %v10143_v15  ;;  %v8199_v12 = vpop.f32.mrf.mxu0 }
 0x1a3   : > { %v1900_v23 = vadd.f32 %v8199_v12, %v10010_v50  ;;  %v8241_v40 = vpop.f32.mrf.mxu1 }
 0x1a4   : > { %v1839_v5 = vpop.f32.mrf.mxu0 }
 0x1a5   : > { %v1898_v51 = vadd.f32 %v1839_v5, %v10013_v10  ;;  %v10147_v33 = vadd.f32 %v8237_v41, %v1900_v23  ;;  %v2165_v55 = vpop.f32.mrf.mxu1 }
 0x1a6   : > { %v8200_v4 = vpop.f32.mrf.mxu0 }
 0x1a7   : > { %v1901_v62 = vadd.f32 %v8200_v4, %v10020_v63  ;;  %v10150_v48 = vadd.f32 %v2149_v14, %v1898_v51  ;;  %v8242_v26 = vpop.f32.mrf.mxu1 }
 0x1a8   : > { %v10152_v59 = vpop.f32.mrf.mxu0 }
 0x1a9   : > { %12166 = vst [vmem:[#allocation18_spill] sm:$0xff] %v10152_v59  ;;  %v10154_v32 = vadd.f32 %v8238_v25, %v1901_v62  ;;  %v10156_v15 = vpop.f32.mrf.mxu1 }
 0x1aa   : > { %12167 = vst [vmem:[#allocation19_spill] sm:$0xff] %v10156_v15  ;;  %v8203_v50 = vpop.f32.mrf.mxu0 }
 0x1ab   : > { %v1904_v12 = vadd.f32 %v8203_v50, %v10030_v61  ;;  %v8285_v31 = vpop.f32.mrf.mxu1 }
 0x1ac   : > { %v1855_v10 = vpop.f32.mrf.mxu0 }
 0x1ad   : > { %v1902_v41 = vadd.f32 %v1855_v10, %v10033_v8  ;;  %v10160_v23 = vadd.f32 %v8241_v40, %v1904_v12  ;;  %v2629_v5 = vpop.f32.mrf.mxu1 }
 0x1ae   : > { %v8204_v63 = vpop.f32.mrf.mxu0 }
 0x1af   : > { %v1905_v14 = vadd.f32 %v8204_v63, %v10039_v53  ;;  %v10163_v51 = vadd.f32 %v2165_v55, %v1902_v41  ;;  %v8286_v4 = vpop.f32.mrf.mxu1 }
 0x1b0   : > { %v10165_v25 = vpop.f32.mrf.mxu0 }
 0x1b1   : > { %12168 = vst [vmem:[#allocation20_spill] sm:$0xff] %v10165_v25  ;;  %v10167_v62 = vadd.f32 %v8242_v26, %v1905_v14  ;;  %v10169_v15 = vpop.f32.mrf.mxu1 }
 0x1b2   : > { %12169 = vst [vmem:[#allocation21_spill] sm:$0xff] %v10169_v15  ;;  %v8247_v61 = vpop.f32.mrf.mxu0 }
 0x1b3   : > { %v2416_v50 = vadd.f32 %v8247_v61, %v10049_v0  ;;  %v8289_v59 = vpop.f32.mrf.mxu1 }
 0x1b4   : > { %v2271_v8 = vpop.f32.mrf.mxu0 }
 0x1b5   : > { %v2414_v40 = vadd.f32 %v2271_v8, %v10052_v6  ;;  %v10173_v12 = vadd.f32 %v8285_v31, %v2416_v50  ;;  %v2645_v10 = vpop.f32.mrf.mxu1 }
 0x1b6   : > { %v8248_v53 = vpop.f32.mrf.mxu0 }
 0x1b7   : > { %v2417_v55 = vadd.f32 %v8248_v53, %v10058_v18  ;;  %v10176_v41 = vadd.f32 %v2629_v5, %v2414_v40  ;;  %v8290_v63 = vpop.f32.mrf.mxu1 }
 0x1b8   : > { %v10178_v26 = vpop.f32.mrf.mxu0 }
 0x1b9   : > { %v10180_v14 = vadd.f32 %v8286_v4, %v2417_v55  ;;  %v10182_v15 = vpop.f32.mrf.mxu1 }
 0x1ba   : > { %v8251_v0 = vpop.f32.mrf.mxu0 }
 0x1bb   : > { %12170 = vst [vmem:[#allocation22_spill] sm:$0xff] %v10180_v14  ;;  %v2420_v61 = vadd.f32 %v8251_v0, %v10067_v2  ;;  %v8293_v25 = vpop.f32.mrf.mxu1 }
 0x1bc   : > { %v2287_v6 = vpop.f32.mrf.mxu0 }
 0x1bd   : > { %v2418_v31 = vadd.f32 %v2287_v6, %v10070_v9  ;;  %v10186_v50 = vadd.f32 %v8289_v59, %v2420_v61  ;;  %v2661_v8 = vpop.f32.mrf.mxu1 }
 0x1be   : > { %v8252_v18 = vpop.f32.mrf.mxu0 }
 0x1bf   : > { %12171 = vst [vmem:[#allocation23_spill] sm:$0xff] %v10186_v50  ;;  %v2421_v5 = vadd.f32 %v8252_v18, %v10075_v54  ;;  %v10189_v40 = vadd.f32 %v2645_v10, %v2418_v31  ;;  %v10191_v53 = vpop.f32.mrf.mxu1 }
 0x1c0   : > { %v10193_v4 = vpop.f32.mrf.mxu0 }
 0x1c1   : > { %12172 = vst [vmem:[#allocation24_spill] sm:$0xff] %v10189_v40  ;;  %v10195_v55 = vadd.f32 %v8290_v63, %v2421_v5  ;;  %v10197_v14 = vpop.f32.mrf.mxu1 }
 0x1c2   : > { %v8255_v2 = vpop.f32.mrf.mxu0 }
 0x1c3   : > { %12173 = vst [vmem:[#allocation25_spill] sm:$0xff] %v10195_v55  ;;  %v2424_v0 = vadd.f32 %v8255_v2, %v10082_v58  ;;  %v10200_v9 = vpop.f32.mrf.mxu1 }
 0x1c4   : > { %v2303_v59 = vpop.f32.mrf.mxu0 }
 0x1c5   : > { %v2422_v61 = vadd.f32 %v2303_v59, %v10085_v44  ;;  %v10203_v6 = vadd.f32 %v8293_v25, %v2424_v0  ;;  %v10205_v54 = vpop.f32.mrf.mxu1 }
 0x1c6   : > { %v8256_v10 = vpop.f32.mrf.mxu0 }
 0x1c7   : > { %12174 = vst [vmem:[#allocation26_spill] sm:$0xff] %v10203_v6  ;;  %v10208_v31 = vadd.f32 %v8256_v10, %v10089_v3  ;;  %v10210_v63 = vadd.f32 %v2661_v8, %v2422_v61  ;;  %v10212_v18 = vpop.f32.mrf.mxu1 }
 0x1c8   : > { %v10214_v5 = vpop.f32.mrf.mxu0 }
 0x1c9   : > { %12175 = vst [vmem:[#allocation27_spill] sm:$0xff] %v10210_v63  ;;  %v10216_v58 = vpop.f32.mrf.mxu1 }
 0x1ca   : > { %v8259_v2 = vpop.f32.mrf.mxu0 }
 0x1cb   : > { %v10219_v55 = vadd.f32 %v8259_v2, %v10095_v17  ;;  %v10221_v44 = vpop.f32.mrf.mxu1 }
 0x1cc   : > { %v2319_v25 = vpop.f32.mrf.mxu0 }
 0x1cd   : > { %v10224_v0 = vadd.f32 %v2319_v25, %v10098_v35  ;;  %v10226_v3 = vpop.f32.mrf.mxu1 }
 0x1ce   : > { %v8260_v8 = vpop.f32.mrf.mxu0 }
 0x1cf   : > { %v10229_v59 = vadd.f32 %v8260_v8, %v10102_v29  ;;  %v10231_v61 = vpop.f32.mrf.mxu1 }
 0x1d0   : > { %12176 = vst [vmem:[#allocation28_spill] sm:$0xff] %v10231_v61  ;;  %v10233_v10 = vpop.f32.mrf.mxu0 }
 0x1d1   : > { %v10235_v63 = vpop.f32.mrf.mxu1 }
 0x1d2   : > { %12177 = vst [vmem:[#allocation29_spill] sm:$0xff] %v10235_v63  ;;  %v8263_v17 = vpop.f32.mrf.mxu0 }
 0x1d3   : > { %v10238_v2 = vadd.f32 %v8263_v17, %v10108_v30  ;;  %v10240_v6 = vpop.f32.mrf.mxu1 }
 0x1d4   : > { %12178 = vst [vmem:[#allocation30_spill] sm:$0xff] %v10240_v6  ;;  %v2335_v35 = vpop.f32.mrf.mxu0 }
 0x1d5   : > { %v10243_v25 = vadd.f32 %v2335_v35, %v10111_v37  ;;  %v10245_v50 = vpop.f32.mrf.mxu1 }
 0x1d6   : > { %v8264_v40 = vpop.f32.mrf.mxu0  ;;  %12179 = vst [vmem:[#allocation31_spill] sm:$0xff] %v10245_v50 }
 0x1d7   : > { %v10248_v29 = vadd.f32 %v8264_v40, %v10115_v28  ;;  %v10252_v63 = vpop.f32.mrf.mxu1 }
 0x1d8   : > { %v10250_v8 = vpop.f32.mrf.mxu0  ;;  %12181 = vst [vmem:[#allocation33_spill] sm:$0xff] %v10252_v63 }
 0x1d9   : > { %12180 = vst [vmem:[#allocation32_spill] sm:$0xff] %v10248_v29  ;;  %v10260_v35 = vpop.f32.mrf.mxu1 }
 0x1da   : > { %v8267_v61 = vpop.f32.mrf.mxu0  ;;  %12182 = vst [vmem:[#allocation34_spill] sm:$0xff] %v10260_v35 }
 0x1db   : > { %v10255_v30 = vadd.f32 %v8267_v61, %v10121_v1  ;;  %v10267_v29 = vpop.f32.mrf.mxu1 }
 0x1dc   : > { %v2351_v17 = vpop.f32.mrf.mxu0  ;;  %12184 = vst [vmem:[#allocation36_spill] sm:$0xff] %v10267_v29 }
 0x1dd   : > { %v10258_v6 = vadd.f32 %v2351_v17, %v10124_v47  ;;  %v10275_v17 = vpop.f32.mrf.mxu1 }
 0x1de   : > { %v8268_v37 = vpop.f32.mrf.mxu0 }
 0x1df   : > { %v10263_v50 = vadd.f32 %v8268_v37, %v10128_v39  ;;  %v10282_v37 = vpop.f32.mrf.mxu1 }
 0x1e0   : > { %v10265_v28 = vpop.f32.mrf.mxu0 }
 0x1e1   : > { %12183 = vst [vmem:[#allocation35_spill] sm:$0xff] %v10263_v50 }
 0x1e2   : > { %v8271_v40 = vpop.f32.mrf.mxu0 }
 0x1e3   : > { %v10270_v63 = vadd.f32 %v8271_v40, %v10134_v34 }
 0x1e4   : > { %v2367_v1 = vpop.f32.mrf.mxu0 }
 0x1e5   : > { %v10273_v61 = vadd.f32 %v2367_v1, %v10137_v52  ;;  %v10290_v52 = vpop.f32.mrf.mxu1 }
 0x1e6   : > { %v8272_v47 = vpop.f32.mrf.mxu0 }
 0x1e7   : > { %v10278_v35 = vadd.f32 %v8272_v47, %v10141_v24  ;;  %v8707_v24 = vld [vmem:[%s12099_s4 + $0x4] ss:$12 sps:$4 sm:$0xff]  }
 0x1e8   : > { %v10280_v39 = vpop.f32.mrf.mxu0  ;;  %3709 = vmatprep.mubr.bf16.mxu1 %v8707_v24 }
 0x1e9   : > { %12185 = vst [vmem:[#allocation37_spill] sm:$0xff] %v10278_v35 }
 0x1ea   : > { %v8275_v50 = vpop.f32.mrf.mxu0 }
 0x1eb   : > { %v10285_v29 = vadd.f32 %v8275_v50, %v10147_v33  ;;  %v999_v33 = vadd.f32 %v9832_v56, %v9849_v38  ;;  %v1518_v50 = vadd.f32 %v9879_v13, %v9898_v36  ;;  %v1526_v56 = vadd.f32 %v9922_v27, %v9938_v43 }
 0x1ec   : > { %v2383_v34 = vpop.f32.mrf.mxu0  ;;  %v1534_v43 = vadd.f32 %v9962_v22, %v9978_v21  ;;  %v12199_v22 = vld [vmem:[#allocation5_spill] sm:$0xff] }
 0x1ed   : > { %12186 = vst [vmem:[#allocation38_spill] sm:$0xff] %v10285_v29  ;;  %v10288_v40 = vadd.f32 %v2383_v34, %v10150_v48  ;;  %v1514_v48 = vadd.f32 %v9853_v46, %v9875_v49  ;;  %v10306_v34 = vpop.f32.mrf.mxu1  ;;  %v12118_v29 = vmov 0.0   ;;  %v1315_v38 = vadd.f32 %v10036_v7, %v999_v33  ;;  %v12190_v7 = vld [vmem:[#allocation4_spill] sm:$0xff]  ;;  %v12193_v33 = vld [vmem:[#allocation3_spill] sm:$0xff] }
 0x1ee   : > { %v8276_v1 = vpop.f32.mrf.mxu0  ;;  %8387 = vmatprep.subr.bf16.mxu0 %v12118_v29  ;;  %v1875_v49 = vadd.f32 %v10073_v60, %v1518_v50 }
 0x1ef   : > { %12187 = vst [vmem:[#allocation39_spill] sm:$0xff] %v10288_v40  ;;  %v10296_v47 = vadd.f32 %v8276_v1, %v10154_v32  ;;  %v1522_v32 = vadd.f32 %v9902_v11, %v9918_v42  ;;  %v1871_v46 = vadd.f32 %v10055_v19, %v1514_v48  ;;  %v1530_v11 = vadd.f32 %v9942_v57, %v9958_v45  ;;  %v12191_v19 = vld [vmem:[#allocation2_spill] sm:$0xff]  ;;  %v12195_v48 = vld [vmem:[#allocation7_spill] sm:$0xff]  ;;  %v12196_v57 = vld [vmem:[#allocation8_spill] sm:$0xff] }
 0x1f0   : > { %v10298_v35 = vpop.f32.mrf.mxu0  ;;  %v1883_v42 = vadd.f32 %v10100_v20, %v1526_v56  ;;  %v1538_v60 = vadd.f32 %v12191_v19, %v12190_v7  ;;  %v1546_v50 = vadd.f32 %v12195_v48, %v1315_v38  ;;  %v12197_v20 = vld [vmem:[#allocation9_spill] sm:$0xff]  ;;  %v12198_v56 = vld [vmem:[#allocation11_spill] sm:$0xff]  ;;  %v12201_v19 = vld [vmem:[#allocation16_spill] sm:$0xff] }
 0x1f1   : > { %v1879_v36 = vadd.f32 %v10087_v16, %v1522_v32  ;;  %v2181_v45 = vadd.f32 %v12196_v57, %v1871_v46  ;;  %v2185_v32 = vadd.f32 %v12197_v20, %v1875_v49  ;;  %v12206_v20 = vld [vmem:[#allocation12_spill] sm:$0xff] }
 0x1f2   : > { %v8279_v40 = vpop.f32.mrf.mxu0 }
 0x1f3   : > { %v10312_v1 = vadd.f32 %v8279_v40, %v10160_v23  ;;  %v10326_v23 = vpop.f32.mrf.mxu1  ;;  %v12192_v40 = vld [vmem:[#allocation6_spill] sm:$0xff]  ;;  %v2189_v21 = vadd.f32 %v12199_v22, %v1879_v36  ;;  %v2415_v46 = vadd.f32 %v10178_v26, %v2181_v45  ;;  %v2419_v49 = vadd.f32 %v10193_v4, %v2185_v32  ;;  %v12209_v45 = vld [vmem:[#allocation19_spill] sm:$0xff]  ;;  %v12210_v22 = vld [vmem:[#allocation21_spill] sm:$0xff] }
 0x1f4   : > { %v2399_v13 = vpop.f32.mrf.mxu0  ;;  %v1542_v16 = vadd.f32 %v12193_v33, %v12192_v40  ;;  %v12202_v40 = vld [vmem:[#allocation18_spill] sm:$0xff] }
 0x1f5   : > { %12188 = vst [vmem:[#allocation40_spill] sm:$0xff] %v10312_v1  ;;  %v10321_v24 = vadd.f32 %v2399_v13, %v10163_v51  ;;  %v1887_v13 = vadd.f32 %v12198_v56, %v1530_v11  ;;  %v1895_v1 = vadd.f32 %v12201_v19, %v1538_v60  ;;  %v10351_v48 = vpop.f32.mrf.mxu1  ;;  %v2423_v57 = vadd.f32 %v10214_v5, %v2189_v21  ;;  %v12207_v56 = vld [vmem:[#allocation15_spill] sm:$0xff] }
 0x1f6   : > { %v8280_v27 = vpop.f32.mrf.mxu0  ;;  %v1899_v33 = vadd.f32 %v12202_v40, %v1542_v16  ;;  %v2773_v5 = vadd.f32 %v12210_v22, %v2415_v46 }
 0x1f7   : > { %12189 = vst [vmem:[#allocation41_spill] sm:$0xff] %v10321_v24  ;;  %v10335_v51 = vadd.f32 %v8280_v27, %v10167_v62  ;;  %v12200_v24 = vld [vmem:[#allocation14_spill] sm:$0xff]  ;;  %v2744_v21 = vpop.f32.mrf.mxu1 }
 0x1f8   : > { %v10341_v29 = vpop.f32.mrf.mxu0  ;;  %v1891_v7 = vadd.f32 %v12200_v24, %v1534_v43  ;;  %v12203_v62 = vld [vmem:[#allocation10_spill] sm:$0xff]  ;;  %v12205_v24 = vld [vmem:[#allocation13_spill] sm:$0xff] }
 0x1f9   : > { %12194 = vst [vmem:[#allocation4_spill] sm:$0xff] %v10335_v51  ;;  %v2193_v27 = vadd.f32 %v12203_v62, %v1883_v42  ;;  %v12204_v51 = vld [vmem:[#allocation20_spill] sm:$0xff]  ;;  %v2197_v43 = vadd.f32 %v12205_v24, %v1887_v13  ;;  %v8317_v46 = vpop.f32.mrf.mxu1  ;;  %v12216_v24 = vld [vmem:[#allocation30_spill] sm:$0xff] }
 0x1fa   : > { %v1903_v38 = vadd.f32 %v12204_v51, %v1546_v50  ;;  %v8323_v11 = vpop.f32.mrf.mxu0  ;;  %v2201_v42 = vadd.f32 %v12206_v20, %v1891_v7  ;;  %v2205_v51 = vadd.f32 %v12207_v56, %v1895_v1  ;;  %v12208_v50 = vld [vmem:[#allocation17_spill] sm:$0xff]  ;;  %v10369_v7 = vadd.f32 %v10191_v53, %v10208_v31 }
 0x1fb   : > { %v3084_v36 = vadd.f32 %v8323_v11, %v10173_v12  ;;  %v2427_v60 = vadd.f32 %v10233_v10, %v2193_v27  ;;  %v2209_v26 = vadd.f32 %v12208_v50, %v1899_v33  ;;  %v2777_v12 = vadd.f32 %v10182_v15, %v2419_v49 }
 0x1fc   : > { %v2939_v16 = vpop.f32.mrf.mxu0  ;;  %v10362_v32 = vadd.f32 %v12209_v45, %v1903_v38  ;;  %v2431_v13 = vadd.f32 %v10250_v8, %v2197_v43  ;;  %v10372_v1 = vadd.f32 %v10197_v14, %v2423_v57  ;;  %v10377_v33 = vadd.f32 %v10200_v9, %v10219_v55  ;;  %v12215_v57 = vld [vmem:[#allocation23_spill] sm:$0xff]  ;;  %v12220_v45 = vld [vmem:[#allocation24_spill] sm:$0xff] }
 0x1fd   : > { %v3082_v4 = vadd.f32 %v2939_v16, %v10176_v41  ;;  %v3120_v19 = vmax.f32 %v3084_v36, 0.0  ;;  %v12211_v41 = vld [vmem:[#allocation22_spill] sm:$0xff]  ;;  %v10381_v15 = vadd.f32 %v10205_v54, %v10224_v0  ;;  %v10385_v8 = vadd.f32 %v10212_v18, %v10229_v59  ;;  %v12212_v54 = vld [vmem:[#allocation32_spill] sm:$0xff]  ;;  %v12214_v18 = vld [vmem:[#allocation29_spill] sm:$0xff] }
 0x1fe   : > { %v8324_v10 = vpop.f32.mrf.mxu0  ;;  %v10388_v53 = vadd.f32 %v10216_v58, %v2427_v60  ;;  %v10392_v31 = vadd.f32 %v10221_v44, %v10238_v2  ;;  %v10396_v9 = vadd.f32 %v10226_v3, %v10243_v25  ;;  %v12213_v0 = vld [vmem:[#allocation28_spill] sm:$0xff]  ;;  %v10403_v59 = vadd.f32 %v12214_v18, %v2431_v13  ;;  %v12217_v25 = vld [vmem:[#allocation31_spill] sm:$0xff]  ;;  %v12219_v16 = vld [vmem:[#allocation33_spill] sm:$0xff] }
 0x1ff   : > { %v3085_v40 = vadd.f32 %v8324_v10, %v12211_v41  ;;  %v3118_v62 = vmax.f32 %v3082_v4, 0.0  ;;  %v10400_v38 = vadd.f32 %v12213_v0, %v12212_v54  ;;  %v2435_v58 = vadd.f32 %v10265_v28, %v2201_v42  ;;  %v12218_v60 = vld [vmem:[#allocation35_spill] sm:$0xff]  ;;  %v12222_v13 = vld [vmem:[#allocation36_spill] sm:$0xff]  ;;  %v2757_v41 = vpop.f32.mrf.mxu1 }
 0x200   : > { %v2942_v14 = vpop.f32.mrf.mxu0  ;;  %v3192_v44 = vrot.slane %v3120_v19, 1  ;;  %v10409_v3 = vadd.f32 %v12216_v24, %v10255_v30  ;;  %v10413_v43 = vadd.f32 %v12217_v25, %v10258_v6  ;;  %v10417_v20 = vadd.f32 %v12219_v16, %v12218_v60  ;;  %v12225_v24 = vld [vmem:[#allocation38_spill] sm:$0xff] }
 0x201   : > { %v3121_v27 = vmax.f32 %v3085_v40, 0.0  ;;  %v3083_v55 = vadd.f32 %v2942_v14, %v2773_v5  ;;  %v2439_v28 = vadd.f32 %v10280_v39, %v2205_v51  ;;  %v3189_v56 = vrot.slane %v3118_v62, 1  ;;  %v12221_v5 = vld [vmem:[#allocation34_spill] sm:$0xff]  ;;  %v8318_v25 = vpop.f32.mrf.mxu1 }
 0x202   : > { %v8327_v49 = vpop.f32.mrf.mxu0  ;;  %v10423_v30 = vadd.f32 %v12221_v5, %v2435_v58  ;;  %v10427_v6 = vadd.f32 %v12222_v13, %v10270_v63  ;;  %v10431_v10 = vadd.f32 %v10275_v17, %v10273_v61  ;;  %v2443_v40 = vadd.f32 %v10298_v35, %v2209_v26  ;;  %v12223_v58 = vld [vmem:[#allocation25_spill] sm:$0xff]  ;;  %v12230_v5 = vld [vmem:[#allocation27_spill] sm:$0xff]  ;;  %v12231_v13 = vld [vmem:[#allocation4_spill] sm:$0xff] }
 0x203   : > { %v3194_v2 = vrot.slane %v3121_v27, 1  ;;  %v3119_v11 = vmax.f32 %v3083_v55, 0.0  ;;  %v3088_v36 = vadd.f32 %v8327_v49, %v12215_v57  ;;  %v12224_v17 = vld [vmem:[#allocation37_spill] sm:$0xff]  ;;  %v10448_v57 = vadd.f32 %v10290_v52, %v2439_v28  ;;  %v12227_v28 = vld [vmem:[#allocation26_spill] sm:$0xff] }
 0x204   : > { %v2955_v42 = vpop.f32.mrf.mxu0  ;;  %v10462_v16 = vadd.f32 %v2744_v21, %v2443_v40  ;;  %v2447_v21 = vadd.f32 %v10341_v29, %v10362_v32  ;;  %v2760_v40 = vpop.f32.mrf.mxu1 }
 0x205   : > { %v3195_v50 = vsel %vm1012_vm3, %v3192_v44, %v3194_v2  ;;  %v3190_v4 = vrot.slane %v3119_v11, 1  ;;  %v3086_v22 = vadd.f32 %v2955_v42, %v12220_v45  ;;  %v3124_v63 = vmax.f32 %v3088_v36, 0.0 }
 0x206   : > { %v10433_v39 = vmax.f32 %v3120_v19, %v3195_v50  ;;  %v8328_v51 = vpop.f32.mrf.mxu0  ;;  %v10445_v19 = vadd.f32 %v10282_v37, %v12224_v17  ;;  %v10460_v36 = vadd.f32 %v10351_v48, %v10296_v47  ;;  %v12229_v47 = vld [vmem:[#allocation41_spill] sm:$0xff] }
 0x207   : > { %v3191_v14 = vsel %vm1012_vm3, %v3189_v56, %v3190_v4  ;;  %v3193_v55 = vsel %vm1012_vm3, %v3190_v4, %v3192_v44  ;;  %v3122_v54 = vmax.f32 %v3086_v22, 0.0  ;;  %v3089_v49 = vadd.f32 %v8328_v51, %v12223_v58 }
 0x208   : > { %v10438_v0 = vmax.f32 %v3118_v62, %v3191_v14  ;;  %v10440_v18 = vmax.f32 %v3119_v11, %v3193_v55  ;;  %v2958_v61 = vpop.f32.mrf.mxu0  ;;  %v10452_v44 = vadd.f32 %v10306_v34, %v12225_v24  ;;  %v12226_v62 = vld [vmem:[#allocation39_spill] sm:$0xff]  ;;  %v12228_v34 = vld [vmem:[#allocation40_spill] sm:$0xff]  ;;  %v3200_v50 = vrot.slane %v3124_v63, 1 }
 0x209   : > { %v3196_v35 = vrot.slane %v3122_v54, 1  ;;  %v3087_v26 = vadd.f32 %v2958_v61, %v2777_v12  ;;  %v10456_v11 = vadd.f32 %v10326_v23, %v12226_v62  ;;  %v3125_v37 = vmax.f32 %v3089_v49, 0.0 }
 0x20a   : > { %v8331_v60 = vpop.f32.mrf.mxu0  ;;  %v10467_v56 = vadd.f32 %v8317_v46, %v12228_v34  ;;  %v10472_v48 = vadd.f32 %v2757_v41, %v12229_v47  ;;  %v10478_v51 = vadd.f32 %v8318_v25, %v12231_v13  ;;  %v3371_v46 = vrot.slane %v10433_v39, 2 }
 0x20b   : > { %v3197_v52 = vsel %vm1012_vm3, %v3194_v2, %v3196_v35  ;;  %v3123_v12 = vmax.f32 %v3087_v26, 0.0  ;;  %v3092_v42 = vadd.f32 %v8331_v60, %v12227_v28  ;;  %v3202_v4 = vrot.slane %v3125_v37, 1 }
 0x20c   : > { %v10469_v23 = vmax.f32 %v3121_v27, %v3197_v52  ;;  %v2971_v45 = vpop.f32.mrf.mxu0  ;;  %v10492_v62 = vadd.f32 %v2760_v40, %v2447_v21 }
 0x20d   : > { %v3198_v22 = vrot.slane %v3123_v12, 1  ;;  %v3090_v2 = vadd.f32 %v2971_v45, %v12230_v5  ;;  %v3203_v14 = vsel %vm1012_vm3, %v3200_v50, %v3202_v4  ;;  %v3128_v32 = vmax.f32 %v3092_v42, 0.0 }
 0x20e   : > { %v3372_v27 = vrot.slane %v10469_v23, 2  ;;  %v8332_v55 = vpop.f32.mrf.mxu0  ;;  %v10483_v58 = vmax.f32 %v3124_v63, %v3203_v14 }
 0x20f   : > { %v3199_v41 = vsel %vm1012_vm3, %v3196_v35, %v3198_v22  ;;  %v3201_v29 = vsel %vm1012_vm3, %v3198_v22, %v3200_v50  ;;  %v3126_v17 = vmax.f32 %v3090_v2, 0.0  ;;  %v3093_v26 = vadd.f32 %v8332_v55, %v10369_v7 }
 0x210   : > { %v10487_v49 = vmax.f32 %v3122_v54, %v3199_v41  ;;  %v10489_v61 = vmax.f32 %v3123_v12, %v3201_v29  ;;  %v2974_v24 = vpop.f32.mrf.mxu0  ;;  %v3378_v25 = vrot.slane %v10483_v58, 2  ;;  %v10497_v60 = vsel %vm1908_vm4, %v3371_v46, %v3372_v27 }
 0x211   : > { %v3091_v63 = vadd.f32 %v2974_v24, %v10372_v1  ;;  %v3204_v52 = vrot.slane %v3126_v17, 1  ;;  %v3129_v12 = vmax.f32 %v3093_v26, 0.0  ;;  %v3208_v42 = vrot.slane %v3128_v32, 1 }
 0x212   : > { %v3374_v35 = vrot.slane %v10487_v49, 2  ;;  %v3376_v54 = vrot.slane %v10489_v61, 2  ;;  %v8335_v28 = vpop.f32.mrf.mxu0 }
 0x213   : > { %v3127_v34 = vmax.f32 %v3091_v63, 0.0  ;;  %v3096_v7 = vadd.f32 %v8335_v28, %v10377_v33  ;;  %v3205_v45 = vsel %vm1012_vm3, %v3202_v4, %v3204_v52  ;;  %v3210_v1 = vrot.slane %v3129_v12, 1 }
 0x214   : > { %v2987_v47 = vpop.f32.mrf.mxu0  ;;  %v3377_v21 = vsel %vm1908_vm4, %v3374_v35, %v3376_v54  ;;  %v3379_v22 = vsel %vm1908_vm4, %v3376_v54, %v3378_v25  ;;  %v10507_v5 = vmax.f32 %v3125_v37, %v3205_v45  ;;  %v10514_v4 = vsel %vm1908_vm4, %v3372_v27, %v3374_v35 }
 0x215   : > { %v3206_v2 = vrot.slane %v3127_v34, 1  ;;  %v3132_v13 = vmax.f32 %v3096_v7, 0.0  ;;  %v3094_v40 = vadd.f32 %v2987_v47, %v10381_v15  ;;  %v3211_v46 = vsel %vm1012_vm3, %v3208_v42, %v3210_v1 }
 0x216   : > { %v8336_v33 = vpop.f32.mrf.mxu0  ;;  %v3474_v14 = vmax.f32 %v10433_v39, %v3377_v21  ;;  %v3475_v55 = vmax.f32 %v10469_v23, %v3379_v22  ;;  %v3380_v41 = vrot.slane %v10507_v5, 2  ;;  %v10517_v29 = vmax.f32 %v3128_v32, %v3211_v46 }
 0x217   : > { %v3207_v37 = vsel %vm1012_vm3, %v3204_v52, %v3206_v2  ;;  %v3209_v26 = vsel %vm1012_vm3, %v3206_v2, %v3208_v42  ;;  %v3216_v63 = vrot.slane %v3132_v13, 1  ;;  %v3130_v54 = vmax.f32 %v3094_v40, 0.0 }
 0x218   : > { %v10521_v24 = vmax.f32 %v3126_v17, %v3207_v37  ;;  %v10523_v15 = vmax.f32 %v3127_v34, %v3209_v26  ;;  %v2990_v39 = vpop.f32.mrf.mxu0  ;;  %v3386_v23 = vrot.slane %v10517_v29, 2  ;;  %v3097_v27 = vadd.f32 %v8336_v33, %v10385_v8 }
 0x219   : > { %v3095_v35 = vadd.f32 %v2990_v39, %v10388_v53  ;;  %v10529_v32 = vsel %vm1908_vm4, %v3378_v25, %v3380_v41  ;;  %v3212_v17 = vrot.slane %v3130_v54, 1  ;;  %v10536_v21 = vpack.c.bf16 %v3475_v55, %v3474_v14 }
 0x21a   : > { %v3382_v52 = vrot.slane %v10521_v24, 2  ;;  %v3384_v28 = vrot.slane %v10523_v15, 2  ;;  %v8339_v42 = vpop.f32.mrf.mxu0  ;;  %v3476_v34 = vmax.f32 %v10487_v49, %v10529_v32  ;;  %v3133_v7 = vmax.f32 %v3097_v27, 0.0 }
 0x21b   : > { %v3131_v45 = vmax.f32 %v3095_v35, 0.0  ;;  %v3100_v47 = vadd.f32 %v8339_v42, %v10392_v31  ;;  %v3213_v8 = vsel %vm1012_vm3, %v3210_v1, %v3212_v17 }
 0x21c   : > { %v3003_v53 = vpop.f32.mrf.mxu0  ;;  %v3385_v25 = vsel %vm1908_vm4, %v3382_v52, %v3384_v28  ;;  %v3387_v22 = vsel %vm1908_vm4, %v3384_v28, %v3386_v23  ;;  %v10542_v2 = vsel %vm1908_vm4, %v3380_v41, %v3382_v52  ;;  %v3301_v40 = vmax.f32 %v3129_v12, %v3213_v8 }
 0x21d   : > { %v3218_v46 = vrot.slane %v3133_v7, 1  ;;  %v3214_v33 = vrot.slane %v3131_v45, 1  ;;  %v3136_v37 = vmax.f32 %v3100_v47, 0.0  ;;  %v3098_v26 = vadd.f32 %v3003_v53, %v10396_v9 }
 0x21e   : > { %v8340_v39 = vpop.f32.mrf.mxu0  ;;  %v3478_v31 = vmax.f32 %v10483_v58, %v3385_v25  ;;  %v3479_v14 = vmax.f32 %v10507_v5, %v3387_v22  ;;  %v3388_v55 = vrot.slane %v3301_v40, 2 }
 0x21f   : > { %v3219_v27 = vsel %vm1012_vm3, %v3216_v63, %v3218_v46  ;;  %v3215_v41 = vsel %vm1012_vm3, %v3212_v17, %v3214_v33  ;;  %v3217_v12 = vsel %vm1012_vm3, %v3214_v33, %v3216_v63  ;;  %v3224_v28 = vrot.slane %v3136_v37, 1 }
 0x220   : > { %v10552_v35 = vmax.f32 %v3132_v13, %v3219_v27  ;;  %v10554_v52 = vmax.f32 %v3130_v54, %v3215_v41  ;;  %v10556_v9 = vmax.f32 %v3131_v45, %v3217_v12  ;;  %v3006_v58 = vpop.f32.mrf.mxu0  ;;  %v3134_v42 = vmax.f32 %v3098_v26, 0.0 }
 0x221   : > { %v10559_v5 = vadd.f32 %v8340_v39, %v10400_v38  ;;  %v3099_v47 = vadd.f32 %v3006_v58, %v10403_v59  ;;  %v10563_v8 = vsel %vm1908_vm4, %v3386_v23, %v3388_v55  ;;  %v10579_v39 = vpack.c.bf16 %v3479_v14, %v3478_v31 }
 0x222   : > { %v3394_v17 = vrot.slane %v10552_v35, 2  ;;  %v3390_v13 = vrot.slane %v10554_v52, 2  ;;  %v3392_v63 = vrot.slane %v10556_v9, 2  ;;  %v8343_v54 = vpop.f32.mrf.mxu0  ;;  %v3480_v45 = vmax.f32 %v10521_v24, %v10563_v8 }
 0x223   : > { %v3220_v53 = vrot.slane %v3134_v42, 1  ;;  %v12120_v25 = vmax.f32 %v10559_v5, 0.0  ;;  %v3135_v38 = vmax.f32 %v3099_v47, 0.0  ;;  %v10572_v22 = vadd.f32 %v8343_v54, %v10409_v3 }
 0x224   : > { %v3019_v59 = vpop.f32.mrf.mxu0  ;;  %v3393_v23 = vsel %vm1908_vm4, %v3390_v13, %v3392_v63  ;;  %v3395_v33 = vsel %vm1908_vm4, %v3392_v63, %v3394_v17  ;;  %v10577_v26 = vsel %vm1908_vm4, %v3388_v55, %v3390_v13 }
 0x225   : > { %v3221_v27 = vsel %vm1012_vm3, %v3218_v46, %v3220_v53  ;;  %v3226_v41 = vrot.slane %v12120_v25, 1  ;;  %v3222_v12 = vrot.slane %v3135_v38, 1  ;;  %v3140_v58 = vmax.f32 %v10572_v22, 0.0 }
 0x226   : > { %v3305_v3 = vmax.f32 %v3133_v7, %v3221_v27  ;;  %v3102_v47 = vadd.f32 %v3019_v59, %v10413_v43  ;;  %v8344_v54 = vpop.f32.mrf.mxu0  ;;  %v3482_v50 = vmax.f32 %v10517_v29, %v3393_v23  ;;  %v3483_v63 = vmax.f32 %v3301_v40, %v3395_v33 }
 0x227   : > { %v3227_v55 = vsel %vm1012_vm3, %v3224_v28, %v3226_v41  ;;  %v3223_v31 = vsel %vm1012_vm3, %v3220_v53, %v3222_v12  ;;  %v3225_v14 = vsel %vm1012_vm3, %v3222_v12, %v3224_v28  ;;  %v3232_v46 = vrot.slane %v3140_v58, 1 }
 0x228   : > { %v3396_v13 = vrot.slane %v3305_v3, 2  ;;  %v10590_v1 = vmax.f32 %v3136_v37, %v3227_v55  ;;  %v10592_v25 = vmax.f32 %v3134_v42, %v3223_v31  ;;  %v10594_v22 = vmax.f32 %v3135_v38, %v3225_v14  ;;  %v3022_v7 = vpop.f32.mrf.mxu0 }
 0x229   : > { %v3138_v43 = vmax.f32 %v3102_v47, 0.0  ;;  %v3105_v59 = vadd.f32 %v8344_v54, %v10417_v20  ;;  %v3103_v29 = vadd.f32 %v3022_v7, %v10423_v30  ;;  %v10598_v40 = vpack.c.bf16 %v3483_v63, %v3482_v50 }
 0x22a   : > { %v3402_v53 = vrot.slane %v10590_v1, 2  ;;  %v3398_v28 = vrot.slane %v10592_v25, 2  ;;  %v3400_v23 = vrot.slane %v10594_v22, 2  ;;  %v8347_v37 = vpop.f32.mrf.mxu0  ;;  %v3397_v42 = vsel %vm1908_vm4, %v3394_v17, %v3396_v13 }
 0x22b   : > { %v3228_v33 = vrot.slane %v3138_v43, 1  ;;  %v3141_v38 = vmax.f32 %v3105_v59, 0.0  ;;  %v3139_v27 = vmax.f32 %v3103_v29, 0.0  ;;  %v3108_v12 = vadd.f32 %v8347_v37, %v10427_v6 }
 0x22c   : > { %v3035_v47 = vpop.f32.mrf.mxu0  ;;  %v3401_v20 = vsel %vm1908_vm4, %v3398_v28, %v3400_v23  ;;  %v3403_v30 = vsel %vm1908_vm4, %v3400_v23, %v3402_v53  ;;  %v3399_v50 = vsel %vm1908_vm4, %v3396_v13, %v3398_v28  ;;  %v3484_v54 = vmax.f32 %v10554_v52, %v3397_v42 }
 0x22d   : > { %v3229_v63 = vsel %vm1012_vm3, %v3226_v41, %v3228_v33  ;;  %v3234_v55 = vrot.slane %v3141_v38, 1  ;;  %v3230_v17 = vrot.slane %v3139_v27, 1  ;;  %v3144_v31 = vmax.f32 %v3108_v12, 0.0 }
 0x22e   : > { %v3106_v14 = vadd.f32 %v3035_v47, %v10431_v10  ;;  %v8348_v7 = vpop.f32.mrf.mxu0  ;;  %v3486_v6 = vmax.f32 %v10552_v35, %v3401_v20  ;;  %v3487_v59 = vmax.f32 %v3305_v3, %v3403_v30  ;;  %v3485_v29 = vmax.f32 %v10556_v9, %v3399_v50 }
 0x22f   : > { %v3235_v37 = vsel %vm1012_vm3, %v3232_v46, %v3234_v55  ;;  %v3231_v23 = vsel %vm1012_vm3, %v3228_v33, %v3230_v17  ;;  %v3233_v13 = vsel %vm1012_vm3, %v3230_v17, %v3232_v46  ;;  %v3240_v52 = vrot.slane %v3144_v31, 1 }
 0x230   : > { %v10618_v28 = vmax.f32 %v3139_v27, %v3233_v13  ;;  %v3142_v41 = vmax.f32 %v3106_v14, 0.0  ;;  %v3109_v42 = vadd.f32 %v8348_v7, %v10445_v19  ;;  %v3038_v12 = vpop.f32.mrf.mxu0  ;;  %v10621_v10 = vpack.c.bf16 %v3487_v59, %v3486_v6 }
 0x231   : > { %v3107_v35 = vadd.f32 %v3038_v12, %v10448_v57  ;;  %v10624_v3 = vpack.c.bf16 %v3485_v29, %v3484_v54  ;;  %v3481_v9 = vmax.f32 %v10523_v15, %v10577_v26  ;;  %v10628_v47 = vmax.f32 %v3140_v58, %v3235_v37 }
 0x232   : > { %v3408_v46 = vrot.slane %v10618_v28, 2  ;;  %v3236_v33 = vrot.slane %v3142_v41, 1  ;;  %v3145_v27 = vmax.f32 %v3109_v42, 0.0  ;;  %v8351_v20 = vpop.f32.mrf.mxu0  ;;  %v10631_v30 = vmax.f32 %v3138_v43, %v3231_v23 }
 0x233   : > { %v3143_v19 = vmax.f32 %v3107_v35, 0.0  ;;  %v3112_v50 = vadd.f32 %v8351_v20, %v10452_v44  ;;  %v10637_v57 = vpack.c.bf16 %v3481_v9, %v3480_v45  ;;  %v3410_v54 = vrot.slane %v10628_v47, 2 }
 0x234   : > { %v3237_v15 = vsel %vm1012_vm3, %v3234_v55, %v3236_v33  ;;  %v3242_v26 = vrot.slane %v3145_v27, 1  ;;  %v3051_v58 = vpop.f32.mrf.mxu0  ;;  %v3406_v17 = vrot.slane %v10631_v30, 2  ;;  %v12232_v43 = vmax.f32 %v10489_v61, %v10542_v2 }
 0x235   : > { %v3238_v14 = vrot.slane %v3143_v19, 1  ;;  %v3148_v24 = vmax.f32 %v3112_v50, 0.0  ;;  %v3110_v8 = vadd.f32 %v3051_v58, %v10456_v11  ;;  %v3313_v45 = vmax.f32 %v3141_v38, %v3237_v15 }
 0x236   : > { %v10648_v44 = vpack.c.bf16 %v12232_v43, %v3476_v34  ;;  %v3243_v7 = vsel %vm1012_vm3, %v3240_v52, %v3242_v26  ;;  %v8352_v55 = vpop.f32.mrf.mxu0  ;;  %v12233_v6 = vmax.f32 %v10559_v5, 0.0  ;;  %v10659_v49 = vsel %vm1908_vm4, %v3406_v17, %v3408_v46 }
 0x237   : > { %v10662_v61 = vsel %vm1908_vm4, %v3408_v46, %v3410_v54  ;;  %v3239_v32 = vsel %vm1012_vm3, %v3236_v33, %v3238_v14  ;;  %v3241_v11 = vsel %vm1012_vm3, %v3238_v14, %v3240_v52  ;;  %v3248_v34 = vrot.slane %v3148_v24, 1 }
 0x238   : > { %v10654_v59 = vmax.f32 %v12233_v6, %v3229_v63  ;;  %v3146_v2 = vmax.f32 %v3110_v8, 0.0  ;;  %v10666_v38 = vmax.f32 %v3143_v19, %v3241_v11  ;;  %v3113_v5 = vadd.f32 %v8352_v55, %v10460_v36  ;;  %v3054_v63 = vpop.f32.mrf.mxu0 }
 0x239   : > { %v10669_v29 = vmax.f32 %v3144_v31, %v3243_v7  ;;  %v10671_v37 = vmax.f32 %v3142_v41, %v3239_v32  ;;  %v3111_v13 = vadd.f32 %v3054_v63, %v10462_v16  ;;  %v3412_v42 = vrot.slane %v3313_v45, 2 }
 0x23a   : > { %v3244_v23 = vrot.slane %v3146_v2, 1  ;;  %v3404_v12 = vrot.slane %v10654_v59, 2  ;;  %v3416_v35 = vrot.slane %v10666_v38, 2  ;;  %v3149_v52 = vmax.f32 %v3113_v5, 0.0  ;;  %v8355_v9 = vpop.f32.mrf.mxu0 }
 0x23b   : > { %v3418_v46 = vrot.slane %v10669_v29, 2  ;;  %v3414_v33 = vrot.slane %v10671_v37, 2  ;;  %v3147_v31 = vmax.f32 %v3111_v13, 0.0  ;;  %v3116_v41 = vadd.f32 %v8355_v9, %v10467_v56 }
 0x23c   : > { %v3245_v36 = vsel %vm1012_vm3, %v3242_v26, %v3244_v23  ;;  %v10681_v20 = vsel %vm1908_vm4, %v3410_v54, %v3412_v42  ;;  %v3250_v16 = vrot.slane %v3149_v52, 1  ;;  %v3067_v19 = vpop.f32.mrf.mxu0 }
 0x23d   : > { %v3317_v50 = vmax.f32 %v3145_v27, %v3245_v36  ;;  %v3417_v15 = vsel %vm1908_vm4, %v3414_v33, %v3416_v35  ;;  %v3419_v58 = vsel %vm1908_vm4, %v3416_v35, %v3418_v46  ;;  %v3246_v43 = vrot.slane %v3147_v31, 1 }
 0x23e   : > { %v3152_v14 = vmax.f32 %v3116_v41, 0.0  ;;  %v3114_v8 = vadd.f32 %v3067_v19, %v10472_v48  ;;  %v3494_v7 = vmax.f32 %v10628_v47, %v3417_v15  ;;  %v3251_v26 = vsel %vm1012_vm3, %v3248_v34, %v3250_v16  ;;  %v8356_v55 = vpop.f32.mrf.mxu0 }
 0x23f   : > { %v3420_v56 = vrot.slane %v3317_v50, 2  ;;  %v3495_v6 = vmax.f32 %v3313_v45, %v3419_v58  ;;  %v3415_v54 = vsel %vm1908_vm4, %v3412_v42, %v3414_v33  ;;  %v3247_v32 = vsel %vm1012_vm3, %v3244_v23, %v3246_v43 }
 0x240   : > { %v3249_v27 = vsel %vm1012_vm3, %v3246_v43, %v3248_v34  ;;  %v3326_v11 = vrot.slane %v3152_v14, 1  ;;  %v3150_v5 = vmax.f32 %v3114_v8, 0.0  ;;  %v3117_v13 = vadd.f32 %v8356_v55, %v10478_v51  ;;  %v3070_v48 = vpop.f32.mrf.mxu0 }
 0x241   : > { %v10691_v63 = vmax.f32 %v3147_v31, %v3249_v27  ;;  %v3320_v35 = vmax.f32 %v3148_v24, %v3251_v26  ;;  %v3318_v47 = vmax.f32 %v3146_v2, %v3247_v32  ;;  %v3115_v36 = vadd.f32 %v3070_v48, %v10492_v62 }
 0x242   : > { %v3252_v9 = vrot.slane %v3150_v5, 1  ;;  %v3421_v45 = vsel %vm1908_vm4, %v3418_v46, %v3420_v56  ;;  %v10696_v41 = vpack.c.bf16 %v3495_v6, %v3494_v7  ;;  %v3153_v42 = vmax.f32 %v3117_v13, 0.0 }
 0x243   : > { %v3424_v23 = vrot.slane %v10691_v63, 2  ;;  %v3426_v34 = vrot.slane %v3320_v35, 2  ;;  %v3422_v33 = vrot.slane %v3318_v47, 2  ;;  %v3151_v19 = vmax.f32 %v3115_v36, 0.0 }
 0x244   : > { %v3253_v31 = vsel %vm1012_vm3, %v3250_v16, %v3252_v9  ;;  %v3496_v51 = vmax.f32 %v10671_v37, %v3421_v45  ;;  %v3492_v24 = vmax.f32 %v10631_v30, %v10681_v20  ;;  %v3328_v2 = vrot.slane %v3153_v42, 1 }
 0x245   : > { %v3321_v15 = vmax.f32 %v3149_v52, %v3253_v31  ;;  %v3425_v62 = vsel %vm1908_vm4, %v3422_v33, %v3424_v23  ;;  %v3427_v46 = vsel %vm1908_vm4, %v3424_v23, %v3426_v34  ;;  %v3254_v58 = vrot.slane %v3151_v19, 1 }
 0x246   : > { %v3498_v43 = vmax.f32 %v10669_v29, %v3425_v62  ;;  %v3499_v8 = vmax.f32 %v3317_v50, %v3427_v46  ;;  %v3423_v7 = vsel %vm1908_vm4, %v3420_v56, %v3422_v33  ;;  %v3329_v16 = vsel %vm1012_vm3, %v3326_v11, %v3328_v2 }
 0x247   : > { %v3335_v26 = vmax.f32 %v3153_v42, %v3328_v2  ;;  %v3428_v55 = vrot.slane %v3321_v15, 2  ;;  %v3497_v37 = vmax.f32 %v10666_v38, %v3423_v7  ;;  %v3334_v6 = vmax.f32 %v3152_v14, %v3329_v16  ;;  %v8726_v7 = vld [vmem:[%s12099_s4 + $0x20] ss:$12 sps:$4 sm:$0xff]   ;;  %v8727_v16 = vld [vmem:[%s12099_s4 + $0x38] ss:$12 sps:$4 sm:$0xff]  }
 0x248   : > { %v3255_v20 = vsel %vm1012_vm3, %v3252_v9, %v3254_v58  ;;  %v3323_v52 = vmax.f32 %v3151_v19, %v3254_v58  ;;  %v3327_v32 = vsel %vm1012_vm3, %v3254_v58, %v3326_v11  ;;  %v3545_v56 = vpack.c.bf16 %v3499_v8, %v3498_v43  ;;  %v8725_v8 = vld [vmem:[%s12099_s4 + $0x8] ss:$12 sps:$4 sm:$0xff]  }
 0x249   : > { %v3436_v27 = vrot.slane %v3335_v26, 2  ;;  %v3322_v13 = vmax.f32 %v3150_v5, %v3255_v20  ;;  %v3333_v48 = vmax.f32 %v3151_v19, %v3327_v32  ;;  %v3429_v29 = vsel %vm1908_vm4, %v3426_v34, %v3428_v55  ;;  %v8728_v26 = vld [vmem:[%s12099_s4 + $0x50] ss:$12 sps:$4 sm:$0xff]  }
 0x24a   : > { %v3434_v50 = vrot.slane %v3334_v6, 2  ;;  %v3500_v36 = vmax.f32 %v3318_v47, %v3429_v29  ;;  %v3544_v45 = vpack.c.bf16 %v3497_v37, %v3496_v51  ;;  %v3493_v38 = vmax.f32 %v10618_v28, %v3415_v54  ;;  %v8730_v37 = vld [vmem:[%s12099_s4 + $0x80] ss:$12 sps:$4 sm:$0xff]   ;;  %v8731_v6 = vld [vmem:[%s12099_s4 + $0x98] ss:$0 sps:$4 sm:$0x33]  }
 0x24b   : > { %v3432_v23 = vrot.slane %v3333_v48, 2  ;;  %v3505_v42 = vmax.f32 %v3323_v52, %v3436_v27  ;;  %v3430_v33 = vrot.slane %v3322_v13, 2  ;;  %v3490_v9 = vmax.f32 %v10590_v1, %v10659_v49  ;;  %v8732_v20 = vld [vmem:[%s12097_s2 + $0x38] sm:$0xff]   ;;  %v8734_v32 = vld [vmem:[%s12097_s2 + $0x30] sm:$0xff]   ;;  %v8737_v48 = vld [vmem:[%s12097_s2 + $0x28] sm:$0xff]  }
 0x24c   : > { %v3437_v14 = vsel %vm1908_vm4, %v3434_v50, %v3436_v27  ;;  %v3491_v11 = vmax.f32 %v10654_v59, %v10662_v61  ;;  %v3405_v5 = vsel %vm1908_vm4, %v3402_v53, %v3404_v12  ;;  %v3542_v54 = vpack.c.bf16 %v3493_v38, %v3492_v24  ;;  %8388 = vmatpush3.bf16.msra.mxu0 %v8732_v20  ;;  %v8733_v52 = vld [vmem:[%s12097_s2 + $0x58] sm:$0xff]   ;;  %v8735_v27 = vld [vmem:[%s12097_s2 + $0x50] sm:$0xff]   ;;  %v8738_v29 = vld [vmem:[%s12097_s2 + $0x40] sm:$0xff]  }
 0x24d   : > { %v3433_v47 = vsel %vm1908_vm4, %v3430_v33, %v3432_v23  ;;  %v3435_v34 = vsel %vm1908_vm4, %v3432_v23, %v3434_v50  ;;  %v3431_v28 = vsel %vm1908_vm4, %v3428_v55, %v3430_v33  ;;  %v3407_v1 = vsel %vm1908_vm4, %v3404_v12, %v3406_v17  ;;  %v8717_v17 = vld [vmem:[%s12099_s4 + $0x60] ss:$12 sps:$4 sm:$0xff]   ;;  %v3530_v12 = vld [vmem:[%s12099_s4 + $0x90] sm:$0x33] }
 0x24e   : > { %v3502_v31 = vmax.f32 %v3320_v35, %v3433_v47  ;;  %v3503_v19 = vmax.f32 %v3321_v15, %v3435_v34  ;;  %v3501_v49 = vmax.f32 %v10691_v63, %v3431_v28  ;;  %v3541_v51 = vpack.c.bf16 %v3491_v11, %v3490_v9  ;;  %v8729_v55 = vld [vmem:[%s12099_s4 + $0x68] ss:$12 sps:$4 sm:$0xff]   ;;  %v8739_v50 = vld [vmem:[%s12097_s2 + $0x20] sm:$0xff]  }
 0x24f   : > { %v3488_v53 = vmax.f32 %v10592_v25, %v3405_v5  ;;  %v3473_v61 = vmax.f32 %v10440_v18, %v10514_v4  ;;  %v3504_v2 = vmax.f32 %v3322_v13, %v3437_v14  ;;  %v3489_v35 = vmax.f32 %v10594_v22, %v3407_v1  ;;  %v8710_v25 = vld [vmem:[%s12099_s4 + $0x1c] ss:$12 sps:$4 sm:$0xff]   ;;  %v8713_v22 = vld [vmem:[%s12099_s4 + $0x34] ss:$12 sps:$4 sm:$0xff]  }
 0x250   : > { %v3547_v62 = vpack.c.bf16 %v3503_v19, %v3502_v31  ;;  %v3546_v46 = vpack.c.bf16 %v3501_v49, %v3500_v36  ;;  %v12234_v63 = vmax.f32 %v10438_v0, %v10497_v60  ;;  %v12235_v59 = vmov 0.0   ;;  %v8705_v60 = vld [vmem:[%s12099_s4] ss:$12 sps:$4 sm:$0xff]  }
 0x251   : > { %v3548_v15 = vpack.c.bf16 %v3505_v42, %v3504_v2  ;;  %v3540_v30 = vpack.c.bf16 %v3489_v35, %v3488_v53  ;;  %8395 = vmatprep.mubr.msk.bf16.mxu0 %vm9013_vm8, %v12235_v59  ;;  %v9014_v0 = vmov 65535   ;;  %v7251_v58 = vcombine.high %v3530_v12, %v3530_v12  ;;  %8389 = vmatprep.subr.bf16.mxu0 %v12235_v59  ;;  %v8736_v13 = vld [vmem:[%s12097_s2 + $0x48] sm:$0xff]  }
 0x252   : > { %v3532_v24 = vpack.c.bf16 %v3473_v61, %v12234_v63  ;;  %7860 = vmatprep.subr.bf16.mxu1 %v3547_v62  ;;  %v3672_v18 = vsel %vm2810_vm7, 4294967295, %v9014_v0  ;;  %v7250_v43 = vcombine.low %v3530_v12, %v3530_v12  ;;  %8390 = vmatpush3.bf16.msra.mxu0 %v8734_v32 }
 0x253   : > { %7861 = vmatpush3.bf16.msra.mxu1 %v10621_v10  ;;  %v3673_v4 = vsel %vm1908_vm4, %v3672_v18, 0  ;;  %v8716_v10 = vld [vmem:[%s12099_s4 + $0x4c] ss:$12 sps:$4 sm:$0xff]   ;;  %8391 = vmatprep.subr.bf16.mxu0 %v12235_v59 }
 0x254   : > { %7862 = vmatprep.subr.bf16.mxu1 %v3546_v46 }
 0x256   : > { %8392 = vmatpush3.bf16.msra.mxu0 %v8737_v48 }
 0x257   : > { %7863 = vmatpush3.bf16.msra.mxu1 %v10624_v3  ;;  %v8714_v3 = vld [vmem:[%s12099_s4 + $0x48] ss:$12 sps:$4 sm:$0xff]   ;;  %8393 = vmatprep.subr.bf16.mxu0 %v12235_v59 }
 0x258   : > { %7864 = vmatprep.subr.bf16.mxu1 %v3545_v56 }
 0x25a   : > { %8394 = vmatpush3.bf16.msra.mxu0 %v8739_v50 }
 0x25b   : > { %7865 = vmatpush3.bf16.msra.mxu1 %v10598_v40  ;;  %v8711_v40 = vld [vmem:[%s12099_s4 + $0x30] ss:$12 sps:$4 sm:$0xff]   ;;  %8415 = vmatprep.subr.bf16.mxu0 %v12235_v59 }
 0x25c   : > { %7866 = vmatprep.subr.bf16.mxu1 %v3544_v45 }
 0x25f   : > { %7867 = vmatpush3.bf16.msra.mxu1 %v10637_v57  ;;  %v8719_v57 = vld [vmem:[%s12099_s4 + $0x64] ss:$12 sps:$4 sm:$0xff]  }
 0x260   : > { %7868 = vmatprep.subr.bf16.mxu1 %v10696_v41  ;;  %v8720_v41 = vld [vmem:[%s12099_s4 + $0x78] ss:$12 sps:$4 sm:$0xff]  }
 0x263   : > { %7869 = vmatpush3.bf16.msra.mxu1 %v10579_v39  ;;  %v3675_v39 = vand.u32 %v3673_v4, %v3548_v15 }
 0x264   : > { %7870 = vmatprep.subr.bf16.mxu1 %v3542_v54 }
 0x267   : > { %7871 = vmatpush3.bf16.msra.mxu1 %v10648_v44  ;;  %v8722_v44 = vld [vmem:[%s12099_s4 + $0x7c] ss:$12 sps:$4 sm:$0xff]  }
 0x268   : > { %7872 = vmatprep.subr.bf16.mxu1 %v3541_v51 }
 0x26b   : > { %7873 = vmatpush3.bf16.msra.mxu1 %v10536_v21  ;;  %v8708_v21 = vld [vmem:[%s12099_s4 + $0x18] ss:$12 sps:$4 sm:$0xff]  }
 0x26c   : > { %7874 = vmatprep.subr.bf16.mxu1 %v3540_v30 }
 0x26f   : > { %7875 = vmatpush3.bf16.msra.mxu1 %v3532_v24 }
 0x270   : > { %8357 = vmatprep.subr.bf16.mxu1 %v12235_v59 }
 0x272   : > { %3710 = vmatmul.mubr.bf16.vlgmr.msra.gmra.mxu1 %v8705_v60 }
 0x273   : > { %8358 = vmatpush3.bf16.msra.mxu1 %v3675_v39  ;;  %3717 = vmatprep.mubr.bf16.mxu1 %v8710_v25 }
 0x274   : > { %8443 = vmatprep.subr.bf16.mxu1 %v12235_v59 }
 0x27a   : > { %3718 = vmatmul.mubr.bf16.gmra.mxu1 %v8708_v21 }
 0x27b   : > { %3725 = vmatprep.mubr.bf16.mxu1 %v8713_v22 }
 0x282   : > { %3726 = vmatmul.mubr.bf16.gmra.mxu1 %v8711_v40 }
 0x283   : > { %3733 = vmatprep.mubr.bf16.mxu1 %v8716_v10 }
 0x28a   : > { %3734 = vmatmul.mubr.bf16.gmra.mxu1 %v8714_v3 }
 0x28b   : > { %3741 = vmatprep.mubr.bf16.mxu1 %v8719_v57 }
 0x292   : > { %3742 = vmatmul.mubr.bf16.gmra.mxu1 %v8717_v17 }
 0x293   : > { %3749 = vmatprep.mubr.bf16.mxu1 %v8722_v44 }
 0x29a   : > { %3750 = vmatmul.mubr.bf16.gmra.mxu1 %v8720_v41 }
 0x29b   : > { %3757 = vmatprep.mubr.bf16.mxu1 %v7251_v58 }
 0x2a2   : > { %3758 = vmatmul.mubr.bf16.gmra.mxu1 %v7250_v43 }
 0x2a3   : > { %8359 = vmatprep.mubr.msk.bf16.mxu1 %vm9013_vm8, %v12235_v59 }
 0x2aa   : > { %8360 = vmatmul.mubr.msk.bf16.vlgmr.msra.gmra.mxu1 %vm3649_vm9, %v8725_v8 }
 0x2ab   : > { %8363 = vmatprep.mubr.msk.bf16.mxu1 %vm9013_vm8, %v12235_v59  ;;  %8444 = vmatpush3.bf16.msra.mxu1 %v8733_v52 }
 0x2ac   : > { %8445 = vmatprep.subr.bf16.mxu1 %v12235_v59 }
 0x2af   : > { %8446 = vmatpush3.bf16.msra.mxu1 %v8735_v27  ;;  %v8740_v27 = vld [vmem:[%s12097_s2 + $0x98] sm:$0xff]  }
 0x2b0   : > { %8447 = vmatprep.subr.bf16.mxu1 %v12235_v59 }
 0x2b2   : > { %8364 = vmatmul.mubr.msk.bf16.gmra.mxu1 %vm3649_vm9, %v8726_v7 }
 0x2b3   : > { %8367 = vmatprep.mubr.msk.bf16.mxu1 %vm9013_vm8, %v12235_v59  ;;  %8448 = vmatpush3.bf16.msra.mxu1 %v8736_v13 }
 0x2b4   : > { %8449 = vmatprep.subr.bf16.mxu1 %v12235_v59 }
 0x2b7   : > { %8450 = vmatpush3.bf16.msra.mxu1 %v8738_v29 }
 0x2b8   : > { %8499 = vmatprep.subr.bf16.mxu1 %v12235_v59 }
 0x2ba   : > { %8368 = vmatmul.mubr.msk.bf16.gmra.mxu1 %vm3649_vm9, %v8727_v16 }
 0x2bb   : > { %8371 = vmatprep.mubr.msk.bf16.mxu1 %vm9013_vm8, %v12235_v59 }
 0x2c2   : > { %8372 = vmatmul.mubr.msk.bf16.gmra.mxu1 %vm3649_vm9, %v8728_v26 }
 0x2c3   : > { %8375 = vmatprep.mubr.msk.bf16.mxu1 %vm9013_vm8, %v12235_v59 }
 0x2ca   : > { %8376 = vmatmul.mubr.msk.bf16.gmra.mxu1 %vm3649_vm9, %v8729_v55 }
 0x2cb   : > { %8379 = vmatprep.mubr.msk.bf16.mxu1 %vm9013_vm8, %v12235_v59 }
 0x2d2   : > { %8380 = vmatmul.mubr.msk.bf16.gmra.mxu1 %vm3649_vm9, %v8730_v37 }
 0x2d3   : > { %8383 = vmatprep.mubr.msk.bf16.mxu1 %vm9013_vm8, %v12235_v59 }
 0x2da   : > { %8384 = vmatmul.mubr.msk.bf16.gmra.mxu1 %vm3649_vm9, %v8731_v6 }
 0x2db   : > { %8451 = vmatprep.mubr.msk.bf16.mxu1 %vm9013_vm8, %v12235_v59 }
 0x332   : > { %v7876_v36 = vpop.f32.mrf.mxu1 }
 0x334   : > { %v7877_v56 = vpop.f32.mrf.mxu1 }
 0x335   : > { %v7878_v4 = vadd.f32 %v7877_v56, %v7876_v36 }
 0x336   : > { %v7879_v45 = vpop.f32.mrf.mxu1 }
 0x338   : > { %v7880_v23 = vpop.f32.mrf.mxu1 }
 0x339   : > { %v7881_v25 = vadd.f32 %v7880_v23, %v7879_v45 }
 0x33a   : > { %v7882_v42 = vpop.f32.mrf.mxu1 }
 0x33c   : > { %v7883_v33 = vpop.f32.mrf.mxu1 }
 0x33d   : > { %v7884_v17 = vadd.f32 %v7883_v33, %v7882_v42  ;;  %v8741_v33 = vld [vmem:[%s12097_s2 + $0x18] sm:$0xff]  }
 0x33e   : > { %v7885_v38 = vpop.f32.mrf.mxu1 }
 0x340   : > { %v7886_v14 = vpop.f32.mrf.mxu1 }
 0x341   : > { %v7887_v44 = vadd.f32 %v7886_v14, %v7885_v38 }
 0x342   : > { %v7888_v9 = vpop.f32.mrf.mxu1 }
 0x344   : > { %v7889_v11 = vpop.f32.mrf.mxu1 }
 0x345   : > { %v7890_v26 = vadd.f32 %v7889_v11, %v7888_v9 }
 0x346   : > { %v7891_v5 = vpop.f32.mrf.mxu1 }
 0x348   : > { %v7892_v47 = vpop.f32.mrf.mxu1 }
 0x349   : > { %v7893_v56 = vadd.f32 %v7892_v47, %v7891_v5 }
 0x34a   : > { %v10866_v34 = vpop.f32.mrf.mxu1 }
 0x34c   : > { %v10868_v28 = vpop.f32.mrf.mxu1 }
 0x34e   : > { %v10870_v54 = vpop.f32.mrf.mxu1 }
 0x350   : > { %v10872_v31 = vpop.f32.mrf.mxu1 }
 0x352   : > { %v10874_v19 = vpop.f32.mrf.mxu1 }
 0x354   : > { %v10876_v49 = vpop.f32.mrf.mxu1 }
 0x356   : > { %v10878_v51 = vpop.f32.mrf.mxu1 }
 0x358   : > { %v10880_v1 = vpop.f32.mrf.mxu1 }
 0x35a   : > { %v7906_v53 = vpop.f32.mrf.mxu1 }
 0x35c   : > { %v7907_v61 = vpop.f32.mrf.mxu1 }
 0x35d   : > { %v10882_v2 = vadd.f32 %v7907_v61, %v7906_v53 }
 0x35e   : > { %v10884_v62 = vpop.f32.mrf.mxu1 }
 0x360   : > { %v10886_v46 = vpop.f32.mrf.mxu1 }
 0x362   : > { %v7912_v35 = vpop.f32.mrf.mxu1 }
 0x364   : > { %v7913_v63 = vpop.f32.mrf.mxu1 }
 0x365   : > { %v10888_v24 = vadd.f32 %v7913_v63, %v7912_v35  ;;  %v8742_v35 = vld [vmem:[%s12097_s2 + $0x90] sm:$0xff]  }
 0x366   : > { %v7915_v15 = vpop.f32.mrf.mxu1 }
 0x368   : > { %v7916_v30 = vpop.f32.mrf.mxu1 }
 0x36a   : > { %v3799_v18 = vpop.f32.mrf.mxu1 }
 0x36b   : > { %v3800_v21 = vadd.f32 %v7878_v4, %v3799_v18  ;;  %v8743_v18 = vld [vmem:[%s12097_s2 + $0x10] sm:$0xff]  }
 0x36c   : > { %v8361_v60 = vpop.f32.mrf.mxu1 }
 0x36d   : > { %v7896_v60 = vadd.f32 %v10868_v28, %v10866_v34 }
 0x36e   : > { %v3802_v39 = vpop.f32.mrf.mxu1 }
 0x36f   : > { %v3803_v22 = vadd.f32 %v7881_v25, %v3802_v39 }
 0x370   : > { %v8362_v40 = vpop.f32.mrf.mxu1 }
 0x371   : > { %v10890_v10 = vpack.c.bf16 %v3803_v22, %v3800_v21  ;;  %v8744_v40 = vld [vmem:[%s12097_s2 + $0x88] sm:$0xff]  }
 0x372   : > { %v3807_v3 = vpop.f32.mrf.mxu1 }
 0x373   : > { %v3880_v12 = vshll.u32 %v10890_v10, 16  ;;  %v3808_v58 = vadd.f32 %v7884_v17, %v3807_v3  ;;  %v4150_v37 = vrot.slane %v10890_v10, 1  ;;  %v3878_v20 = vshrl.u32 %v10890_v10, 16 }
 0x374   : > { %v8365_v57 = vpop.f32.mrf.mxu1  ;;  %v4292_v48 = vrot.slane %v10890_v10, 5  ;;  %v4595_v50 = vrot.slane %v10890_v10, 6 }
 0x375   : > { %v3882_v16 = vrot.slane %v3880_v12, 1 }
 0x376   : > { %v3810_v41 = vpop.f32.mrf.mxu1 }
 0x377   : > { %v3811_v43 = vadd.f32 %v7887_v44, %v3810_v41  ;;  %v3883_v23 = vor.u32 %v3882_v16, %v3878_v20  ;;  %v7899_v41 = vadd.f32 %v10872_v31, %v10870_v54  ;;  %v8745_v16 = vld [vmem:[%s12097_s2 + $0x8] sm:$0xff]  }
 0x378   : > { %v8366_v8 = vpop.f32.mrf.mxu1 }
 0x379   : > { %v10893_v7 = vpack.c.bf16 %v3811_v43, %v3808_v58 }
 0x37a   : > { %v3815_v55 = vpop.f32.mrf.mxu1 }
 0x37b   : > { %v4151_v6 = vrot.slane %v10893_v7, 1  ;;  %v10901_v52 = vshll.u32 %v10893_v7, 16  ;;  %v10904_v32 = vshrl.u32 %v10893_v7, 16  ;;  %v4293_v29 = vrot.slane %v10893_v7, 5 }
 0x37c   : > { %v8369_v13 = vpop.f32.mrf.mxu1  ;;  %v4596_v36 = vrot.slane %v10893_v7, 6  ;;  %v3816_v47 = vadd.f32 %v7890_v26, %v3815_v55  ;;  %v4738_v25 = vrot.slane %v10893_v7, 2  ;;  %v5039_v34 = vrot.slane %v10893_v7, 3 }
 0x37d   : > { %v4152_v45 = vsel %vm1012_vm3, %v4150_v37, %v4151_v6  ;;  %v3887_v42 = vrot.slane %v10901_v52, 1  ;;  %v10922_v14 = vsel %vm4291_vm11, %v4292_v48, %v4293_v29  ;;  %v4880_v11 = vrot.slane %v10904_v32, 2  ;;  %v8746_v48 = vld [vmem:[%s12097_s2 + $0x80] sm:$0xff]  }
 0x37e   : > { %v3818_v38 = vpop.f32.mrf.mxu1  ;;  %8452 = vmatmul.mubr.msk.bf16.vlgmr.msra.gmra.mxu1 %vm3940_vm10, %v4152_v45  ;;  %v10927_v9 = vsel %vm613_vm0, %v4595_v50, %v4596_v36  ;;  %v4881_v5 = vrot.slane %v10901_v52, 3 }
 0x37f   : > { %v3819_v53 = vadd.f32 %v7893_v56, %v3818_v38  ;;  %v3888_v61 = vsel %vm414_vm2, %v3883_v23, %v3887_v42  ;;  %8455 = vmatprep.mubr.msk.bf16.mxu1 %vm9013_vm8, %v12235_v59  ;;  %8500 = vmatpush3.bf16.msra.mxu1 %v8740_v27  ;;  %v3891_v43 = vor.u32 %v10904_v32, %v3887_v42  ;;  %v8747_v23 = vld [vmem:[%s12097_s2] sm:$0xff]  }
 0x380   : > { %v8370_v63 = vpop.f32.mrf.mxu1  ;;  %8396 = vmatmul.mubr.msk.bf16.vlgmr.msra.gmra.mxu0 %vm3940_vm10, %v3888_v61  ;;  %8501 = vmatprep.subr.bf16.mxu1 %v12235_v59  ;;  %v10939_v15 = vor.u32 %v4881_v5, %v4880_v11  ;;  %v7902_v38 = vadd.f32 %v10876_v49, %v10874_v19  ;;  %v7905_v49 = vadd.f32 %v10880_v1, %v10878_v51 }
 0x381   : > { %v10941_v30 = vpack.c.bf16 %v3819_v53, %v3816_v47  ;;  %8399 = vmatprep.mubr.msk.bf16.mxu0 %vm9013_vm8, %v12235_v59  ;;  %8416 = vmatpush3.bf16.msra.mxu0 %v8741_v33 }
 0x382   : > { %v3823_v4 = vpop.f32.mrf.mxu1  ;;  %8417 = vmatprep.subr.bf16.mxu0 %v12235_v59 }
 0x383   : > { %v4153_v39 = vrot.slane %v10941_v30, 1  ;;  %v10954_v21 = vshll.u32 %v10941_v30, 16  ;;  %v10957_v22 = vshrl.u32 %v10941_v30, 16  ;;  %8502 = vmatpush3.bf16.msra.mxu1 %v8742_v35  ;;  %v4739_v3 = vrot.slane %v10941_v30, 2 }
 0x384   : > { %v8373_v28 = vpop.f32.mrf.mxu1  ;;  %8503 = vmatprep.subr.bf16.mxu1 %v12235_v59  ;;  %v4295_v57 = vrot.slane %v10941_v30, 5  ;;  %v5040_v17 = vrot.slane %v10941_v30, 3  ;;  %v4598_v44 = vrot.slane %v10941_v30, 6 }
 0x385   : > { %v4154_v58 = vsel %vm1012_vm3, %v4151_v6, %v4153_v39  ;;  %v3895_v8 = vrot.slane %v10954_v21, 1  ;;  %8418 = vmatpush3.bf16.msra.mxu0 %v8743_v18  ;;  %v10979_v55 = vsel %vm1908_vm4, %v4738_v25, %v4739_v3  ;;  %v4883_v37 = vrot.slane %v10957_v22, 2 }
 0x386   : > { %v3826_v26 = vpop.f32.mrf.mxu1  ;;  %8456 = vmatmul.mubr.msk.bf16.gmra.mxu1 %vm3940_vm10, %v4154_v58  ;;  %8419 = vmatprep.subr.bf16.mxu0 %v12235_v59  ;;  %v10982_v54 = vsel %vm4291_vm11, %v4293_v29, %v4295_v57  ;;  %v10985_v31 = vsel %vm2810_vm7, %v5039_v34, %v5040_v17  ;;  %v3824_v6 = vadd.f32 %v7896_v60, %v3823_v4  ;;  %v4884_v29 = vrot.slane %v10954_v21, 3 }
 0x387   : > { %v3827_v27 = vadd.f32 %v7899_v41, %v3826_v26  ;;  %v3896_v13 = vsel %vm414_vm2, %v3891_v43, %v3895_v8  ;;  %8459 = vmatprep.mubr.msk.bf16.mxu1 %vm9013_vm8, %v12235_v59  ;;  %8504 = vmatpush3.bf16.msra.mxu1 %v8744_v40  ;;  %v11000_v56 = vsel %vm613_vm0, %v4596_v36, %v4598_v44 }
 0x388   : > { %v8374_v50 = vpop.f32.mrf.mxu1  ;;  %8400 = vmatmul.mubr.msk.bf16.gmra.mxu0 %vm3940_vm10, %v3896_v13  ;;  %8505 = vmatprep.subr.bf16.mxu1 %v12235_v59  ;;  %v11009_v42 = vor.u32 %v4884_v29, %v4883_v37  ;;  %v3899_v18 = vor.u32 %v10957_v22, %v3895_v8 }
 0x389   : > { %v11002_v45 = vpack.c.bf16 %v3827_v27, %v3824_v6  ;;  %8403 = vmatprep.mubr.msk.bf16.mxu0 %vm9013_vm8, %v12235_v59  ;;  %8420 = vmatpush3.bf16.msra.mxu0 %v8745_v16 }
 0x38a   : > { %v3831_v33 = vpop.f32.mrf.mxu1  ;;  %8421 = vmatprep.subr.bf16.mxu0 %v12235_v59 }
 0x38b   : > { %v4155_v36 = vrot.slane %v11002_v45, 1  ;;  %v11016_v11 = vshll.u32 %v11002_v45, 16  ;;  %v11019_v5 = vshrl.u32 %v11002_v45, 16  ;;  %8506 = vmatpush3.bf16.msra.mxu1 %v8746_v48  ;;  %v4741_v53 = vrot.slane %v11002_v45, 2 }
 0x38c   : > { %v8377_v47 = vpop.f32.mrf.mxu1  ;;  %8555 = vmatprep.subr.bf16.mxu1 %v12235_v59  ;;  %v4297_v61 = vrot.slane %v11002_v45, 5  ;;  %v5042_v35 = vrot.slane %v11002_v45, 3  ;;  %v4600_v19 = vrot.slane %v11002_v45, 6  ;;  %v7911_v48 = vadd.f32 %v10886_v46, %v10884_v62 }
 0x38d   : > { %v4156_v63 = vsel %vm1012_vm3, %v4153_v39, %v4155_v36  ;;  %v3903_v60 = vrot.slane %v11016_v11, 1  ;;  %8422 = vmatpush3.bf16.msra.mxu0 %v8747_v23  ;;  %v11034_v25 = vsel %vm1908_vm4, %v4739_v3, %v4741_v53  ;;  %v4887_v1 = vrot.slane %v11019_v5, 2 }
 0x38e   : > { %v3834_v4 = vpop.f32.mrf.mxu1  ;;  %8460 = vmatmul.mubr.msk.bf16.gmra.mxu1 %vm3940_vm10, %v4156_v63  ;;  %8471 = vmatprep.subr.bf16.mxu0 %v12235_v59  ;;  %v11037_v40 = vsel %vm4291_vm11, %v4295_v57, %v4297_v61  ;;  %v11040_v51 = vsel %vm2810_vm7, %v5040_v17, %v5042_v35  ;;  %v3832_v39 = vadd.f32 %v7902_v38, %v3831_v33  ;;  %v4888_v17 = vrot.slane %v11016_v11, 3 }
 0x38f   : > { %v3835_v34 = vadd.f32 %v7905_v49, %v3834_v4  ;;  %v3904_v28 = vsel %vm414_vm2, %v3899_v18, %v3903_v60  ;;  %8463 = vmatprep.mubr.msk.bf16.mxu1 %vm9013_vm8, %v12235_v59  ;;  %v11048_v3 = vsel %vm613_vm0, %v4598_v44, %v4600_v19  ;;  %v11053_v57 = vsel %vm2452_vm6, %v10939_v15, %v11009_v42 }
 0x390   : > { %v8378_v41 = vpop.f32.mrf.mxu1  ;;  %8404 = vmatmul.mubr.msk.bf16.gmra.mxu0 %vm3940_vm10, %v3904_v28  ;;  %v4889_v8 = vor.u32 %v4888_v17, %v4887_v1  ;;  %v3907_v50 = vor.u32 %v11019_v5, %v3903_v60  ;;  %v4435_v60 = vrot.slane %v3878_v20, 5  ;;  %v4438_v4 = vrot.slane %v10904_v32, 5 }
 0x391   : > { %v11056_v58 = vpack.c.bf16 %v3835_v34, %v3832_v39  ;;  %8407 = vmatprep.mubr.msk.bf16.mxu0 %vm9013_vm8, %v12235_v59  ;;  %v4439_v1 = vrot.slane %v10901_v52, 6 }
 0x392   : > { %v3839_v43 = vpop.f32.mrf.mxu1 }
 0x393   : > { %v4157_v16 = vrot.slane %v11056_v58, 1  ;;  %v11062_v26 = vshll.u32 %v11056_v58, 16  ;;  %v11065_v44 = vshrl.u32 %v11056_v58, 16  ;;  %v4743_v15 = vrot.slane %v11056_v58, 2 }
 0x394   : > { %v8381_v37 = vpop.f32.mrf.mxu1  ;;  %v4299_v6 = vrot.slane %v11056_v58, 5  ;;  %v5044_v27 = vrot.slane %v11056_v58, 3  ;;  %v4602_v13 = vrot.slane %v11056_v58, 6  ;;  %v3840_v46 = vadd.f32 %v10882_v2, %v3839_v43 }
 0x395   : > { %v4158_v29 = vsel %vm1012_vm3, %v4155_v36, %v4157_v16  ;;  %v3911_v23 = vrot.slane %v11062_v26, 1  ;;  %v11078_v38 = vsel %vm1908_vm4, %v4741_v53, %v4743_v15  ;;  %v11096_v53 = vsel %vm2452_vm6, %v11009_v42, %v4889_v8 }
 0x396   : > { %v3842_v33 = vpop.f32.mrf.mxu1  ;;  %8464 = vmatmul.mubr.msk.bf16.gmra.mxu1 %vm3940_vm10, %v4158_v29  ;;  %v11081_v47 = vsel %vm4291_vm11, %v4297_v61, %v4299_v6  ;;  %v11084_v49 = vsel %vm2810_vm7, %v5042_v35, %v5044_v27  ;;  %v11087_v62 = vsel %vm613_vm0, %v4600_v19, %v4602_v13  ;;  %v4891_v61 = vrot.slane %v11065_v44, 2 }
 0x397   : > { %v3843_v36 = vadd.f32 %v7911_v48, %v3842_v33  ;;  %v3912_v63 = vsel %vm414_vm2, %v3907_v50, %v3911_v23  ;;  %8467 = vmatprep.mubr.msk.bf16.mxu1 %vm9013_vm8, %v12235_v59  ;;  %v4892_v35 = vrot.slane %v11062_v26, 3  ;;  %v3915_v48 = vor.u32 %v11065_v44, %v3911_v23 }
 0x398   : > { %v8382_v18 = vpop.f32.mrf.mxu1  ;;  %8408 = vmatmul.mubr.msk.bf16.gmra.mxu0 %vm3940_vm10, %v3912_v63 }
 0x399   : > { %v11100_v19 = vpack.c.bf16 %v3843_v36, %v3840_v46  ;;  %8411 = vmatprep.mubr.msk.bf16.mxu0 %vm9013_vm8, %v12235_v59  ;;  %v4893_v39 = vor.u32 %v4892_v35, %v4891_v61 }
 0x39a   : > { %v3847_v2 = vpop.f32.mrf.mxu1 }
 0x39b   : > { %v3848_v42 = vadd.f32 %v10888_v24, %v3847_v2  ;;  %v4455_v34 = vshrl.u32 %v11100_v19, 16  ;;  %v4458_v28 = vshll.u32 %v11100_v19, 16  ;;  %v4745_v41 = vrot.slane %v11100_v19, 2 }
 0x39c   : > { %v4301_v17 = vrot.slane %v11100_v19, 5  ;;  %v5046_v43 = vrot.slane %v11100_v19, 3  ;;  %v4604_v37 = vrot.slane %v11100_v19, 6  ;;  %v8385_v20 = vpop.f32.mrf.mxu1  ;;  %v11116_v32 = vsel %vm2452_vm6, %v4889_v8, %v4893_v39  ;;  %v8757_v19 = vld [vmem:[%s12097_s2 + $0xb8] sm:$0xff]  }
 0x39d   : > { %v3859_v52 = vpack.c.bf16 %v3848_v42, %v3848_v42  ;;  %v4436_v24 = vrot.slane %v3880_v12, 6  ;;  %v11122_v29 = vsel %vm1908_vm4, %v4743_v15, %v4745_v41  ;;  %v4895_v23 = vrot.slane %v4455_v34, 2 }
 0x39e   : > { %8468 = vmatmul.mubr.msk.bf16.gmra.mxu1 %vm3940_vm10, %v4157_v16  ;;  %v11126_v50 = vsel %vm4291_vm11, %v4299_v6, %v4301_v17  ;;  %v11129_v33 = vsel %vm2810_vm7, %v5044_v27, %v5046_v43  ;;  %v11132_v8 = vsel %vm613_vm0, %v4602_v13, %v4604_v37  ;;  %v3850_v46 = vpop.f32.mrf.mxu1  ;;  %v4440_v16 = vor.u32 %v4439_v1, %v4438_v4  ;;  %v8748_v4 = vld [vmem:[%s12097_s2 + $0xd8] sm:$0xff]  }
 0x39f   : > { %v4747_v36 = vrot.slane %v3859_v52, 2  ;;  %v4900_v12 = vshrl.u32 %v3859_v52, 16  ;;  %v4903_v63 = vshll.u32 %v3859_v52, 16  ;;  %v5048_v15 = vrot.slane %v3859_v52, 3  ;;  %8507 = vmatprep.mubr.msk.bf16.mxu1 %vm9013_vm8, %v12235_v59  ;;  %v8752_v52 = vld [vmem:[%s12097_s2 + $0xc8] sm:$0xff]  }
 0x3a0   : > { %8412 = vmatmul.mubr.msk.bf16.gmra.mxu0 %vm3940_vm10, %v3915_v48  ;;  %v8386_v6 = vpop.f32.mrf.mxu1  ;;  %v4896_v27 = vrot.slane %v4458_v28, 3  ;;  %v4437_v42 = vor.u32 %v4436_v24, %v4435_v60  ;;  %v4442_v20 = vrot.slane %v10957_v22, 5  ;;  %v8751_v22 = vld [vmem:[%s12097_s2 + $0x70] sm:$0xff]   ;;  %v4446_v48 = vrot.slane %v11019_v5, 5  ;;  %v8753_v46 = vld [vmem:[%s12097_s2 + $0x68] sm:$0xff]   ;;  %v8755_v5 = vld [vmem:[%s12097_s2 + $0x60] sm:$0xff]  }
 0x3a1   : > { %v4902_v13 = vrot.slane %v4900_v12, 2  ;;  %v4905_v18 = vrot.slane %v4903_v63, 3  ;;  %8423 = vmatprep.mubr.msk.bf16.mxu0 %vm9013_vm8, %v12235_v59  ;;  %v11144_v61 = vsel %vm1908_vm4, %v4745_v41, %v4747_v36  ;;  %v11147_v35 = vsel %vm2810_vm7, %v5046_v43, %v5048_v15  ;;  %v8749_v43 = vld [vmem:[%s12097_s2 + $0x78] sm:$0xff]  }
 0x3a2   : > { %v4897_v2 = vor.u32 %v4896_v27, %v4895_v23  ;;  %v4441_v37 = vsel %vm4434_vm12, %v4437_v42, %v4440_v16  ;;  %v4443_v41 = vrot.slane %v10954_v21, 6  ;;  %v4447_v24 = vrot.slane %v11016_v11, 6  ;;  %v8754_v23 = vld [vmem:[%s12097_s2 + $0xc0] sm:$0xff]  }
 0x3a3   : > { %v4906_v1 = vor.u32 %v4905_v18, %v4902_v13  ;;  %v4451_v12 = vrot.slane %v11062_v26, 6  ;;  %v4457_v26 = vrot.slane %v4455_v34, 5  ;;  %v8760_v34 = vld [vmem:[%s12097_s2 + $0x108] sm:$0xff]  }
 0x3a4   : > { %v11153_v17 = vsel %vm2452_vm6, %v4893_v39, %v4897_v2  ;;  %v8750_v39 = vld [vmem:[%s12097_s2 + $0xd0] sm:$0xff]   ;;  %v4444_v21 = vor.u32 %v4443_v41, %v4442_v20  ;;  %v4448_v11 = vor.u32 %v4447_v24, %v4446_v48 }
 0x3a5   : > { %v11162_v60 = vsel %vm2452_vm6, %v4897_v2, %v4906_v1 }
 0x3a6   : > { %8508 = vmatmul.mubr.msk.bf16.vlgmr.msra.gmra.mxu1 %vm3940_vm10, %v4441_v37  ;;  %v4449_v36 = vsel %vm4434_vm12, %v4444_v21, %v4448_v11 }
 0x3a7   : > { %8511 = vmatprep.mubr.msk.bf16.mxu1 %vm9013_vm8, %v12235_v59  ;;  %8556 = vmatpush3.bf16.msra.mxu1 %v8748_v4 }
 0x3a8   : > { %8424 = vmatmul.mubr.msk.bf16.vlgmr.msra.gmra.mxu0 %vm3940_vm10, %v10890_v10  ;;  %8557 = vmatprep.subr.bf16.mxu1 %v12235_v59  ;;  %v4445_v10 = vsel %vm4434_vm12, %v4440_v16, %v4444_v21 }
 0x3a9   : > { %8427 = vmatprep.mubr.msk.bf16.mxu0 %vm9013_vm8, %v12235_v59  ;;  %8472 = vmatpush3.bf16.msra.mxu0 %v8749_v43 }
 0x3aa   : > { %8473 = vmatprep.subr.bf16.mxu0 %v12235_v59 }
 0x3ab   : > { %8558 = vmatpush3.bf16.msra.mxu1 %v8750_v39 }
 0x3ac   : > { %8559 = vmatprep.subr.bf16.mxu1 %v12235_v59 }
 0x3ad   : > { %8474 = vmatpush3.bf16.msra.mxu0 %v8751_v22 }
 0x3ae   : > { %8512 = vmatmul.mubr.msk.bf16.gmra.mxu1 %vm3940_vm10, %v4445_v10  ;;  %8475 = vmatprep.subr.bf16.mxu0 %v12235_v59 }
 0x3af   : > { %8515 = vmatprep.mubr.msk.bf16.mxu1 %vm9013_vm8, %v12235_v59  ;;  %8560 = vmatpush3.bf16.msra.mxu1 %v8752_v52 }
 0x3b0   : > { %8428 = vmatmul.mubr.msk.bf16.gmra.mxu0 %vm3940_vm10, %v10893_v7  ;;  %8561 = vmatprep.subr.bf16.mxu1 %v12235_v59  ;;  %v4450_v7 = vrot.slane %v11065_v44, 5  ;;  %v4460_v44 = vrot.slane %v4458_v28, 6  ;;  %v8762_v28 = vld [vmem:[%s12097_s2 + $0x100] sm:$0xff]  }
 0x3b1   : > { %8431 = vmatprep.mubr.msk.bf16.mxu0 %vm9013_vm8, %v12235_v59  ;;  %8476 = vmatpush3.bf16.msra.mxu0 %v8753_v46 }
 0x3b2   : > { %8477 = vmatprep.subr.bf16.mxu0 %v12235_v59  ;;  %v4452_v63 = vor.u32 %v4451_v12, %v4450_v7 }
 0x3b3   : > { %8562 = vmatpush3.bf16.msra.mxu1 %v8754_v23 }
 0x3b4   : > { %8611 = vmatprep.subr.bf16.mxu1 %v12235_v59  ;;  %v4453_v15 = vsel %vm4434_vm12, %v4448_v11, %v4452_v63 }
 0x3b5   : > { %8478 = vmatpush3.bf16.msra.mxu0 %v8755_v5 }
 0x3b6   : > { %8516 = vmatmul.mubr.msk.bf16.gmra.mxu1 %vm3940_vm10, %v4449_v36  ;;  %8527 = vmatprep.subr.bf16.mxu0 %v12235_v59 }
 0x3b7   : > { %8519 = vmatprep.mubr.msk.bf16.mxu1 %vm9013_vm8, %v12235_v59 }
 0x3b8   : > { %8432 = vmatmul.mubr.msk.bf16.gmra.mxu0 %vm3940_vm10, %v10941_v30  ;;  %v4461_v30 = vor.u32 %v4460_v44, %v4457_v26 }
 0x3b9   : > { %8435 = vmatprep.mubr.msk.bf16.mxu0 %vm9013_vm8, %v12235_v59 }
 0x3ba   : > { %v4462_v16 = vsel %vm4434_vm12, %v4452_v63, %v4461_v30 }
 0x3be   : > { %8520 = vmatmul.mubr.msk.bf16.gmra.mxu1 %vm3940_vm10, %v4453_v15 }
 0x3bf   : > { %8523 = vmatprep.mubr.msk.bf16.mxu1 %vm9013_vm8, %v12235_v59 }
 0x3c0   : > { %8436 = vmatmul.mubr.msk.bf16.gmra.mxu0 %vm3940_vm10, %v11002_v45  ;;  %v8756_v45 = vld [vmem:[%s12097_s2 + $0x118] sm:$0xff]  }
 0x3c1   : > { %8439 = vmatprep.mubr.msk.bf16.mxu0 %vm9013_vm8, %v12235_v59 }
 0x3c6   : > { %8524 = vmatmul.mubr.msk.bf16.gmra.mxu1 %vm3940_vm10, %v4462_v16 }
 0x3c7   : > { %8563 = vmatprep.mubr.msk.bf16.mxu1 %vm9013_vm8, %v12235_v59 }
 0x3c8   : > { %8440 = vmatmul.mubr.msk.bf16.gmra.mxu0 %vm3940_vm10, %v11056_v58  ;;  %v8758_v58 = vld [vmem:[%s12097_s2 + $0x110] sm:$0xff]  }
 0x3c9   : > { %8479 = vmatprep.mubr.msk.bf16.mxu0 %vm9013_vm8, %v12235_v59 }
 0x3ce   : > { %8564 = vmatmul.mubr.msk.bf16.vlgmr.msra.gmra.mxu1 %vm3940_vm10, %v10979_v55  ;;  %v8759_v55 = vld [vmem:[%s12097_s2 + $0xb0] sm:$0xff]  }
 0x3cf   : > { %8567 = vmatprep.mubr.msk.bf16.mxu1 %vm9013_vm8, %v12235_v59  ;;  %8612 = vmatpush3.bf16.msra.mxu1 %v8756_v45 }
 0x3d0   : > { %8480 = vmatmul.mubr.msk.bf16.vlgmr.msra.gmra.mxu0 %vm3940_vm10, %v10922_v14  ;;  %8613 = vmatprep.subr.bf16.mxu1 %v12235_v59  ;;  %v8761_v14 = vld [vmem:[%s12097_s2 + $0xa8] sm:$0xff]  }
 0x3d1   : > { %8483 = vmatprep.mubr.msk.bf16.mxu0 %vm9013_vm8, %v12235_v59  ;;  %8528 = vmatpush3.bf16.msra.mxu0 %v8757_v19 }
 0x3d2   : > { %8529 = vmatprep.subr.bf16.mxu0 %v12235_v59 }
 0x3d3   : > { %8614 = vmatpush3.bf16.msra.mxu1 %v8758_v58 }
 0x3d4   : > { %8615 = vmatprep.subr.bf16.mxu1 %v12235_v59 }
 0x3d5   : > { %8530 = vmatpush3.bf16.msra.mxu0 %v8759_v55 }
 0x3d6   : > { %8568 = vmatmul.mubr.msk.bf16.gmra.mxu1 %vm3940_vm10, %v11034_v25  ;;  %8531 = vmatprep.subr.bf16.mxu0 %v12235_v59  ;;  %v8763_v25 = vld [vmem:[%s12097_s2 + $0xa0] sm:$0xff]  }
 0x3d7   : > { %8571 = vmatprep.mubr.msk.bf16.mxu1 %vm9013_vm8, %v12235_v59  ;;  %8616 = vmatpush3.bf16.msra.mxu1 %v8760_v34 }
 0x3d8   : > { %8484 = vmatmul.mubr.msk.bf16.gmra.mxu0 %vm3940_vm10, %v10982_v54  ;;  %8617 = vmatprep.subr.bf16.mxu1 %v12235_v59  ;;  %v8764_v54 = vld [vmem:[%s12097_s2 + $0xf8] sm:$0xff]  }
 0x3d9   : > { %8487 = vmatprep.mubr.msk.bf16.mxu0 %vm9013_vm8, %v12235_v59  ;;  %8532 = vmatpush3.bf16.msra.mxu0 %v8761_v14 }
 0x3da   : > { %8533 = vmatprep.subr.bf16.mxu0 %v12235_v59 }
 0x3db   : > { %8618 = vmatpush3.bf16.msra.mxu1 %v8762_v28 }
 0x3dd   : > { %8534 = vmatpush3.bf16.msra.mxu0 %v8763_v25 }
 0x3de   : > { %8572 = vmatmul.mubr.msk.bf16.gmra.mxu1 %vm3940_vm10, %v11078_v38  ;;  %8583 = vmatprep.subr.bf16.mxu0 %v12235_v59 }
 0x3df   : > { %8575 = vmatprep.mubr.msk.bf16.mxu1 %vm9013_vm8, %v12235_v59 }
 0x3e0   : > { %8488 = vmatmul.mubr.msk.bf16.gmra.mxu0 %vm3940_vm10, %v11037_v40  ;;  %v8765_v40 = vld [vmem:[%s12097_s2 + $0xf0] sm:$0xff]  }
 0x3e1   : > { %8491 = vmatprep.mubr.msk.bf16.mxu0 %vm9013_vm8, %v12235_v59 }
 0x3e6   : > { %8576 = vmatmul.mubr.msk.bf16.gmra.mxu1 %vm3940_vm10, %v11122_v29 }
 0x3e7   : > { %8579 = vmatprep.mubr.msk.bf16.mxu1 %vm9013_vm8, %v12235_v59 }
 0x3e8   : > { %8492 = vmatmul.mubr.msk.bf16.gmra.mxu0 %vm3940_vm10, %v11081_v47 }
 0x3e9   : > { %8495 = vmatprep.mubr.msk.bf16.mxu0 %vm9013_vm8, %v12235_v59 }
 0x3ee   : > { %8580 = vmatmul.mubr.msk.bf16.gmra.mxu1 %vm3940_vm10, %v11144_v61 }
 0x3ef   : > { %8619 = vmatprep.mubr.msk.bf16.mxu1 %vm9013_vm8, %v12235_v59 }
 0x3f0   : > { %8496 = vmatmul.mubr.msk.bf16.gmra.mxu0 %vm3940_vm10, %v11126_v50 }
 0x3f1   : > { %8535 = vmatprep.mubr.msk.bf16.mxu0 %vm9013_vm8, %v12235_v59 }
 0x3f6   : > { %8620 = vmatmul.mubr.msk.bf16.vlgmr.msra.gmra.mxu1 %vm3940_vm10, %v10985_v31  ;;  %v8766_v31 = vld [vmem:[%s12097_s2 + $0xe8] sm:$0xff]  }
 0x3f7   : > { %8623 = vmatprep.mubr.msk.bf16.mxu1 %vm9013_vm8, %v12235_v59 }
 0x3f8   : > { %8536 = vmatmul.mubr.msk.bf16.vlgmr.msra.gmra.mxu0 %vm3940_vm10, %v10927_v9  ;;  %v8767_v9 = vld [vmem:[%s12097_s2 + $0xe0] sm:$0xff]  }
 0x3f9   : > { %8539 = vmatprep.mubr.msk.bf16.mxu0 %vm9013_vm8, %v12235_v59  ;;  %8584 = vmatpush3.bf16.msra.mxu0 %v8764_v54 }
 0x3fa   : > { %8585 = vmatprep.subr.bf16.mxu0 %v12235_v59 }
 0x3fd   : > { %8586 = vmatpush3.bf16.msra.mxu0 %v8765_v40 }
 0x3fe   : > { %8624 = vmatmul.mubr.msk.bf16.gmra.mxu1 %vm3940_vm10, %v11040_v51  ;;  %8587 = vmatprep.subr.bf16.mxu0 %v12235_v59 }
 0x3ff   : > { %8627 = vmatprep.mubr.msk.bf16.mxu1 %vm9013_vm8, %v12235_v59 }
 0x400   : > { %8540 = vmatmul.mubr.msk.bf16.gmra.mxu0 %vm3940_vm10, %v11000_v56 }
 0x401   : > { %8543 = vmatprep.mubr.msk.bf16.mxu0 %vm9013_vm8, %v12235_v59  ;;  %8588 = vmatpush3.bf16.msra.mxu0 %v8766_v31 }
 0x402   : > { %8589 = vmatprep.subr.bf16.mxu0 %v12235_v59 }
 0x405   : > { %8590 = vmatpush3.bf16.msra.mxu0 %v8767_v9 }
 0x406   : > { %8628 = vmatmul.mubr.msk.bf16.gmra.mxu1 %vm3940_vm10, %v11084_v49  ;;  %8639 = vmatprep.subr.bf16.mxu0 %v12235_v59 }
 0x407   : > { %8631 = vmatprep.mubr.msk.bf16.mxu1 %vm9013_vm8, %v12235_v59 }
 0x408   : > { %8544 = vmatmul.mubr.msk.bf16.gmra.mxu0 %vm3940_vm10, %v11048_v3 }
 0x409   : > { %8547 = vmatprep.mubr.msk.bf16.mxu0 %vm9013_vm8, %v12235_v59 }
 0x40e   : > { %8632 = vmatmul.mubr.msk.bf16.gmra.mxu1 %vm3940_vm10, %v11129_v33 }
 0x40f   : > { %8635 = vmatprep.mubr.msk.bf16.mxu1 %vm9013_vm8, %v12235_v59 }
 0x410   : > { %8548 = vmatmul.mubr.msk.bf16.gmra.mxu0 %vm3940_vm10, %v11087_v62 }
 0x411   : > { %8551 = vmatprep.mubr.msk.bf16.mxu0 %vm9013_vm8, %v12235_v59 }
 0x416   : > { %8636 = vmatmul.mubr.msk.bf16.gmra.mxu1 %vm3940_vm10, %v11147_v35 }
 0x418   : > { %8552 = vmatmul.mubr.msk.bf16.gmra.mxu0 %vm3940_vm10, %v11132_v8 }
 0x419   : > { %8591 = vmatprep.mubr.msk.bf16.mxu0 %vm9013_vm8, %v12235_v59 }
 0x420   : > { %8592 = vmatmul.mubr.msk.bf16.vlgmr.msra.gmra.mxu0 %vm3940_vm10, %v11053_v57 }
 0x421   : > { %8595 = vmatprep.mubr.msk.bf16.mxu0 %vm9013_vm8, %v12235_v59 }
 0x428   : > { %8596 = vmatmul.mubr.msk.bf16.gmra.mxu0 %vm3940_vm10, %v11096_v53 }
 0x429   : > { %8599 = vmatprep.mubr.msk.bf16.mxu0 %vm9013_vm8, %v12235_v59 }
 0x430   : > { %8600 = vmatmul.mubr.msk.bf16.gmra.mxu0 %vm3940_vm10, %v11116_v32 }
 0x431   : > { %8603 = vmatprep.mubr.msk.bf16.mxu0 %vm9013_vm8, %v12235_v59 }
 0x438   : > { %8604 = vmatmul.mubr.msk.bf16.gmra.mxu0 %vm3940_vm10, %v11153_v17 }
 0x439   : > { %8607 = vmatprep.mubr.msk.bf16.mxu0 %vm9013_vm8, %v12235_v59 }
 0x43e   : > { %v4232_v56 = vpop.f32.mrf.mxu1 }
 0x440   : > { %v3990_v51 = vpop.f32.mrf.mxu0  ;;  %v8453_v3 = vpop.f32.mrf.mxu1  ;;  %8608 = vmatmul.mubr.msk.bf16.gmra.mxu0 %vm3940_vm10, %v11162_v60 }
 0x441   : > { %8649 = vmatprep.mubr.msk.bf16.mxu0 %vm9013_vm8, %v12235_v59 }
 0x442   : > { %v8397_v57 = vpop.f32.mrf.mxu0  ;;  %v4235_v38 = vpop.f32.mrf.mxu1 }
 0x444   : > { %v3993_v47 = vpop.f32.mrf.mxu0  ;;  %v8454_v49 = vpop.f32.mrf.mxu1 }
 0x446   : > { %v8398_v62 = vpop.f32.mrf.mxu0  ;;  %v4240_v53 = vpop.f32.mrf.mxu1 }
 0x448   : > { %v3998_v32 = vpop.f32.mrf.mxu0  ;;  %v8457_v29 = vpop.f32.mrf.mxu1 }
 0x44a   : > { %v8401_v50 = vpop.f32.mrf.mxu0  ;;  %v4243_v33 = vpop.f32.mrf.mxu1 }
 0x44c   : > { %v4001_v8 = vpop.f32.mrf.mxu0  ;;  %v8458_v6 = vpop.f32.mrf.mxu1 }
 0x44e   : > { %v8402_v27 = vpop.f32.mrf.mxu0  ;;  %v4248_v13 = vpop.f32.mrf.mxu1 }
 0x450   : > { %v4006_v18 = vpop.f32.mrf.mxu0  ;;  %v8461_v61 = vpop.f32.mrf.mxu1 }
 0x452   : > { %v8405_v35 = vpop.f32.mrf.mxu0  ;;  %v4251_v2 = vpop.f32.mrf.mxu1 }
 0x454   : > { %v4009_v42 = vpop.f32.mrf.mxu0  ;;  %v8462_v4 = vpop.f32.mrf.mxu1 }
 0x456   : > { %v8406_v1 = vpop.f32.mrf.mxu0  ;;  %v4256_v17 = vpop.f32.mrf.mxu1 }
 0x458   : > { %v4014_v37 = vpop.f32.mrf.mxu0  ;;  %v8465_v20 = vpop.f32.mrf.mxu1 }
 0x45a   : > { %v8409_v41 = vpop.f32.mrf.mxu0  ;;  %v4259_v43 = vpop.f32.mrf.mxu1 }
 0x45c   : > { %v4017_v60 = vpop.f32.mrf.mxu0  ;;  %v8466_v39 = vpop.f32.mrf.mxu1 }
 0x45e   : > { %v8410_v21 = vpop.f32.mrf.mxu0  ;;  %v4264_v22 = vpop.f32.mrf.mxu1 }
 0x460   : > { %v4022_v52 = vpop.f32.mrf.mxu0  ;;  %v8469_v10 = vpop.f32.mrf.mxu1 }
 0x462   : > { %v8413_v48 = vpop.f32.mrf.mxu0  ;;  %v11382_v24 = vpop.f32.mrf.mxu1 }
 0x464   : > { %v4025_v46 = vpop.f32.mrf.mxu0  ;;  %v8470_v23 = vpop.f32.mrf.mxu1 }
 0x466   : > { %v8414_v11 = vpop.f32.mrf.mxu0  ;;  %v11384_v5 = vpop.f32.mrf.mxu1 }
 0x468   : > { %v4097_v36 = vpop.f32.mrf.mxu0  ;;  %v8509_v7 = vpop.f32.mrf.mxu1 }
 0x469   : > { %v4098_v12 = vadd.f32 %v4097_v36, %v3990_v51 }
 0x46a   : > { %v8425_v63 = vpop.f32.mrf.mxu0  ;;  %v11386_v15 = vpop.f32.mrf.mxu1 }
 0x46b   : > { %v4271_v26 = vadd.f32 %v4232_v56, %v4098_v12 }
 0x46c   : > { %v4100_v44 = vpop.f32.mrf.mxu0  ;;  %v8510_v30 = vpop.f32.mrf.mxu1 }
 0x46d   : > { %v4101_v16 = vadd.f32 %v4100_v44, %v3993_v47 }
 0x46e   : > { %v8426_v45 = vpop.f32.mrf.mxu0  ;;  %v11388_v19 = vpop.f32.mrf.mxu1 }
 0x46f   : > { %v4272_v58 = vadd.f32 %v4235_v38, %v4101_v16 }
 0x470   : > { %v4105_v55 = vpop.f32.mrf.mxu0  ;;  %v8513_v34 = vpop.f32.mrf.mxu1 }
 0x471   : > { %v4106_v14 = vadd.f32 %v4105_v55, %v3998_v32 }
 0x472   : > { %v8429_v28 = vpop.f32.mrf.mxu0  ;;  %v11390_v25 = vpop.f32.mrf.mxu1 }
 0x473   : > { %v4273_v54 = vadd.f32 %v4240_v53, %v4106_v14 }
 0x474   : > { %v4108_v40 = vpop.f32.mrf.mxu0  ;;  %v8514_v31 = vpop.f32.mrf.mxu1 }
 0x475   : > { %v4109_v9 = vadd.f32 %v4108_v40, %v4001_v8 }
 0x476   : > { %v8430_v51 = vpop.f32.mrf.mxu0  ;;  %v11392_v3 = vpop.f32.mrf.mxu1 }
 0x477   : > { %v4274_v56 = vadd.f32 %v4243_v33, %v4109_v9 }
 0x478   : > { %v4113_v57 = vpop.f32.mrf.mxu0  ;;  %v8517_v47 = vpop.f32.mrf.mxu1 }
 0x479   : > { %v4114_v49 = vadd.f32 %v4113_v57, %v4006_v18 }
 0x47a   : > { %v8433_v62 = vpop.f32.mrf.mxu0  ;;  %v11394_v29 = vpop.f32.mrf.mxu1 }
 0x47b   : > { %v4275_v38 = vadd.f32 %v4248_v13, %v4114_v49 }
 0x47c   : > { %v4116_v50 = vpop.f32.mrf.mxu0  ;;  %v8518_v32 = vpop.f32.mrf.mxu1 }
 0x47d   : > { %v4117_v6 = vadd.f32 %v4116_v50, %v4009_v42 }
 0x47e   : > { %v8434_v27 = vpop.f32.mrf.mxu0  ;;  %v11396_v61 = vpop.f32.mrf.mxu1 }
 0x47f   : > { %v4276_v53 = vadd.f32 %v4251_v2, %v4117_v6 }
 0x480   : > { %v4121_v35 = vpop.f32.mrf.mxu0  ;;  %v8521_v8 = vpop.f32.mrf.mxu1 }
 0x481   : > { %v4122_v4 = vadd.f32 %v4121_v35, %v4014_v37 }
 0x482   : > { %v8437_v1 = vpop.f32.mrf.mxu0  ;;  %v11398_v20 = vpop.f32.mrf.mxu1 }
 0x483   : > { %v4277_v33 = vadd.f32 %v4256_v17, %v4122_v4 }
 0x484   : > { %v4124_v41 = vpop.f32.mrf.mxu0  ;;  %v8522_v18 = vpop.f32.mrf.mxu1 }
 0x485   : > { %v4125_v39 = vadd.f32 %v4124_v41, %v4017_v60 }
 0x486   : > { %v8438_v21 = vpop.f32.mrf.mxu0  ;;  %v11400_v10 = vpop.f32.mrf.mxu1 }
 0x487   : > { %v4278_v13 = vadd.f32 %v4259_v43, %v4125_v39 }
 0x488   : > { %v4129_v48 = vpop.f32.mrf.mxu0  ;;  %v8525_v42 = vpop.f32.mrf.mxu1 }
 0x489   : > { %v4130_v23 = vadd.f32 %v4129_v48, %v4022_v52 }
 0x48a   : > { %v8441_v11 = vpop.f32.mrf.mxu0  ;;  %v11402_v36 = vpop.f32.mrf.mxu1 }
 0x48b   : > { %v4279_v2 = vadd.f32 %v4264_v22, %v4130_v23 }
 0x48c   : > { %v4132_v7 = vpop.f32.mrf.mxu0  ;;  %v8526_v37 = vpop.f32.mrf.mxu1 }
 0x48d   : > { %v4133_v12 = vadd.f32 %v4132_v7, %v4025_v46 }
 0x48e   : > { %v8442_v63 = vpop.f32.mrf.mxu0  ;;  %v11404_v44 = vpop.f32.mrf.mxu1 }
 0x48f   : > { %v4280_v17 = vadd.f32 %v11382_v24, %v4133_v12 }
 0x490   : > { %v4376_v60 = vpop.f32.mrf.mxu0  ;;  %v8565_v30 = vpop.f32.mrf.mxu1 }
 0x491   : > { %v4415_v16 = vadd.f32 %v4376_v60, %v4271_v26 }
 0x492   : > { %v8481_v45 = vpop.f32.mrf.mxu0  ;;  %v11407_v43 = vpop.f32.mrf.mxu1 }
 0x493   : > { %v4575_v52 = vadd.f32 %v11384_v5, %v4415_v16 }
 0x494   : > { %v4379_v55 = vpop.f32.mrf.mxu0  ;;  %v8566_v34 = vpop.f32.mrf.mxu1 }
 0x495   : > { %v4416_v14 = vadd.f32 %v4379_v55, %v4272_v58 }
 0x496   : > { %v8482_v22 = vpop.f32.mrf.mxu0  ;;  %v11410_v28 = vpop.f32.mrf.mxu1 }
 0x497   : > { %v4576_v46 = vadd.f32 %v11386_v15, %v4416_v14 }
 0x498   : > { %v4384_v40 = vpop.f32.mrf.mxu0  ;;  %v8569_v31 = vpop.f32.mrf.mxu1 }
 0x499   : > { %v4417_v9 = vadd.f32 %v4384_v40, %v4273_v54 }
 0x49a   : > { %v8485_v24 = vpop.f32.mrf.mxu0  ;;  %v11413_v51 = vpop.f32.mrf.mxu1 }
 0x49b   : > { %v11416_v26 = vadd.f32 %v11388_v19, %v4417_v9 }
 0x49c   : > { %v4387_v57 = vpop.f32.mrf.mxu0  ;;  %v8570_v47 = vpop.f32.mrf.mxu1 }
 0x49d   : > { %v4418_v5 = vadd.f32 %v4387_v57, %v4274_v56 }
 0x49e   : > { %v8486_v49 = vpop.f32.mrf.mxu0  ;;  %v11418_v62 = vpop.f32.mrf.mxu1 }
 0x49f   : > { %v11421_v58 = vadd.f32 %v11390_v25, %v4418_v5  ;;  %v8797_v49 = vld [vmem:[%s12098_s3 + $0xd4] ss:$8 sps:$4 sm:$0xff]  }
 0x4a0   : > { %v4392_v50 = vpop.f32.mrf.mxu0  ;;  %v8573_v15 = vpop.f32.mrf.mxu1 }
 0x4a1   : > { %v4419_v32 = vadd.f32 %v4392_v50, %v4275_v38 }
 0x4a2   : > { %v8489_v6 = vpop.f32.mrf.mxu0  ;;  %v11423_v54 = vpop.f32.mrf.mxu1 }
 0x4a3   : > { %v11426_v27 = vadd.f32 %v11392_v3, %v4419_v32 }
 0x4a4   : > { %v4395_v19 = vpop.f32.mrf.mxu0  ;;  %v8574_v35 = vpop.f32.mrf.mxu1 }
 0x4a5   : > { %v4420_v8 = vadd.f32 %v4395_v19, %v4276_v53  ;;  %v8795_v19 = vld [vmem:[%s12098_s3 + $0xd0] ss:$8 sps:$4 sm:$0xff]  }
 0x4a6   : > { %v8490_v4 = vpop.f32.mrf.mxu0  ;;  %v11428_v56 = vpop.f32.mrf.mxu1 }
 0x4a7   : > { %v11431_v1 = vadd.f32 %v11394_v29, %v4420_v8 }
 0x4a8   : > { %v4400_v25 = vpop.f32.mrf.mxu0  ;;  %v8577_v41 = vpop.f32.mrf.mxu1 }
 0x4a9   : > { %v4421_v18 = vadd.f32 %v4400_v25, %v4277_v33 }
 0x4aa   : > { %v8493_v39 = vpop.f32.mrf.mxu0  ;;  %v11433_v38 = vpop.f32.mrf.mxu1 }
 0x4ab   : > { %v11436_v21 = vadd.f32 %v11396_v61, %v4421_v18  ;;  %v8801_v18 = vld [vmem:[%s12098_s3 + $0xc0] ss:$8 sps:$4 sm:$0xff]  }
 0x4ac   : > { %v4403_v3 = vpop.f32.mrf.mxu0  ;;  %v8578_v48 = vpop.f32.mrf.mxu1 }
 0x4ad   : > { %v4422_v42 = vadd.f32 %v4403_v3, %v4278_v13 }
 0x4ae   : > { %v8494_v23 = vpop.f32.mrf.mxu0  ;;  %v11438_v53 = vpop.f32.mrf.mxu1 }
 0x4af   : > { %v11441_v11 = vadd.f32 %v11398_v20, %v4422_v42 }
 0x4b0   : > { %v4408_v29 = vpop.f32.mrf.mxu0  ;;  %v8581_v7 = vpop.f32.mrf.mxu1 }
 0x4b1   : > { %v4423_v37 = vadd.f32 %v4408_v29, %v4279_v2 }
 0x4b2   : > { %v8497_v12 = vpop.f32.mrf.mxu0  ;;  %v11443_v33 = vpop.f32.mrf.mxu1 }
 0x4b3   : > { %v11446_v63 = vadd.f32 %v11400_v10, %v4423_v37 }
 0x4b4   : > { %v4411_v61 = vpop.f32.mrf.mxu0  ;;  %v8582_v60 = vpop.f32.mrf.mxu1 }
 0x4b5   : > { %v4424_v30 = vadd.f32 %v4411_v61, %v4280_v17  ;;  %v8783_v17 = vld [vmem:[%s12098_s3 + $0xf0] ss:$8 sps:$4 sm:$0xff]  }
 0x4b6   : > { %v8498_v16 = vpop.f32.mrf.mxu0  ;;  %v11448_v13 = vpop.f32.mrf.mxu1 }
 0x4b7   : > { %v11451_v45 = vadd.f32 %v11402_v36, %v4424_v30  ;;  %v8785_v36 = vld [vmem:[%s12098_s3 + $0xf4] ss:$8 sps:$4 sm:$0xff]  }
 0x4b8   : > { %v4679_v20 = vpop.f32.mrf.mxu0  ;;  %v8621_v55 = vpop.f32.mrf.mxu1  ;;  %5505 = vmatprep.subr.bf16.mxu1 %v8785_v36 }
 0x4b9   : > { %v4718_v34 = vadd.f32 %v4679_v20, %v4575_v52  ;;  %v8791_v52 = vld [vmem:[%s12098_s3 + $0xe4] ss:$8 sps:$4 sm:$0xff]   ;;  %5506 = vmatpush1.bf16.msra.mxu1 %v8783_v17 }
 0x4ba   : > { %v8537_v14 = vpop.f32.mrf.mxu0  ;;  %v11453_v2 = vpop.f32.mrf.mxu1  ;;  %5507 = vmatprep.subr.bf16.mxu1 %v8791_v52 }
 0x4bb   : > { %v11456_v22 = vadd.f32 %v11404_v44, %v4718_v34 }
 0x4bc   : > { %v4682_v10 = vpop.f32.mrf.mxu0  ;;  %v8622_v40 = vpop.f32.mrf.mxu1 }
 0x4bd   : > { %v4719_v31 = vadd.f32 %v4682_v10, %v4576_v46  ;;  %v8789_v46 = vld [vmem:[%s12098_s3 + $0xe0] ss:$8 sps:$4 sm:$0xff]  }
 0x4be   : > { %v8538_v9 = vpop.f32.mrf.mxu0  ;;  %v11464_v24 = vpop.f32.mrf.mxu1  ;;  %5508 = vmatpush1.bf16.msra.mxu1 %v8789_v46 }
 0x4bf   : > { %v11470_v44 = vadd.f32 %v11407_v43, %v4719_v31  ;;  %5509 = vmatprep.subr.bf16.mxu1 %v8797_v49 }
 0x4c0   : > { %v4687_v57 = vpop.f32.mrf.mxu0  ;;  %v8625_v47 = vpop.f32.mrf.mxu1 }
 0x4c1   : > { %v4720_v5 = vadd.f32 %v4687_v57, %v11416_v26  ;;  %v8803_v26 = vld [vmem:[%s12098_s3 + $0xc4] ss:$8 sps:$4 sm:$0xff]  }
 0x4c2   : > { %v8541_v50 = vpop.f32.mrf.mxu0  ;;  %v11479_v15 = vpop.f32.mrf.mxu1  ;;  %5510 = vmatpush1.bf16.msra.mxu1 %v8795_v19 }
 0x4c3   : > { %v4863_v43 = vadd.f32 %v11410_v28, %v4720_v5  ;;  %5511 = vmatprep.subr.bf16.mxu1 %v8803_v26 }
 0x4c4   : > { %v4690_v32 = vpop.f32.mrf.mxu0  ;;  %v8626_v6 = vpop.f32.mrf.mxu1 }
 0x4c5   : > { %v4721_v35 = vadd.f32 %v4690_v32, %v11421_v58 }
 0x4c6   : > { %v8542_v8 = vpop.f32.mrf.mxu0  ;;  %v11489_v4 = vpop.f32.mrf.mxu1  ;;  %5512 = vmatpush1.bf16.msra.mxu1 %v8801_v18 }
 0x4c7   : > { %v4864_v25 = vadd.f32 %v11413_v51, %v4721_v35 }
 0x4c8   : > { %v4695_v28 = vpop.f32.mrf.mxu0  ;;  %v8629_v41 = vpop.f32.mrf.mxu1 }
 0x4c9   : > { %v4722_v39 = vadd.f32 %v4695_v28, %v11426_v27 }
 0x4ca   : > { %v8545_v58 = vpop.f32.mrf.mxu0  ;;  %v11496_v3 = vpop.f32.mrf.mxu1 }
 0x4cb   : > { %v4865_v48 = vadd.f32 %v11418_v62, %v4722_v39 }
 0x4cc   : > { %v4698_v42 = vpop.f32.mrf.mxu0  ;;  %v8630_v23 = vpop.f32.mrf.mxu1 }
 0x4cd   : > { %v4723_v51 = vadd.f32 %v4698_v42, %v11431_v1 }
 0x4ce   : > { %v8546_v29 = vpop.f32.mrf.mxu0  ;;  %v11500_v7 = vpop.f32.mrf.mxu1 }
 0x4cf   : > { %v4866_v37 = vadd.f32 %v11423_v54, %v4723_v51 }
 0x4d0   : > { %v4703_v12 = vpop.f32.mrf.mxu0  ;;  %v8633_v61 = vpop.f32.mrf.mxu1 }
 0x4d1   : > { %v4724_v27 = vadd.f32 %v4703_v12, %v11436_v21 }
 0x4d2   : > { %v8549_v60 = vpop.f32.mrf.mxu0  ;;  %v11504_v30 = vpop.f32.mrf.mxu1 }
 0x4d3   : > { %v11507_v16 = vadd.f32 %v11428_v56, %v4724_v27 }
 0x4d4   : > { %v4706_v62 = vpop.f32.mrf.mxu0  ;;  %v8634_v20 = vpop.f32.mrf.mxu1 }
 0x4d5   : > { %v4725_v55 = vadd.f32 %v4706_v62, %v11441_v11 }
 0x4d6   : > { %v8550_v1 = vpop.f32.mrf.mxu0  ;;  %v11510_v34 = vpop.f32.mrf.mxu1 }
 0x4d7   : > { %v11513_v14 = vadd.f32 %v11433_v38, %v4725_v55 }
 0x4d8   : > { %v4711_v54 = vpop.f32.mrf.mxu0  ;;  %v8637_v10 = vpop.f32.mrf.mxu1 }
 0x4d9   : > { %v4726_v21 = vadd.f32 %v4711_v54, %v11446_v63 }
 0x4da   : > { %v8553_v40 = vpop.f32.mrf.mxu0  ;;  %v11516_v17 = vpop.f32.mrf.mxu1 }
 0x4db   : > { %v11519_v56 = vadd.f32 %v11438_v53, %v4726_v21 }
 0x4dc   : > { %v4714_v31 = vpop.f32.mrf.mxu0  ;;  %v8638_v36 = vpop.f32.mrf.mxu1 }
 0x4dd   : > { %v4727_v11 = vadd.f32 %v4714_v31, %v11451_v45 }
 0x4de   : > { %v8554_v9 = vpop.f32.mrf.mxu0 }
 0x4df   : > { %v11523_v52 = vadd.f32 %v11443_v33, %v4727_v11 }
 0x4e0   : > { %v4981_v38 = vpop.f32.mrf.mxu0 }
 0x4e1   : > { %v5020_v57 = vadd.f32 %v4981_v38, %v11456_v22 }
 0x4e2   : > { %v8593_v47 = vpop.f32.mrf.mxu0 }
 0x4e3   : > { %v5162_v63 = vadd.f32 %v11448_v13, %v5020_v57 }
 0x4e4   : > { %v4984_v46 = vpop.f32.mrf.mxu0 }
 0x4e5   : > { %v5021_v5 = vadd.f32 %v4984_v46, %v11470_v44  ;;  %v5172_v53 = vmax.f32 %v5162_v63, 0.0 }
 0x4e6   : > { %v8594_v49 = vpop.f32.mrf.mxu0 }
 0x4e7   : > { %v5163_v50 = vadd.f32 %v11453_v2, %v5021_v5  ;;  %v5191_v35 = vrot.slane %v5172_v53, 1 }
 0x4e8   : > { %v4989_v32 = vpop.f32.mrf.mxu0 }
 0x4e9   : > { %v5173_v6 = vmax.f32 %v5163_v50, 0.0  ;;  %v5022_v45 = vadd.f32 %v4989_v32, %v4863_v43 }
 0x4ea   : > { %v8597_v19 = vpop.f32.mrf.mxu0 }
 0x4eb   : > { %v5192_v33 = vrot.slane %v5173_v6, 1  ;;  %v5164_v26 = vadd.f32 %v11464_v24, %v5022_v45 }
 0x4ec   : > { %v4992_v8 = vpop.f32.mrf.mxu0 }
 0x4ed   : > { %v5193_v22 = vsel %vm1012_vm3, %v5191_v35, %v5192_v33  ;;  %v5174_v28 = vmax.f32 %v5164_v26, 0.0  ;;  %v5023_v13 = vadd.f32 %v4992_v8, %v4864_v25 }
 0x4ee   : > { %v5217_v41 = vmax.f32 %v5172_v53, %v5193_v22  ;;  %v8598_v18 = vpop.f32.mrf.mxu0 }
 0x4ef   : > { %v5194_v44 = vrot.slane %v5174_v28, 1  ;;  %v5165_v39 = vadd.f32 %v11479_v15, %v5023_v13 }
 0x4f0   : > { %v4997_v58 = vpop.f32.mrf.mxu0 }
 0x4f1   : > { %v5195_v2 = vsel %vm1012_vm3, %v5192_v33, %v5194_v44  ;;  %v5175_v42 = vmax.f32 %v5165_v39, 0.0  ;;  %v5024_v43 = vadd.f32 %v4997_v58, %v4865_v48 }
 0x4f2   : > { %v5218_v23 = vmax.f32 %v5173_v6, %v5195_v2  ;;  %v8601_v51 = vpop.f32.mrf.mxu0 }
 0x4f3   : > { %v5196_v29 = vrot.slane %v5175_v42, 1  ;;  %v5166_v24 = vadd.f32 %v11489_v4, %v5024_v43 }
 0x4f4   : > { %v5000_v12 = vpop.f32.mrf.mxu0  ;;  %v5242_v55 = vrot.slane %v5218_v23, 2 }
 0x4f5   : > { %v5197_v61 = vsel %vm1012_vm3, %v5194_v44, %v5196_v29  ;;  %v5176_v27 = vmax.f32 %v5166_v24, 0.0  ;;  %v5025_v25 = vadd.f32 %v5000_v12, %v4866_v37 }
 0x4f6   : > { %v5219_v60 = vmax.f32 %v5174_v28, %v5197_v61  ;;  %v8602_v62 = vpop.f32.mrf.mxu0 }
 0x4f7   : > { %v5198_v20 = vrot.slane %v5176_v27, 1  ;;  %v5167_v15 = vadd.f32 %v11496_v3, %v5025_v25 }
 0x4f8   : > { %v5243_v1 = vrot.slane %v5219_v60, 2  ;;  %v5005_v54 = vpop.f32.mrf.mxu0 }
 0x4f9   : > { %v5199_v48 = vsel %vm1012_vm3, %v5196_v29, %v5198_v20  ;;  %v5177_v10 = vmax.f32 %v5167_v15, 0.0  ;;  %v5026_v21 = vadd.f32 %v5005_v54, %v11507_v16  ;;  %v5311_v15 = vsel %vm5310_vm13, 4294967295, %v9014_v0  ;;  %v8773_v0 = vld [vmem:[%s12098_s3 + $0x74] ss:$8 sps:$4 sm:$0xff]  }
 0x4fa   : > { %v5220_v40 = vmax.f32 %v5175_v42, %v5199_v48  ;;  %v8605_v4 = vpop.f32.mrf.mxu0  ;;  %v5244_v31 = vsel %vm1908_vm4, %v5242_v55, %v5243_v1 }
 0x4fb   : > { %v5200_v36 = vrot.slane %v5177_v10, 1  ;;  %v5168_v37 = vadd.f32 %v11500_v7, %v5026_v21  ;;  %v5268_v11 = vmax.f32 %v5217_v41, %v5244_v31  ;;  %v5312_v21 = vsel %vm613_vm0, %v5311_v15, 0 }
 0x4fc   : > { %v5245_v9 = vrot.slane %v5220_v40, 2  ;;  %v5008_v38 = vpop.f32.mrf.mxu0 }
 0x4fd   : > { %v5201_v3 = vsel %vm1012_vm3, %v5198_v20, %v5200_v36  ;;  %v5178_v57 = vmax.f32 %v5168_v37, 0.0  ;;  %v5027_v47 = vadd.f32 %v5008_v38, %v11513_v14  ;;  %v8771_v38 = vld [vmem:[%s12098_s3 + $0x70] ss:$8 sps:$4 sm:$0xff]  }
 0x4fe   : > { %v5221_v63 = vmax.f32 %v5176_v27, %v5201_v3  ;;  %v8606_v46 = vpop.f32.mrf.mxu0  ;;  %v5246_v5 = vsel %vm1908_vm4, %v5243_v1, %v5245_v9  ;;  %v8776_v3 = vld [vmem:[%s12098_s3 + $0x64] ss:$8 sps:$4 sm:$0xff]  }
 0x4ff   : > { %v5202_v16 = vrot.slane %v5178_v57, 1  ;;  %v5169_v49 = vadd.f32 %v11504_v30, %v5027_v47  ;;  %v5269_v53 = vmax.f32 %v5218_v23, %v5246_v5  ;;  %v8779_v47 = vld [vmem:[%s12098_s3 + $0x54] ss:$8 sps:$4 sm:$0xff]   ;;  %v8777_v46 = vld [vmem:[%s12098_s3 + $0x50] ss:$8 sps:$4 sm:$0xff]  }
 0x500   : > { %v5247_v50 = vrot.slane %v5221_v63, 2  ;;  %v5013_v32 = vpop.f32.mrf.mxu0  ;;  %v8782_v5 = vld [vmem:[%s12098_s3 + $0x44] ss:$8 sps:$4 sm:$0xff]  }
 0x501   : > { %v5203_v7 = vsel %vm1012_vm3, %v5200_v36, %v5202_v16  ;;  %v5179_v6 = vmax.f32 %v5169_v49, 0.0  ;;  %v5028_v45 = vadd.f32 %v5013_v32, %v11519_v56  ;;  %v5282_v19 = vpack.c.bf16 %v5269_v53, %v5268_v11  ;;  %v8788_v49 = vld [vmem:[%s12098_s3 + $0x34] ss:$8 sps:$4 sm:$0xff]   ;;  %v8770_v53 = vld [vmem:[%s12100_s5 + $0x10] ss:$0 sps:$4 sm:$0x33]  }
 0x502   : > { %v5222_v35 = vmax.f32 %v5177_v10, %v5203_v7  ;;  %v8609_v33 = vpop.f32.mrf.mxu0  ;;  %v5248_v14 = vsel %vm1908_vm4, %v5245_v9, %v5247_v50  ;;  %v8768_v9 = vld [vmem:[%s12100_s5] sm:$0xff]  }
 0x503   : > { %v5204_v26 = vrot.slane %v5179_v6, 1  ;;  %v5170_v8 = vadd.f32 %v11510_v34, %v5028_v45  ;;  %v5270_v22 = vmax.f32 %v5219_v60, %v5248_v14  ;;  %v8794_v32 = vld [vmem:[%s12098_s3 + $0x24] ss:$8 sps:$4 sm:$0xff]   ;;  %v8792_v7 = vld [vmem:[%s12098_s3 + $0x20] ss:$8 sps:$4 sm:$0xff]  }
 0x504   : > { %v5249_v28 = vrot.slane %v5222_v35, 2  ;;  %v5016_v13 = vpop.f32.mrf.mxu0  ;;  %v8798_v45 = vld [vmem:[%s12098_s3 + $0x10] ss:$8 sps:$4 sm:$0xff]   ;;  %v8809_v14 = vld [vmem:[%s12098_s3 + $0xb4] ss:$8 sps:$4 sm:$0xff]  }
 0x505   : > { %v5205_v30 = vsel %vm1012_vm3, %v5202_v16, %v5204_v26  ;;  %v5180_v41 = vmax.f32 %v5170_v8, 0.0  ;;  %v5029_v18 = vadd.f32 %v5016_v13, %v11523_v52  ;;  %v8780_v16 = vld [vmem:[%s12098_s3 + $0x40] ss:$8 sps:$4 sm:$0xff]   ;;  %v8807_v33 = vld [vmem:[%s12098_s3 + $0xb0] ss:$8 sps:$4 sm:$0xff]   ;;  %5513 = vmatprep.subr.bf16.mxu1 %v8809_v14  ;;  %v9015_v8 = vmov 0  }
 0x506   : > { %v5223_v44 = vmax.f32 %v5178_v57, %v5205_v30  ;;  %v8610_v39 = vpop.f32.mrf.mxu0  ;;  %v5250_v56 = vsel %vm1908_vm4, %v5247_v50, %v5249_v28  ;;  %v8774_v57 = vld [vmem:[%s12098_s3 + $0x60] ss:$8 sps:$4 sm:$0xff]   ;;  %v8786_v50 = vld [vmem:[%s12098_s3 + $0x30] ss:$8 sps:$4 sm:$0xff]   ;;  %5514 = vmatpush1.bf16.msra.mxu1 %v8807_v33  ;;  %5537 = vmatprep.mubr.bf16.mxu1 %v9015_v8  ;;  %v8821_v30 = vld [vmem:[%s12098_s3 + $0x94] ss:$8 sps:$4 sm:$0xff]  }
 0x507   : > { %v5206_v58 = vrot.slane %v5180_v41, 1  ;;  %v5171_v2 = vadd.f32 %v11516_v17, %v5029_v18  ;;  %v5271_v42 = vmax.f32 %v5220_v40, %v5250_v56  ;;  %v8819_v13 = vld [vmem:[%s12098_s3 + $0x90] ss:$8 sps:$4 sm:$0xff]   ;;  %v8827_v18 = vld [vmem:[%s12098_s3 + $0x84] ss:$8 sps:$4 sm:$0xff]  }
 0x508   : > { %v5251_v43 = vrot.slane %v5223_v44, 2  ;;  %v8845_v33 = vld [vmem:[%s12098_s3 + $0x154] ss:$8 sps:$4 sm:$0xff]  }
 0x509   : > { %v5207_v23 = vsel %vm1012_vm3, %v5204_v26, %v5206_v58  ;;  %v5181_v34 = vmax.f32 %v5171_v2, 0.0  ;;  %v5283_v51 = vpack.c.bf16 %v5271_v42, %v5270_v22  ;;  %v5225_v17 = vmax.f32 %v5180_v41, %v5206_v58  ;;  %v8812_v26 = vld [vmem:[%s12098_s3 + $0x1f4] ss:$8 sps:$4 sm:$0xff]   ;;  %v8813_v22 = vld [vmem:[%s12098_s3 + $0xa0] ss:$8 sps:$4 sm:$0xff]  }
 0x50a   : > { %v5224_v29 = vmax.f32 %v5179_v6, %v5207_v23  ;;  %v5252_v24 = vsel %vm1908_vm4, %v5249_v28, %v5251_v43  ;;  %v8800_v6 = vld [vmem:[%s12098_s3 + $0x14] ss:$8 sps:$4 sm:$0xff]   ;;  %v8815_v28 = vld [vmem:[%s12098_s3 + $0xa4] ss:$8 sps:$4 sm:$0xff]   ;;  %v8810_v2 = vld [vmem:[%s12098_s3 + $0x1f0] ss:$8 sps:$4 sm:$0xff]  }
 0x50b   : > { %v5227_v12 = vrot.slane %v5181_v34, 1  ;;  %v5272_v61 = vmax.f32 %v5221_v63, %v5252_v24  ;;  %v8769_v63 = vld [vmem:[%s12100_s5 + $0x8] sm:$0xff]   ;;  %5515 = vmatprep.subr.bf16.mxu1 %v8815_v28 }
 0x50c   : > { %v5253_v52 = vrot.slane %v5224_v29, 2  ;;  %5516 = vmatpush1.bf16.msra.mxu1 %v8813_v22  ;;  %v8816_v24 = vld [vmem:[%s12098_s3 + $0x1e0] ss:$8 sps:$4 sm:$0xff]  }
 0x50d   : > { %v5228_v27 = vsel %vm1012_vm3, %v5206_v58, %v5227_v12  ;;  %v5232_v25 = vmax.f32 %v5181_v34, %v5227_v12  ;;  %5517 = vmatprep.subr.bf16.mxu1 %v8821_v30  ;;  %v8824_v12 = vld [vmem:[%s12098_s3 + $0x1d4] ss:$8 sps:$4 sm:$0xff]   ;;  %v8840_v30 = vld [vmem:[%s12098_s3 + $0x1a0] ss:$8 sps:$4 sm:$0xff]  }
 0x50e   : > { %v5231_v60 = vmax.f32 %v5180_v41, %v5228_v27  ;;  %v5254_v62 = vsel %vm1908_vm4, %v5251_v43, %v5253_v52  ;;  %v8825_v41 = vld [vmem:[%s12098_s3 + $0x80] ss:$8 sps:$4 sm:$0xff]   ;;  %v8818_v43 = vld [vmem:[%s12098_s3 + $0x1e4] ss:$8 sps:$4 sm:$0xff]  }
 0x50f   : > { %v5257_v20 = vrot.slane %v5232_v25, 2  ;;  %v5273_v55 = vmax.f32 %v5222_v35, %v5254_v62  ;;  %v8806_v35 = vld [vmem:[%s12098_s3 + $0x4] ss:$8 sps:$4 sm:$0xff]  }
 0x510   : > { %v5255_v1 = vrot.slane %v5231_v60, 2  ;;  %5518 = vmatpush1.bf16.msra.mxu1 %v8819_v13  ;;  %v8822_v60 = vld [vmem:[%s12098_s3 + $0x1d0] ss:$8 sps:$4 sm:$0xff]  }
 0x511   : > { %v5276_v54 = vmax.f32 %v5225_v17, %v5257_v20  ;;  %v5284_v48 = vpack.c.bf16 %v5273_v55, %v5272_v61  ;;  %5519 = vmatprep.subr.bf16.mxu1 %v8827_v18  ;;  %v8843_v18 = vld [vmem:[%s12098_s3 + $0x150] ss:$8 sps:$4 sm:$0xff]  }
 0x512   : > { %v5258_v10 = vsel %vm1908_vm4, %v5255_v1, %v5257_v20  ;;  %v5256_v40 = vsel %vm1908_vm4, %v5253_v52, %v5255_v1  ;;  %v8830_v20 = vld [vmem:[%s12098_s3 + $0x1c4] ss:$8 sps:$4 sm:$0xff]   ;;  %vm6891_vm4 = vcmask 121856  }
 0x513   : > { %v5286_v4 = vpack.c.bf16 %v5276_v54, %v5276_v54  ;;  %v5274_v31 = vmax.f32 %v5223_v44, %v5256_v40  ;;  %v5275_v36 = vmax.f32 %v5224_v29, %v5258_v10  ;;  %v8833_v44 = vld [vmem:[%s12098_s3 + $0x174] ss:$8 sps:$4 sm:$0xff]   ;;  %v8831_v40 = vld [vmem:[%s12098_s3 + $0x170] ss:$8 sps:$4 sm:$0xff]  }
 0x514   : > { %5520 = vmatpush1.bf16.msra.mxu1 %v8825_v41 }
 0x515   : > { %v5314_v37 = vand.u32 %v5312_v21, %v5286_v4  ;;  %v5285_v11 = vpack.c.bf16 %v5275_v36, %v5274_v31  ;;  %5791 = vmatprep.subr.bf16.mxu1 %v8833_v44  ;;  %v8836_v36 = vld [vmem:[%s12098_s3 + $0x1b4] ss:$8 sps:$4 sm:$0xff]  }
 0x516   : > { %v8848_v44 = vld [vmem:[%s12098_s3 + $0x194] ss:$8 sps:$4 sm:$0xff]  }
 0x517   : > { %8640 = vmatpush3.bf16.msra.mxu0 %v5314_v37 }
 0x518   : > { %8641 = vmatprep.subr.bf16.mxu0 %v12235_v59 }
 0x51b   : > { %8642 = vmatpush3.bf16.msra.mxu0 %v5285_v11 }
 0x51c   : > { %8643 = vmatprep.subr.bf16.mxu0 %v12235_v59 }
 0x51f   : > { %8644 = vmatpush3.bf16.msra.mxu0 %v5284_v48  ;;  %v8828_v48 = vld [vmem:[%s12098_s3 + $0x1c0] ss:$8 sps:$4 sm:$0xff]  }
 0x520   : > { %8645 = vmatprep.subr.bf16.mxu0 %v12235_v59 }
 0x523   : > { %8646 = vmatpush3.bf16.msra.mxu0 %v5283_v51 }
 0x524   : > { %8647 = vmatprep.subr.bf16.mxu0 %v12235_v59 }
 0x527   : > { %8648 = vmatpush3.bf16.msra.mxu0 %v5282_v19  ;;  %v8804_v19 = vld [vmem:[%s12098_s3] ss:$8 sps:$4 sm:$0xff]  }
 0x528   : > { %5636 = vmatprep.subr.bf16.mxu0 %v8773_v0  ;;  %v8839_v0 = vld [vmem:[%s12098_s3 + $0x164] ss:$8 sps:$4 sm:$0xff]  }
 0x52a   : > { %8650 = vmatmul.mubr.msk.bf16.vlgmr.msra.gmra.mxu0 %vm5300_vm14, %v8768_v9 }
 0x52b   : > { %8653 = vmatprep.mubr.msk.bf16.mxu0 %vm9013_vm8, %v12235_v59  ;;  %5637 = vmatpush1.bf16.msra.mxu0 %v8771_v38 }
 0x52c   : > { %5638 = vmatprep.subr.bf16.mxu0 %v8776_v3 }
 0x52f   : > { %5639 = vmatpush1.bf16.msra.mxu0 %v8774_v57 }
 0x530   : > { %5640 = vmatprep.subr.bf16.mxu0 %v8779_v47  ;;  %v8834_v47 = vld [vmem:[%s12098_s3 + $0x1b0] ss:$8 sps:$4 sm:$0xff]  }
 0x532   : > { %8654 = vmatmul.mubr.msk.bf16.gmra.mxu0 %vm5300_vm14, %v8769_v63 }
 0x533   : > { %8657 = vmatprep.mubr.msk.bf16.mxu0 %vm9013_vm8, %v12235_v59  ;;  %5641 = vmatpush1.bf16.msra.mxu0 %v8777_v46 }
 0x534   : > { %5642 = vmatprep.subr.bf16.mxu0 %v8782_v5 }
 0x537   : > { %5643 = vmatpush1.bf16.msra.mxu0 %v8780_v16  ;;  %v8837_v16 = vld [vmem:[%s12098_s3 + $0x160] ss:$8 sps:$4 sm:$0xff]  }
 0x538   : > { %5644 = vmatprep.subr.bf16.mxu0 %v8788_v49 }
 0x53a   : > { %8658 = vmatmul.mubr.msk.bf16.gmra.mxu0 %vm5300_vm14, %v8770_v53 }
 0x53b   : > { %5645 = vmatpush1.bf16.msra.mxu0 %v8786_v50  ;;  %5668 = vmatprep.mubr.bf16.mxu0 %v9015_v8 }
 0x53c   : > { %5646 = vmatprep.subr.bf16.mxu0 %v8794_v32 }
 0x53f   : > { %5647 = vmatpush1.bf16.msra.mxu0 %v8792_v7  ;;  %v8842_v7 = vld [vmem:[%s12098_s3 + $0x1a4] ss:$8 sps:$4 sm:$0xff]  }
 0x540   : > { %5648 = vmatprep.subr.bf16.mxu0 %v8800_v6 }
 0x543   : > { %5649 = vmatpush1.bf16.msra.mxu0 %v8798_v45 }
 0x544   : > { %5650 = vmatprep.subr.bf16.mxu0 %v8806_v35 }
 0x547   : > { %5651 = vmatpush1.bf16.msra.mxu0 %v8804_v19 }
 0x548   : > { %5950 = vmatprep.subr.bf16.mxu0 %v8812_v26 }
 0x5ea   : > { %v5350_v39 = vpop.f32.mrf.mxu0 }
 0x5ec   : > { %v8651_v56 = vpop.f32.mrf.mxu0 }
 0x5ed   : > { %v8851_v56 = vld [vmem:[%s12098_s3 + $0x144] ss:$8 sps:$4 sm:$0xff]  }
 0x5ee   : > { %v5353_v58 = vpop.f32.mrf.mxu0 }
 0x5ef   : > { %v11664_v42 = vpack.c.bf16 %v5353_v58, %v5350_v39 }
 0x5f0   : > { %v8652_v23 = vpop.f32.mrf.mxu0 }
 0x5f1   : > { %5669 = vmatmul.mubr.bf16.vlgmr.msra.gmra.mxu0 %v11664_v42  ;;  %v11671_v34 = vshrl.u32 %v11664_v42, 16  ;;  %v11674_v51 = vshll.u32 %v11664_v42, 16  ;;  %v6349_v38 = vrot.slane %v11664_v42, 6  ;;  %v6684_v5 = vrot.slane %v11664_v42, 7  ;;  %v8854_v23 = vld [vmem:[%s12098_s3 + $0x184] ss:$8 sps:$4 sm:$0xff]  }
 0x5f2   : > { %5951 = vmatpush1.bf16.msra.mxu0 %v8810_v2  ;;  %v5358_v29 = vpop.f32.mrf.mxu0  ;;  %5678 = vmatprep.mubr.bf16.mxu0 %v9015_v8  ;;  %v8846_v2 = vld [vmem:[%s12098_s3 + $0x190] ss:$8 sps:$4 sm:$0xff]  }
 0x5f3   : > { %5952 = vmatprep.subr.bf16.mxu0 %v8818_v43  ;;  %v6511_v61 = vrot.slane %v11671_v34, 6  ;;  %v6512_v27 = vrot.slane %v11674_v51, 7  ;;  %v5413_v15 = vrot.slane %v11674_v51, 1  ;;  %v8849_v43 = vld [vmem:[%s12098_s3 + $0x140] ss:$8 sps:$4 sm:$0xff]  }
 0x5f4   : > { %v8655_v52 = vpop.f32.mrf.mxu0 }
 0x5f5   : > { %v6513_v62 = vor.u32 %v6512_v27, %v6511_v61  ;;  %v5414_v4 = vor.u32 %v5413_v15, %v11671_v34  ;;  %v8860_v61 = vld [vmem:[%s12098_s3 + $0x2f4] ss:$8 sps:$4 sm:$0xff]   ;;  %v8863_v27 = vld [vmem:[%s12098_s3 + $0x124] ss:$8 sps:$4 sm:$0xff]  }
 0x5f6   : > { %5953 = vmatpush1.bf16.msra.mxu0 %v8816_v24  ;;  %v5361_v25 = vpop.f32.mrf.mxu0  ;;  %v8852_v24 = vld [vmem:[%s12098_s3 + $0x180] ss:$8 sps:$4 sm:$0xff]  }
 0x5f7   : > { %v11688_v17 = vpack.c.bf16 %v5361_v25, %v5358_v29  ;;  %5954 = vmatprep.subr.bf16.mxu0 %v8824_v12  ;;  %v8857_v29 = vld [vmem:[%s12098_s3 + $0x134] ss:$8 sps:$4 sm:$0xff]   ;;  %v8855_v12 = vld [vmem:[%s12098_s3 + $0x130] ss:$8 sps:$4 sm:$0xff]   ;;  %v5865_v25 = vrot.slane %v11664_v42, 3 }
 0x5f8   : > { %v8656_v55 = vpop.f32.mrf.mxu0 }
 0x5f9   : > { %v11695_v1 = vshll.u32 %v11688_v17, 16  ;;  %5679 = vmatmul.mubr.bf16.gmra.mxu0 %v11688_v17  ;;  %v11699_v54 = vshrl.u32 %v11688_v17, 16  ;;  %v6350_v21 = vrot.slane %v11688_v17, 6  ;;  %v6685_v11 = vrot.slane %v11688_v17, 7  ;;  %v8869_v55 = vld [vmem:[%s12098_s3 + $0x114] ss:$8 sps:$4 sm:$0xff]  }
 0x5fa   : > { %5955 = vmatpush1.bf16.msra.mxu0 %v8822_v60  ;;  %v5366_v10 = vpop.f32.mrf.mxu0  ;;  %5982 = vmatprep.mubr.bf16.mxu0 %v9015_v8  ;;  %v5866_v52 = vrot.slane %v11688_v17, 3  ;;  %v8858_v60 = vld [vmem:[%s12098_s3 + $0x2f0] ss:$8 sps:$4 sm:$0xff]  }
 0x5fb   : > { %5956 = vmatprep.subr.bf16.mxu0 %v8830_v20  ;;  %v5418_v31 = vrot.slane %v11695_v1, 1  ;;  %v5374_v37 = vpack.c.bf16 %v5366_v10, %v5366_v10  ;;  %v6514_v9 = vrot.slane %v11699_v54, 6  ;;  %v6515_v49 = vrot.slane %v11695_v1, 7  ;;  %v8866_v20 = vld [vmem:[%s12098_s3 + $0x2e4] ss:$8 sps:$4 sm:$0xff]  }
 0x5fc   : > { %v8659_v3 = vpop.f32.mrf.mxu0  ;;  %v11730_v53 = vsel %vm613_vm0, %v6349_v38, %v6350_v21  ;;  %v11736_v19 = vsel %vm5310_vm13, %v6684_v5, %v6685_v11  ;;  %v5867_v15 = vsel %vm2810_vm7, %v5865_v25, %v5866_v52  ;;  %v8867_v10 = vld [vmem:[%s12098_s3 + $0x110] ss:$8 sps:$4 sm:$0xff]   ;;  %v8890_v5 = vld [vmem:[%s12098_s3 + $0x2a4] ss:$8 sps:$4 sm:$0xff]  }
 0x5fd   : > { %v5419_v57 = vsel %vm414_vm2, %v5414_v4, %v5418_v31  ;;  %v6519_v63 = vshrl.u32 %v5374_v37, 16  ;;  %v6522_v46 = vshll.u32 %v5374_v37, 16  ;;  %v6352_v50 = vrot.slane %v5374_v37, 6  ;;  %v8870_v4 = vld [vmem:[%s12098_s3 + $0x2d0] ss:$8 sps:$4 sm:$0xff]  }
 0x5fe   : > { %5957 = vmatpush1.bf16.msra.mxu0 %v8828_v48  ;;  %5538 = vmatmul.mubr.bf16.vlgmr.msra.gmra.mxu1 %v5419_v57  ;;  %v5369_v32 = vpop.f32.mrf.mxu0  ;;  %v6687_v35 = vrot.slane %v5374_v37, 7  ;;  %v6516_v14 = vor.u32 %v6515_v49, %v6514_v9  ;;  %v5422_v58 = vor.u32 %v11699_v54, %v5418_v31  ;;  %v8864_v48 = vld [vmem:[%s12098_s3 + $0x2e0] ss:$8 sps:$4 sm:$0xff]   ;;  %v8881_v37 = vld [vmem:[%s12098_s3 + $0x274] ss:$8 sps:$4 sm:$0xff]   ;;  %v5706_v9 = vrot.slane %v11664_v42, 1 }
 0x5ff   : > { %5792 = vmatpush1.bf16.msra.mxu1 %v8831_v40  ;;  %5958 = vmatprep.subr.bf16.mxu0 %v8836_v36  ;;  %v6521_v6 = vrot.slane %v6519_v63, 6  ;;  %v6524_v45 = vrot.slane %v6522_v46, 7  ;;  %v11743_v26 = vsel %vm613_vm0, %v6350_v21, %v6352_v50  ;;  %v8872_v21 = vld [vmem:[%s12098_s3 + $0x2d4] ss:$8 sps:$4 sm:$0xff]   ;;  %v8875_v40 = vld [vmem:[%s12098_s3 + $0x104] ss:$8 sps:$4 sm:$0xff]  }
 0x600   : > { %5793 = vmatprep.subr.bf16.mxu1 %v8839_v0  ;;  %5547 = vmatprep.mubr.bf16.mxu1 %v9015_v8  ;;  %v8660_v22 = vpop.f32.mrf.mxu0  ;;  %v11746_v13 = vsel %vm5310_vm13, %v6685_v11, %v6687_v35  ;;  %v11752_v41 = vsel %vm6510_vm15, %v6513_v62, %v6516_v14  ;;  %v8861_v62 = vld [vmem:[%s12098_s3 + $0x120] ss:$8 sps:$4 sm:$0xff]   ;;  %v8878_v36 = vld [vmem:[%s12098_s3 + $0x2c4] ss:$8 sps:$4 sm:$0xff]   ;;  %v5707_v11 = vrot.slane %v11688_v17, 1 }
 0x601   : > { %v6525_v28 = vor.u32 %v6524_v45, %v6521_v6  ;;  %v8873_v31 = vld [vmem:[%s12098_s3 + $0x100] ss:$8 sps:$4 sm:$0xff]   ;;  %v8879_v38 = vld [vmem:[%s12098_s3 + $0x270] ss:$8 sps:$4 sm:$0xff]   ;;  %v8884_v3 = vld [vmem:[%s12098_s3 + $0x2b4] ss:$8 sps:$4 sm:$0xff]  }
 0x602   : > { %5959 = vmatpush1.bf16.msra.mxu0 %v8834_v47  ;;  %v8876_v0 = vld [vmem:[%s12098_s3 + $0x2c0] ss:$8 sps:$4 sm:$0xff]   ;;  %v8887_v57 = vld [vmem:[%s12098_s3 + $0x264] ss:$8 sps:$4 sm:$0xff]   ;;  %v5708_v47 = vsel %vm1012_vm3, %v5706_v9, %v5707_v11  ;;  %v8882_v63 = vld [vmem:[%s12098_s3 + $0x2b0] ss:$8 sps:$4 sm:$0xff]  }
 0x603   : > { %5794 = vmatpush1.bf16.msra.mxu1 %v8837_v16  ;;  %5960 = vmatprep.subr.bf16.mxu0 %v8842_v7  ;;  %v11761_v39 = vsel %vm6510_vm15, %v6516_v14, %v6525_v28  ;;  %v8885_v46 = vld [vmem:[%s12098_s3 + $0x260] ss:$8 sps:$4 sm:$0xff]   ;;  %v8893_v16 = vld [vmem:[%s12098_s3 + $0x254] ss:$8 sps:$4 sm:$0xff]   ;;  %v8891_v50 = vld [vmem:[%s12098_s3 + $0x250] ss:$8 sps:$4 sm:$0xff]  }
 0x604   : > { %5795 = vmatprep.subr.bf16.mxu1 %v8845_v33  ;;  %v8888_v49 = vld [vmem:[%s12098_s3 + $0x2a0] ss:$8 sps:$4 sm:$0xff]   ;;  %v8896_v32 = vld [vmem:[%s12098_s3 + $0x294] ss:$8 sps:$4 sm:$0xff]   ;;  %v8899_v7 = vld [vmem:[%s12098_s3 + $0x244] ss:$8 sps:$4 sm:$0xff]  }
 0x605   : > { %v8894_v6 = vld [vmem:[%s12098_s3 + $0x290] ss:$8 sps:$4 sm:$0xff]   ;;  %v8897_v45 = vld [vmem:[%s12098_s3 + $0x240] ss:$8 sps:$4 sm:$0xff]   ;;  %v8902_v35 = vld [vmem:[%s12098_s3 + $0x284] ss:$8 sps:$4 sm:$0xff]  }
 0x606   : > { %5961 = vmatpush1.bf16.msra.mxu0 %v8840_v30  ;;  %5548 = vmatmul.mubr.bf16.gmra.mxu1 %v5422_v58  ;;  %v8905_v33 = vld [vmem:[%s12098_s3 + $0x234] ss:$8 sps:$4 sm:$0xff]   ;;  %v8900_v14 = vld [vmem:[%s12098_s3 + $0x280] ss:$8 sps:$4 sm:$0xff]   ;;  %v8903_v22 = vld [vmem:[%s12098_s3 + $0x230] ss:$8 sps:$4 sm:$0xff]  }
 0x607   : > { %5796 = vmatpush1.bf16.msra.mxu1 %v8843_v18  ;;  %5962 = vmatprep.subr.bf16.mxu0 %v8848_v44  ;;  %v8908_v28 = vld [vmem:[%s12098_s3 + $0x3f4] ss:$8 sps:$4 sm:$0xff]   ;;  %v6190_v30 = vrot.slane %v11688_v17, 4  ;;  %v8911_v18 = vld [vmem:[%s12098_s3 + $0x224] ss:$8 sps:$4 sm:$0xff]   ;;  %v6189_v44 = vrot.slane %v11664_v42, 4 }
 0x608   : > { %5797 = vmatprep.subr.bf16.mxu1 %v8851_v56  ;;  %5823 = vmatprep.mubr.bf16.mxu1 %v9015_v8  ;;  %v8906_v56 = vld [vmem:[%s12098_s3 + $0x3f0] ss:$8 sps:$4 sm:$0xff]   ;;  %v8909_v58 = vld [vmem:[%s12098_s3 + $0x220] ss:$8 sps:$4 sm:$0xff]   ;;  %v8914_v17 = vld [vmem:[%s12098_s3 + $0x3e4] ss:$8 sps:$4 sm:$0xff]  }
 0x609   : > { %v8917_v42 = vld [vmem:[%s12098_s3 + $0x214] ss:$8 sps:$4 sm:$0xff]   ;;  %v8926_v25 = vld [vmem:[%s12098_s3 + $0x3c4] ss:$8 sps:$4 sm:$0xff]   ;;  %vm6024_vm2 = vsmask.f32 4352 }
 0x60a   : > { %5963 = vmatpush1.bf16.msra.mxu0 %v8846_v2  ;;  %v6191_v2 = vsel %vm6188_vm1, %v6189_v44, %v6190_v30  ;;  %v8945_v9 = vld [vmem:[%s12098_s3 + $0x340] ss:$8 sps:$4 sm:$0xff]  }
 0x60b   : > { %5798 = vmatpush1.bf16.msra.mxu1 %v8849_v43  ;;  %5964 = vmatprep.subr.bf16.mxu0 %v8854_v23  ;;  %v8912_v43 = vld [vmem:[%s12098_s3 + $0x3e0] ss:$8 sps:$4 sm:$0xff]   ;;  %v8915_v23 = vld [vmem:[%s12098_s3 + $0x210] ss:$8 sps:$4 sm:$0xff]  }
 0x60c   : > { %5799 = vmatprep.subr.bf16.mxu1 %v8857_v29  ;;  %v8920_v29 = vld [vmem:[%s12098_s3 + $0x3d4] ss:$8 sps:$4 sm:$0xff]  }
 0x60e   : > { %5965 = vmatpush1.bf16.msra.mxu0 %v8852_v24  ;;  %v8923_v24 = vld [vmem:[%s12098_s3 + $0x204] ss:$8 sps:$4 sm:$0xff]  }
 0x60f   : > { %5800 = vmatpush1.bf16.msra.mxu1 %v8855_v12  ;;  %6274 = vmatprep.subr.bf16.mxu0 %v8860_v61  ;;  %v6028_v12 = vrot.slane %v11699_v54, 3  ;;  %v6029_v61 = vrot.slane %v11695_v1, 4  ;;  %v6026_v54 = vrot.slane %v11674_v51, 4  ;;  %v8929_v1 = vld [vmem:[%s12098_s3 + $0x374] ss:$8 sps:$4 sm:$0xff]  }
 0x610   : > { %5801 = vmatprep.subr.bf16.mxu1 %v8863_v27  ;;  %v8921_v27 = vld [vmem:[%s12098_s3 + $0x200] ss:$8 sps:$4 sm:$0xff]   ;;  %v8927_v51 = vld [vmem:[%s12098_s3 + $0x370] ss:$8 sps:$4 sm:$0xff]  }
 0x611   : > { %5983 = vmatmul.mubr.bf16.vlgmr.msra.gmra.mxu0 %v5867_v15  ;;  %v8932_v15 = vld [vmem:[%s12098_s3 + $0x3b4] ss:$8 sps:$4 sm:$0xff]  }
 0x612   : > { %6275 = vmatpush1.bf16.msra.mxu0 %v8858_v60  ;;  %5992 = vmatprep.mubr.bf16.mxu0 %v9015_v8  ;;  %v6025_v60 = vrot.slane %v11671_v34, 3 }
 0x613   : > { %5802 = vmatpush1.bf16.msra.mxu1 %v8861_v62  ;;  %6276 = vmatprep.subr.bf16.mxu0 %v8866_v20  ;;  %v6030_v62 = vor.u32 %v6029_v61, %v6028_v12  ;;  %v8924_v20 = vld [vmem:[%s12098_s3 + $0x3c0] ss:$8 sps:$4 sm:$0xff]  }
 0x614   : > { %5803 = vmatprep.subr.bf16.mxu1 %v8869_v55  ;;  %v6027_v34 = vor.u32 %v6026_v54, %v6025_v60  ;;  %v8935_v55 = vld [vmem:[%s12098_s3 + $0x364] ss:$8 sps:$4 sm:$0xff]  }
 0x616   : > { %6277 = vmatpush1.bf16.msra.mxu0 %v8864_v48  ;;  %v6031_v48 = vsel %vm6024_vm2, %v6027_v34, %v6030_v62 }
 0x617   : > { %5804 = vmatpush1.bf16.msra.mxu1 %v8867_v10  ;;  %6278 = vmatprep.subr.bf16.mxu0 %v8872_v21  ;;  %v8930_v10 = vld [vmem:[%s12098_s3 + $0x3b0] ss:$8 sps:$4 sm:$0xff]   ;;  %v8933_v21 = vld [vmem:[%s12098_s3 + $0x360] ss:$8 sps:$4 sm:$0xff]  }
 0x618   : > { %5805 = vmatprep.subr.bf16.mxu1 %v8875_v40  ;;  %v8938_v40 = vld [vmem:[%s12098_s3 + $0x3a4] ss:$8 sps:$4 sm:$0xff]  }
 0x619   : > { %5993 = vmatmul.mubr.bf16.gmra.mxu0 %v5866_v52  ;;  %v8918_v52 = vld [vmem:[%s12098_s3 + $0x3d0] ss:$8 sps:$4 sm:$0xff]  }
 0x61a   : > { %6279 = vmatpush1.bf16.msra.mxu0 %v8870_v4  ;;  %6306 = vmatprep.mubr.bf16.mxu0 %v9015_v8  ;;  %v8941_v4 = vld [vmem:[%s12098_s3 + $0x354] ss:$8 sps:$4 sm:$0xff]  }
 0x61b   : > { %5806 = vmatpush1.bf16.msra.mxu1 %v8873_v31  ;;  %6280 = vmatprep.subr.bf16.mxu0 %v8878_v36  ;;  %v8936_v31 = vld [vmem:[%s12098_s3 + $0x3a0] ss:$8 sps:$4 sm:$0xff]   ;;  %v8939_v36 = vld [vmem:[%s12098_s3 + $0x350] ss:$8 sps:$4 sm:$0xff]  }
 0x61c   : > { %6114 = vmatprep.subr.bf16.mxu1 %v8881_v37  ;;  %v8944_v37 = vld [vmem:[%s12098_s3 + $0x394] ss:$8 sps:$4 sm:$0xff]  }
 0x61e   : > { %5824 = vmatmul.mubr.bf16.vlgmr.msra.gmra.mxu1 %v5708_v47  ;;  %6281 = vmatpush1.bf16.msra.mxu0 %v8876_v0  ;;  %v8942_v0 = vld [vmem:[%s12098_s3 + $0x390] ss:$8 sps:$4 sm:$0xff]  }
 0x61f   : > { %6115 = vmatpush1.bf16.msra.mxu1 %v8879_v38  ;;  %6282 = vmatprep.subr.bf16.mxu0 %v8884_v3  ;;  %v8950_v38 = vld [vmem:[%s12098_s3 + $0x384] ss:$8 sps:$4 sm:$0xff]   ;;  %v8953_v3 = vld [vmem:[%s12098_s3 + $0x334] ss:$8 sps:$4 sm:$0xff]   ;;  %v8951_v47 = vld [vmem:[%s12098_s3 + $0x330] ss:$8 sps:$4 sm:$0xff]  }
 0x620   : > { %6116 = vmatprep.subr.bf16.mxu1 %v8887_v57  ;;  %5833 = vmatprep.mubr.bf16.mxu1 %v9015_v8  ;;  %v8948_v57 = vld [vmem:[%s12098_s3 + $0x380] ss:$8 sps:$4 sm:$0xff]  }
 0x622   : > { %6283 = vmatpush1.bf16.msra.mxu0 %v8882_v63  ;;  %v8956_v63 = vld [vmem:[%s12098_s3 + $0x324] ss:$8 sps:$4 sm:$0xff]  }
 0x623   : > { %6117 = vmatpush1.bf16.msra.mxu1 %v8885_v46  ;;  %6284 = vmatprep.subr.bf16.mxu0 %v8890_v5  ;;  %v8954_v46 = vld [vmem:[%s12098_s3 + $0x320] ss:$8 sps:$4 sm:$0xff]   ;;  %v8959_v5 = vld [vmem:[%s12098_s3 + $0x314] ss:$8 sps:$4 sm:$0xff]  }
 0x624   : > { %6118 = vmatprep.subr.bf16.mxu1 %v8893_v16  ;;  %v8957_v16 = vld [vmem:[%s12098_s3 + $0x310] ss:$8 sps:$4 sm:$0xff]  }
 0x626   : > { %5834 = vmatmul.mubr.bf16.gmra.mxu1 %v5707_v11  ;;  %6285 = vmatpush1.bf16.msra.mxu0 %v8888_v49  ;;  %v8947_v11 = vld [vmem:[%s12098_s3 + $0x344] ss:$8 sps:$4 sm:$0xff]  }
 0x627   : > { %6119 = vmatpush1.bf16.msra.mxu1 %v8891_v50  ;;  %6286 = vmatprep.subr.bf16.mxu0 %v8896_v32  ;;  %v8962_v49 = vld [vmem:[%s12098_s3 + $0x304] ss:$8 sps:$4 sm:$0xff]   ;;  %v8960_v50 = vld [vmem:[%s12098_s3 + $0x300] ss:$8 sps:$4 sm:$0xff]   ;;  %v8963_v32 = vld [vmem:[%s12098_s3 + $0x470] ss:$8 sps:$4 sm:$0xff]  }
 0x628   : > { %6120 = vmatprep.subr.bf16.mxu1 %v8899_v7  ;;  %6146 = vmatprep.mubr.bf16.mxu1 %v9015_v8  ;;  %v8968_v7 = vld [vmem:[%s12098_s3 + $0x464] ss:$8 sps:$4 sm:$0xff]  }
 0x62a   : > { %6287 = vmatpush1.bf16.msra.mxu0 %v8894_v6  ;;  %v8966_v6 = vld [vmem:[%s12098_s3 + $0x460] ss:$8 sps:$4 sm:$0xff]  }
 0x62b   : > { %6121 = vmatpush1.bf16.msra.mxu1 %v8897_v45  ;;  %6288 = vmatprep.subr.bf16.mxu0 %v8902_v35  ;;  %v8972_v45 = vld [vmem:[%s12098_s3 + $0x440] ss:$8 sps:$4 sm:$0xff]   ;;  %v8977_v35 = vld [vmem:[%s12098_s3 + $0x434] ss:$8 sps:$4 sm:$0xff]  }
 0x62c   : > { %6122 = vmatprep.subr.bf16.mxu1 %v8905_v33  ;;  %v8975_v33 = vld [vmem:[%s12098_s3 + $0x430] ss:$8 sps:$4 sm:$0xff]  }
 0x62e   : > { %6289 = vmatpush1.bf16.msra.mxu0 %v8900_v14  ;;  %v8978_v14 = vld [vmem:[%s12098_s3 + $0x420] ss:$8 sps:$4 sm:$0xff]  }
 0x62f   : > { %6123 = vmatpush1.bf16.msra.mxu1 %v8903_v22  ;;  %6609 = vmatprep.subr.bf16.mxu0 %v8908_v28  ;;  %v8983_v22 = vld [vmem:[%s12098_s3 + $0x414] ss:$8 sps:$4 sm:$0xff]   ;;  %v8981_v28 = vld [vmem:[%s12098_s3 + $0x410] ss:$8 sps:$4 sm:$0xff]  }
 0x630   : > { %6124 = vmatprep.subr.bf16.mxu1 %v8911_v18  ;;  %v8984_v18 = vld [vmem:[%s12098_s3 + $0x400] ss:$8 sps:$4 sm:$0xff]  }
 0x631   : > { %6307 = vmatmul.mubr.bf16.vlgmr.msra.gmra.mxu0 %v6191_v2 }
 0x632   : > { %6610 = vmatpush1.bf16.msra.mxu0 %v8906_v56  ;;  %6316 = vmatprep.mubr.bf16.mxu0 %v9015_v8 }
 0x633   : > { %6125 = vmatpush1.bf16.msra.mxu1 %v8909_v58  ;;  %6611 = vmatprep.subr.bf16.mxu0 %v8914_v17 }
 0x634   : > { %6126 = vmatprep.subr.bf16.mxu1 %v8917_v42 }
 0x636   : > { %6612 = vmatpush1.bf16.msra.mxu0 %v8912_v43 }
 0x637   : > { %6127 = vmatpush1.bf16.msra.mxu1 %v8915_v23  ;;  %6613 = vmatprep.subr.bf16.mxu0 %v8920_v29 }
 0x638   : > { %6128 = vmatprep.subr.bf16.mxu1 %v8923_v24 }
 0x639   : > { %6317 = vmatmul.mubr.bf16.gmra.mxu0 %v6190_v30  ;;  %v8986_v30 = vld [vmem:[%s12098_s3 + $0x404] ss:$8 sps:$4 sm:$0xff]  }
 0x63a   : > { %6614 = vmatpush1.bf16.msra.mxu0 %v8918_v52  ;;  %6641 = vmatprep.mubr.bf16.mxu0 %v9015_v8 }
 0x63b   : > { %6129 = vmatpush1.bf16.msra.mxu1 %v8921_v27  ;;  %6615 = vmatprep.subr.bf16.mxu0 %v8926_v25 }
 0x63c   : > { %6436 = vmatprep.subr.bf16.mxu1 %v8929_v1 }
 0x63e   : > { %6147 = vmatmul.mubr.bf16.vlgmr.msra.gmra.mxu1 %v6031_v48  ;;  %6616 = vmatpush1.bf16.msra.mxu0 %v8924_v20 }
 0x63f   : > { %6437 = vmatpush1.bf16.msra.mxu1 %v8927_v51  ;;  %6617 = vmatprep.subr.bf16.mxu0 %v8932_v15 }
 0x640   : > { %6438 = vmatprep.subr.bf16.mxu1 %v8935_v55  ;;  %6156 = vmatprep.mubr.bf16.mxu1 %v9015_v8 }
 0x642   : > { %6618 = vmatpush1.bf16.msra.mxu0 %v8930_v10 }
 0x643   : > { %6439 = vmatpush1.bf16.msra.mxu1 %v8933_v21  ;;  %6619 = vmatprep.subr.bf16.mxu0 %v8938_v40 }
 0x644   : > { %6440 = vmatprep.subr.bf16.mxu1 %v8941_v4 }
 0x646   : > { %6157 = vmatmul.mubr.bf16.gmra.mxu1 %v6030_v62  ;;  %6620 = vmatpush1.bf16.msra.mxu0 %v8936_v31 }
 0x647   : > { %6441 = vmatpush1.bf16.msra.mxu1 %v8939_v36  ;;  %6621 = vmatprep.subr.bf16.mxu0 %v8944_v37 }
 0x648   : > { %6442 = vmatprep.subr.bf16.mxu1 %v8947_v11  ;;  %6468 = vmatprep.mubr.bf16.mxu1 %v9015_v8 }
 0x64a   : > { %6622 = vmatpush1.bf16.msra.mxu0 %v8942_v0 }
 0x64b   : > { %6443 = vmatpush1.bf16.msra.mxu1 %v8945_v9  ;;  %6623 = vmatprep.subr.bf16.mxu0 %v8950_v38 }
 0x64c   : > { %6444 = vmatprep.subr.bf16.mxu1 %v8953_v3 }
 0x64e   : > { %6624 = vmatpush1.bf16.msra.mxu0 %v8948_v57 }
 0x64f   : > { %6445 = vmatpush1.bf16.msra.mxu1 %v8951_v47 }
 0x650   : > { %6446 = vmatprep.subr.bf16.mxu1 %v8956_v63 }
 0x651   : > { %6642 = vmatmul.mubr.bf16.vlgmr.msra.gmra.mxu0 %v11752_v41  ;;  %v8965_v41 = vld [vmem:[%s12098_s3 + $0x474] ss:$8 sps:$4 sm:$0xff]  }
 0x652   : > { %6651 = vmatprep.mubr.bf16.mxu0 %v9015_v8 }
 0x653   : > { %6447 = vmatpush1.bf16.msra.mxu1 %v8954_v46 }
 0x654   : > { %6448 = vmatprep.subr.bf16.mxu1 %v8959_v5 }
 0x657   : > { %6449 = vmatpush1.bf16.msra.mxu1 %v8957_v16 }
 0x658   : > { %6450 = vmatprep.subr.bf16.mxu1 %v8962_v49 }
 0x659   : > { %6652 = vmatmul.mubr.bf16.gmra.mxu0 %v11761_v39  ;;  %v8969_v39 = vld [vmem:[%s12098_s3 + $0x450] ss:$8 sps:$4 sm:$0xff]  }
 0x65a   : > { %6965 = vmatprep.mubr.f32.mxu0 %v12235_v59  ;;  %v8971_v59 = vld [vmem:[%s12098_s3 + $0x454] ss:$8 sps:$4 sm:$0xff]  }
 0x65b   : > { %6451 = vmatpush1.bf16.msra.mxu1 %v8960_v50 }
 0x65c   : > { %6771 = vmatprep.subr.bf16.mxu1 %v8965_v41 }
 0x65e   : > { %6469 = vmatmul.mubr.bf16.vlgmr.msra.gmra.mxu1 %v11730_v53  ;;  %v8974_v53 = vld [vmem:[%s12098_s3 + $0x444] ss:$8 sps:$4 sm:$0xff]  }
 0x65f   : > { %6772 = vmatpush1.bf16.msra.mxu1 %v8963_v32  ;;  %6478 = vmatprep.mubr.bf16.mxu1 %v9015_v8 }
 0x660   : > { %6773 = vmatprep.subr.bf16.mxu1 %v8968_v7 }
 0x663   : > { %6774 = vmatpush1.bf16.msra.mxu1 %v8966_v6 }
 0x664   : > { %6775 = vmatprep.subr.bf16.mxu1 %v8971_v59 }
 0x666   : > { %6479 = vmatmul.mubr.bf16.gmra.mxu1 %v11743_v26  ;;  %v8980_v26 = vld [vmem:[%s12098_s3 + $0x424] ss:$8 sps:$4 sm:$0xff]  }
 0x667   : > { %6776 = vmatpush1.bf16.msra.mxu1 %v8969_v39  ;;  %6803 = vmatprep.mubr.bf16.mxu1 %v9015_v8 }
 0x668   : > { %6777 = vmatprep.subr.bf16.mxu1 %v8974_v53 }
 0x66b   : > { %6778 = vmatpush1.bf16.msra.mxu1 %v8972_v45 }
 0x66c   : > { %6779 = vmatprep.subr.bf16.mxu1 %v8977_v35 }
 0x66f   : > { %6780 = vmatpush1.bf16.msra.mxu1 %v8975_v33 }
 0x670   : > { %6781 = vmatprep.subr.bf16.mxu1 %v8980_v26 }
 0x673   : > { %6782 = vmatpush1.bf16.msra.mxu1 %v8978_v14 }
 0x674   : > { %6783 = vmatprep.subr.bf16.mxu1 %v8983_v22 }
 0x677   : > { %6784 = vmatpush1.bf16.msra.mxu1 %v8981_v28 }
 0x678   : > { %6785 = vmatprep.subr.bf16.mxu1 %v8986_v30 }
 0x67b   : > { %6786 = vmatpush1.bf16.msra.mxu1 %v8984_v18 }
 0x67e   : > { %6804 = vmatmul.mubr.bf16.vlgmr.msra.gmra.mxu1 %v11736_v19 }
 0x67f   : > { %6813 = vmatprep.mubr.bf16.mxu1 %v9015_v8 }
 0x686   : > { %6814 = vmatmul.mubr.bf16.gmra.mxu1 %v11746_v13 }
 0x6b1   : > { %v5670_v44 = vpop.f32.mrf.mxu0 }
 0x6b3   : > { %v5672_v56 = vpop.f32.mrf.mxu0 }
 0x6b5   : > { %v5674_v58 = vpop.f32.mrf.mxu0 }
 0x6b7   : > { %v5676_v17 = vpop.f32.mrf.mxu0 }
 0x6b9   : > { %v5680_v2 = vpop.f32.mrf.mxu0 }
 0x6bb   : > { %v5682_v42 = vpop.f32.mrf.mxu0 }
 0x6bd   : > { %v5684_v43 = vpop.f32.mrf.mxu0 }
 0x6be   : > { %v5539_v23 = vpop.f32.mrf.mxu1 }
 0x6bf   : > { %v5671_v29 = vadd.f32 %v5670_v44, %v5539_v23  ;;  %v5685_v24 = vpop.f32.mrf.mxu0 }
 0x6c0   : > { %v5541_v12 = vpop.f32.mrf.mxu1 }
 0x6c1   : > { %v5673_v61 = vadd.f32 %v5672_v56, %v5541_v12 }
 0x6c2   : > { %v5543_v52 = vpop.f32.mrf.mxu1 }
 0x6c3   : > { %v5675_v27 = vadd.f32 %v5674_v58, %v5543_v52 }
 0x6c4   : > { %v5545_v25 = vpop.f32.mrf.mxu1 }
 0x6c5   : > { %v5677_v19 = vadd.f32 %v5676_v17, %v5545_v25 }
 0x6c6   : > { %v5549_v60 = vpop.f32.mrf.mxu1 }
 0x6c7   : > { %v5681_v8 = vadd.f32 %v5680_v2, %v5549_v60 }
 0x6c8   : > { %v5551_v54 = vpop.f32.mrf.mxu1 }
 0x6c9   : > { %v5683_v13 = vadd.f32 %v5682_v42, %v5551_v54 }
 0x6ca   : > { %v5553_v1 = vpop.f32.mrf.mxu1 }
 0x6cc   : > { %v5554_v62 = vpop.f32.mrf.mxu1 }
 0x6d1   : > { %v5984_v20 = vpop.f32.mrf.mxu0 }
 0x6d3   : > { %v5986_v34 = vpop.f32.mrf.mxu0 }
 0x6d5   : > { %v5988_v51 = vpop.f32.mrf.mxu0 }
 0x6d7   : > { %v5990_v15 = vpop.f32.mrf.mxu0 }
 0x6d9   : > { %v5994_v55 = vpop.f32.mrf.mxu0 }
 0x6db   : > { %v5996_v48 = vpop.f32.mrf.mxu0 }
 0x6dd   : > { %v5998_v10 = vpop.f32.mrf.mxu0 }
 0x6de   : > { %v5825_v21 = vpop.f32.mrf.mxu1 }
 0x6df   : > { %v5842_v40 = vadd.f32 %v5825_v21, %v5671_v29  ;;  %v5999_v4 = vpop.f32.mrf.mxu0 }
 0x6e0   : > { %v5827_v31 = vpop.f32.mrf.mxu1 }
 0x6e1   : > { %v5843_v36 = vadd.f32 %v5827_v31, %v5673_v61  ;;  %v6001_v37 = vadd.f32 %v5984_v20, %v5842_v40 }
 0x6e2   : > { %v5829_v11 = vpop.f32.mrf.mxu1 }
 0x6e3   : > { %v5844_v0 = vadd.f32 %v5829_v11, %v5675_v27  ;;  %v6002_v9 = vadd.f32 %v5986_v34, %v5843_v36 }
 0x6e4   : > { %v5831_v38 = vpop.f32.mrf.mxu1 }
 0x6e5   : > { %v5845_v3 = vadd.f32 %v5831_v38, %v5677_v19  ;;  %v6003_v57 = vadd.f32 %v5988_v51, %v5844_v0 }
 0x6e6   : > { %v5835_v47 = vpop.f32.mrf.mxu1 }
 0x6e7   : > { %v5846_v63 = vadd.f32 %v5835_v47, %v5681_v8  ;;  %v6004_v46 = vadd.f32 %v5990_v15, %v5845_v3 }
 0x6e8   : > { %v5837_v5 = vpop.f32.mrf.mxu1 }
 0x6e9   : > { %v5847_v16 = vadd.f32 %v5837_v5, %v5683_v13  ;;  %v6005_v49 = vadd.f32 %v5994_v55, %v5846_v63 }
 0x6ea   : > { %v5839_v50 = vpop.f32.mrf.mxu1 }
 0x6eb   : > { %v6006_v41 = vadd.f32 %v5996_v48, %v5847_v16 }
 0x6ec   : > { %v5840_v32 = vpop.f32.mrf.mxu1 }
 0x6f1   : > { %v6308_v7 = vpop.f32.mrf.mxu0 }
 0x6f3   : > { %v6310_v6 = vpop.f32.mrf.mxu0 }
 0x6f5   : > { %v6312_v59 = vpop.f32.mrf.mxu0 }
 0x6f7   : > { %v6314_v39 = vpop.f32.mrf.mxu0 }
 0x6f9   : > { %v6318_v53 = vpop.f32.mrf.mxu0 }
 0x6fb   : > { %v6320_v45 = vpop.f32.mrf.mxu0 }
 0x6fd   : > { %v6322_v35 = vpop.f32.mrf.mxu0 }
 0x6fe   : > { %v6148_v33 = vpop.f32.mrf.mxu1 }
 0x6ff   : > { %v6165_v26 = vadd.f32 %v6148_v33, %v6001_v37  ;;  %v6323_v14 = vpop.f32.mrf.mxu0 }
 0x700   : > { %v6150_v22 = vpop.f32.mrf.mxu1 }
 0x701   : > { %v6166_v28 = vadd.f32 %v6150_v22, %v6002_v9  ;;  %v6325_v30 = vadd.f32 %v6308_v7, %v6165_v26 }
 0x702   : > { %v6152_v18 = vpop.f32.mrf.mxu1 }
 0x703   : > { %v6167_v44 = vadd.f32 %v6152_v18, %v6003_v57  ;;  %v6326_v56 = vadd.f32 %v6310_v6, %v6166_v28 }
 0x704   : > { %v6154_v58 = vpop.f32.mrf.mxu1 }
 0x705   : > { %v6168_v17 = vadd.f32 %v6154_v58, %v6004_v46  ;;  %v6327_v2 = vadd.f32 %v6312_v59, %v6167_v44 }
 0x706   : > { %v6158_v42 = vpop.f32.mrf.mxu1 }
 0x707   : > { %v6169_v43 = vadd.f32 %v6158_v42, %v6005_v49  ;;  %v6328_v23 = vadd.f32 %v6314_v39, %v6168_v17 }
 0x708   : > { %v6160_v29 = vpop.f32.mrf.mxu1 }
 0x709   : > { %v6170_v24 = vadd.f32 %v6160_v29, %v6006_v41  ;;  %v6329_v12 = vadd.f32 %v6318_v53, %v6169_v43 }
 0x70a   : > { %v6162_v61 = vpop.f32.mrf.mxu1 }
 0x70b   : > { %v6330_v52 = vadd.f32 %v6320_v45, %v6170_v24 }
 0x70c   : > { %v6163_v27 = vpop.f32.mrf.mxu1 }
 0x711   : > { %v6643_v25 = vpop.f32.mrf.mxu0 }
 0x713   : > { %v6645_v19 = vpop.f32.mrf.mxu0 }
 0x715   : > { %v6647_v60 = vpop.f32.mrf.mxu0 }
 0x717   : > { %v6649_v8 = vpop.f32.mrf.mxu0 }
 0x719   : > { %v6653_v54 = vpop.f32.mrf.mxu0 }
 0x71b   : > { %v6655_v13 = vpop.f32.mrf.mxu0 }
 0x71d   : > { %v6657_v1 = vpop.f32.mrf.mxu0 }
 0x71e   : > { %v6470_v62 = vpop.f32.mrf.mxu1 }
 0x71f   : > { %v6658_v20 = vpop.f32.mrf.mxu0  ;;  %v6487_v40 = vadd.f32 %v6470_v62, %v6325_v30 }
 0x720   : > { %v6472_v34 = vpop.f32.mrf.mxu1 }
 0x721   : > { %v6488_v4 = vadd.f32 %v6472_v34, %v6326_v56  ;;  %v6660_v36 = vadd.f32 %v6643_v25, %v6487_v40  ;;  %v6890_v40 = vld [vmem:[%s12101_s6] sm:$0xf] }
 0x722   : > { %v6474_v51 = vpop.f32.mrf.mxu1 }
 0x723   : > { %v6489_v31 = vadd.f32 %v6474_v51, %v6327_v2  ;;  %v6661_v9 = vadd.f32 %v6645_v19, %v6488_v4 }
 0x724   : > { %v6476_v15 = vpop.f32.mrf.mxu1 }
 0x725   : > { %v6490_v11 = vadd.f32 %v6476_v15, %v6328_v23  ;;  %v6662_v47 = vadd.f32 %v6647_v60, %v6489_v31 }
 0x726   : > { %v6480_v55 = vpop.f32.mrf.mxu1 }
 0x727   : > { %v6491_v3 = vadd.f32 %v6480_v55, %v6329_v12  ;;  %v6663_v16 = vadd.f32 %v6649_v8, %v6490_v11 }
 0x728   : > { %v6482_v48 = vpop.f32.mrf.mxu1 }
 0x729   : > { %v6492_v49 = vadd.f32 %v6482_v48, %v6330_v52  ;;  %v6664_v6 = vadd.f32 %v6653_v54, %v6491_v3 }
 0x72a   : > { %v6484_v10 = vpop.f32.mrf.mxu1 }
 0x72b   : > { %v6665_v33 = vadd.f32 %v6655_v13, %v6492_v49 }
 0x72c   : > { %v6485_v21 = vpop.f32.mrf.mxu1 }
 0x73e   : > { %v6805_v37 = vpop.f32.mrf.mxu1 }
 0x73f   : > { %v6822_v0 = vadd.f32 %v6805_v37, %v6660_v36 }
 0x740   : > { %v6807_v38 = vpop.f32.mrf.mxu1 }
 0x741   : > { %v6823_v57 = vadd.f32 %v6807_v38, %v6661_v9  ;;  %v6828_v46 = vmax.f32 %v6822_v0, 0.0 }
 0x742   : > { %v6809_v63 = vpop.f32.mrf.mxu1 }
 0x743   : > { %v6824_v5 = vadd.f32 %v6809_v63, %v6662_v47  ;;  %v6829_v41 = vmax.f32 %v6823_v57, 0.0  ;;  %v6838_v39 = vrot.slane %v6828_v46, 1 }
 0x744   : > { %v6811_v50 = vpop.f32.mrf.mxu1 }
 0x745   : > { %v6830_v32 = vmax.f32 %v6824_v5, 0.0  ;;  %v6825_v7 = vadd.f32 %v6811_v50, %v6663_v16  ;;  %v6841_v14 = vrot.slane %v6829_v41, 1 }
 0x746   : > { %v6815_v59 = vpop.f32.mrf.mxu1 }
 0x747   : > { %v6839_v53 = vrot.slane %v6830_v32, 1  ;;  %v6831_v45 = vmax.f32 %v6825_v7, 0.0  ;;  %v6826_v35 = vadd.f32 %v6815_v59, %v6664_v6 }
 0x748   : > { %v6817_v26 = vpop.f32.mrf.mxu1 }
 0x749   : > { %v6840_v22 = vsel %vm1012_vm3, %v6838_v39, %v6839_v53  ;;  %v6842_v28 = vrot.slane %v6831_v45, 1  ;;  %v6832_v30 = vmax.f32 %v6826_v35, 0.0  ;;  %v6827_v18 = vadd.f32 %v6817_v26, %v6665_v33 }
 0x74a   : > { %v6819_v44 = vpop.f32.mrf.mxu1  ;;  %v6848_v56 = vmax.f32 %v6828_v46, %v6840_v22  ;;  %v6850_v60 = vmax.f32 %v6830_v32, %v6839_v53 }
 0x74b   : > { %v6854_v58 = vrot.slane %v6832_v30, 1  ;;  %v6843_v17 = vsel %vm1012_vm3, %v6841_v14, %v6842_v28  ;;  %v6833_v2 = vmax.f32 %v6827_v18, 0.0  ;;  %v6851_v15 = vmax.f32 %v6831_v45, %v6842_v28 }
 0x74c   : > { %v6820_v42 = vpop.f32.mrf.mxu1  ;;  %v6849_v43 = vmax.f32 %v6829_v41, %v6843_v17  ;;  %v6872_v19 = vrot.slane %v6848_v56, 6 }
 0x74d   : > { %v6855_v23 = vsel %vm1012_vm3, %v6839_v53, %v6854_v58  ;;  %v6864_v29 = vmax.f32 %v6832_v30, %v6854_v58  ;;  %v6856_v12 = vrot.slane %v6833_v2, 1 }
 0x74e   : > { %v6862_v24 = vmax.f32 %v6830_v32, %v6855_v23  ;;  %v6875_v34 = vrot.slane %v6849_v43, 6 }
 0x74f   : > { %v6878_v61 = vrot.slane %v6864_v29, 6  ;;  %v6857_v27 = vsel %vm1012_vm3, %v6842_v28, %v6856_v12  ;;  %v6865_v25 = vmax.f32 %v6833_v2, %v6856_v12 }
 0x750   : > { %v6873_v52 = vrot.slane %v6862_v24, 6  ;;  %v6863_v8 = vmax.f32 %v6831_v45, %v6857_v27 }
 0x751   : > { %v6880_v13 = vrot.slane %v6865_v25, 6 }
 0x752   : > { %v6879_v54 = vsel %vm613_vm0, %v6873_v52, %v6878_v61  ;;  %v6874_v1 = vsel %vm613_vm0, %v6872_v19, %v6873_v52  ;;  %v6876_v20 = vrot.slane %v6863_v8, 6 }
 0x753   : > { %v6888_v62 = vmax.f32 %v6850_v60, %v6879_v54  ;;  %v6886_v51 = vmax.f32 %v6848_v56, %v6874_v1 }
 0x754   : > { %v6881_v55 = vsel %vm613_vm0, %v6876_v20, %v6880_v13  ;;  %v6877_v48 = vsel %vm613_vm0, %v6875_v34, %v6876_v20 }
 0x755   : > { %v6889_v10 = vmax.f32 %v6851_v15, %v6881_v55  ;;  %v6887_v21 = vmax.f32 %v6849_v43, %v6877_v48 }
 0x757   : > { %7683 = vmatprep.subr.msk.mxu0 %vm1012_vm3, %v6889_v10 }
 0x758   : > { %7684 = vmatpush1.msk.msra.mxu0 %vm1012_vm3, %v6888_v62 }
 0x759   : > { %6931 = vmatprep.subr.mxu0 %v6887_v21 }
 0x75a   : > { %6932 = vmatpush1.msra.mxu0 %v6886_v51 }
 0x75b   : > { %7685 = vmatmul.mubr.msk.f32.vlgmr.msra.gmra.mxu0 %vm6891_vm4, %v6890_v40 }
 0x81b   : > { %v6967_v4 = vpop.f32.mrf.mxu0 }
 0x81d   : > { %v6969_v31 = vpop.f32.mrf.mxu0 }
 0x81e   : > { %v6974_v36 = vcombine.low %v6967_v4, %v6969_v31 }
 0x820   : > { %6976 = vst [vmem:[%s278_s16] sm:$0xff] %v6974_v36 }
 0x821 PF: > { %s17_s24 = sadd.s32 1, %s9010_s24  }
 0x822   : > { %p14_p4 = scmp.ge.s32.totalorder %s17_s24, 4  }
 0x824   :  { %16 = sbr.rel (!%p14_p4) target bundleno = 1 (0x1), region = 102 }

</bundles_post_ra>
